<compile_context>
chip_gen: v7x
topology: tpu7x:2x2x1
jax: 0.10.0
libtpu: 0.0.40
codegen_flags: <defaults>
</compile_context>

<pallas_src>
import functools
import math

import jax
import jax.numpy as jnp
from jax.experimental import pallas as pl
from jax.experimental.pallas import tpu as pltpu

MATMUL_DTYPE = jnp.bfloat16     # MXU operands / pre-cast weights
ACT_DTYPE = jnp.bfloat16        # inter-kernel activations in HBM
LN_EPS = 1e-5                   # torch.nn.LayerNorm default


def _default_vmem_limit():
    # Per-generation scoped-VMEM budget: ~half physical, capped at 96 MiB.
    #   v5e/v6e (128 MiB physical) -> 64 MiB ; v7x (64 MiB physical) -> 32 MiB.
    try:
        cap = int(getattr(pltpu.get_tpu_info(), "vmem_capacity_bytes", 64 * 1024 * 1024))
    except Exception:
        cap = 64 * 1024 * 1024
    return int(min(max(cap // 2, 16 * 1024 * 1024), 96 * 1024 * 1024))


VMEM_LIMIT = _default_vmem_limit()
# Smaller tiles on small-VMEM parts (v7x) to avoid spilling; bigger tiles elsewhere.
TILE_CANDIDATES = (256, 128) if VMEM_LIMIT < 48 * 1024 * 1024 else (512, 256, 128)


def _pick_tile(dim, candidates=TILE_CANDIDATES):
    """Largest candidate that evenly divides `dim`, else the full dim (no tiling)."""
    for c in candidates:
        if c <= dim and dim % c == 0:
            return c
    return dim


# ----------------------------- Pallas kernels -----------------------------

def _embed_ln_kernel(x_ref, w_ref, b_ref, pos_ref, g_ref, bt_ref, o_ref):
    # y = LayerNorm(x @ W + b + pos); one batch element per grid step.
    y = jnp.dot(x_ref[0], w_ref[...], preferred_element_type=jnp.float32)   # bf16 x bf16
    y = y + b_ref[...] + pos_ref[0]                                          # pos bcast over seq
    mean = jnp.mean(y, axis=-1, keepdims=True)
    cen = y - mean
    var = jnp.mean(cen * cen, axis=-1, keepdims=True)
    o_ref[0] = (cen * jax.lax.rsqrt(var + LN_EPS) * g_ref[...]
                + bt_ref[...]).astype(o_ref.dtype)


def embed_ln(emb_bse, w, b, pos_b1d, gamma, beta):
    B, S, E = emb_bse.shape
    D = w.shape[1]
    return pl.pallas_call(
        _embed_ln_kernel,
        grid=(B,),
        out_shape=jax.ShapeDtypeStruct((B, S, D), ACT_DTYPE),
        in_specs=[
            pl.BlockSpec((1, S, E), lambda bi: (bi, 0, 0)),
            pl.BlockSpec((E, D), lambda bi: (0, 0)),
            pl.BlockSpec((1, D), lambda bi: (0, 0)),
            pl.BlockSpec((1, 1, D), lambda bi: (bi, 0, 0)),
            pl.BlockSpec((1, D), lambda bi: (0, 0)),
            pl.BlockSpec((1, D), lambda bi: (0, 0)),
        ],
        out_specs=pl.BlockSpec((1, S, D), lambda bi: (bi, 0, 0)),
        compiler_params=pltpu.CompilerParams(
            dimension_semantics=("parallel",), vmem_limit_bytes=VMEM_LIMIT),
    )(emb_bse, w, b.reshape(1, D), pos_b1d, gamma.reshape(1, D), beta.reshape(1, D))


def _attn_block_kernel(h_ref, wqkv_ref, bqkv_ref, wo_ref, bo_ref, g_ref, bt_ref,
                       o_ref, *, nhead, scale):
    # Whole attention sub-layer for one batch element:
    #   o = LayerNorm(h + MHA_causal(h) @ Wo + bo)
    # q/k/v are computed in-kernel from the stacked (3,D,D) weight and never leave VMEM.
    S, D = h_ref.shape[1], h_ref.shape[2]
    hd = D // nhead
    h = h_ref[0]                                                     # (S, D) bf16

    q = jnp.dot(h, wqkv_ref[0], preferred_element_type=jnp.float32) + bqkv_ref[0]
    k = jnp.dot(h, wqkv_ref[1], preferred_element_type=jnp.float32) + bqkv_ref[1]
    v = jnp.dot(h, wqkv_ref[2], preferred_element_type=jnp.float32) + bqkv_ref[2]

    rows = jax.lax.broadcasted_iota(jnp.int32, (S, S), 0)
    cols = jax.lax.broadcasted_iota(jnp.int32, (S, S), 1)
    causal = rows >= cols

    # TODO(synk): at production sizes pad/pack heads to 128-lane multiples and use a
    # single batched dot_general (and flash-style K tiling for long S); at hd=8 the
    # per-head slices are inherently lane-sparse.
    ctx_heads = []
    for hh in range(nhead):
        sl = slice(hh * hd, (hh + 1) * hd)
        qh = q[:, sl].astype(MATMUL_DTYPE)
        kh = k[:, sl].astype(MATMUL_DTYPE)
        vh = v[:, sl].astype(MATMUL_DTYPE)
        s = jax.lax.dot_general(qh, kh, (((1,), (1,)), ((), ())),
                                preferred_element_type=jnp.float32) * scale
        s = jnp.where(causal, s, -1e30)                              # finite mask (NaN-safe)
        mx = jnp.max(s, axis=-1, keepdims=True)
        e = jnp.exp(s - mx)
        denom = jnp.sum(e, axis=-1, keepdims=True)
        p = (e * pl.reciprocal(denom, approx=True)).astype(MATMUL_DTYPE)   # EUP recip
        ctx_heads.append(jnp.dot(p, vh, preferred_element_type=jnp.float32))

    # assemble all heads into ONE (S, D) value -> single lane-dense path downstream
    ctx = jnp.concatenate(ctx_heads, axis=-1).astype(MATMUL_DTYPE)

    # output projection + residual + LayerNorm1, single (S, D) store
    y = jnp.dot(ctx, wo_ref[...], preferred_element_type=jnp.float32)
    y = y + bo_ref[...] + h.astype(jnp.float32)
    mean = jnp.mean(y, axis=-1, keepdims=True)
    cen = y - mean
    var = jnp.mean(cen * cen, axis=-1, keepdims=True)
    o_ref[0] = (cen * jax.lax.rsqrt(var + LN_EPS) * g_ref[...]
                + bt_ref[...]).astype(o_ref.dtype)


def attn_block(h_bsd, w_qkv, b_qkv, wo, bo, gamma, beta, nhead, scale):
    B, S, D = h_bsd.shape
    kernel = functools.partial(_attn_block_kernel, nhead=nhead, scale=scale)
    return pl.pallas_call(
        kernel,
        grid=(B,),
        out_shape=jax.ShapeDtypeStruct((B, S, D), ACT_DTYPE),
        in_specs=[
            pl.BlockSpec((1, S, D), lambda bi: (bi, 0, 0)),
            pl.BlockSpec((3, D, D), lambda bi: (0, 0, 0)),
            pl.BlockSpec((3, 1, D), lambda bi: (0, 0, 0)),
            pl.BlockSpec((D, D), lambda bi: (0, 0)),
            pl.BlockSpec((1, D), lambda bi: (0, 0)),
            pl.BlockSpec((1, D), lambda bi: (0, 0)),
            pl.BlockSpec((1, D), lambda bi: (0, 0)),
        ],
        out_specs=pl.BlockSpec((1, S, D), lambda bi: (bi, 0, 0)),
        compiler_params=pltpu.CompilerParams(
            dimension_semantics=("parallel",), vmem_limit_bytes=VMEM_LIMIT),
    )(h_bsd, w_qkv, b_qkv, wo, bo.reshape(1, D), gamma.reshape(1, D), beta.reshape(1, D))


def _ffn_ln_kernel(x_ref, w1_ref, b1_ref, w2_ref, b2_ref, g_ref, bt_ref, o_ref, acc_ref):
    # o = LayerNorm(x + relu(x@W1+b1)@W2 + b2); hidden dim tiled as the 'arbitrary'
    # K loop so the (M, dim_feedforward) intermediate never leaves VMEM.
    hblk = pl.program_id(1)

    @pl.when(hblk == 0)
    def _():
        acc_ref[...] = jnp.zeros_like(acc_ref)

    x = x_ref[...]                                                   # (tm, D) bf16
    mid = jnp.dot(x, w1_ref[...], preferred_element_type=jnp.float32) + b1_ref[...]
    mid = jnp.maximum(mid, 0.0).astype(MATMUL_DTYPE)
    acc_ref[...] += jnp.dot(mid, w2_ref[...], preferred_element_type=jnp.float32)

    @pl.when(hblk == pl.num_programs(1) - 1)
    def _():
        y = acc_ref[...] + b2_ref[...] + x_ref[...].astype(jnp.float32)
        mean = jnp.mean(y, axis=-1, keepdims=True)
        cen = y - mean
        var = jnp.mean(cen * cen, axis=-1, keepdims=True)
        o_ref[...] = (cen * jax.lax.rsqrt(var + LN_EPS) * g_ref[...]
                      + bt_ref[...]).astype(o_ref.dtype)


def ffn_ln(x2d, w1, b1, w2, b2, gamma, beta):
    M, D = x2d.shape
    H = w1.shape[1]
    tm = _pick_tile(M)
    th = _pick_tile(H)
    return pl.pallas_call(
        _ffn_ln_kernel,
        grid=(M // tm, H // th),
        out_shape=jax.ShapeDtypeStruct((M, D), ACT_DTYPE),
        in_specs=[
            pl.BlockSpec((tm, D), lambda i, h: (i, 0)),
            pl.BlockSpec((D, th), lambda i, h: (0, h)),
            pl.BlockSpec((1, th), lambda i, h: (0, h)),
            pl.BlockSpec((th, D), lambda i, h: (h, 0)),
            pl.BlockSpec((1, D), lambda i, h: (0, 0)),
            pl.BlockSpec((1, D), lambda i, h: (0, 0)),
            pl.BlockSpec((1, D), lambda i, h: (0, 0)),
        ],
        out_specs=pl.BlockSpec((tm, D), lambda i, h: (i, 0)),
        scratch_shapes=[pltpu.VMEM((tm, D), jnp.float32)],
        compiler_params=pltpu.CompilerParams(
            dimension_semantics=("parallel", "arbitrary"), vmem_limit_bytes=VMEM_LIMIT),
    )(x2d, w1, b1.reshape(1, H), w2, b2.reshape(1, D),
      gamma.reshape(1, D), beta.reshape(1, D))


def _linear_kernel(x_ref, w_ref, b_ref, o_ref, acc_ref):
    k = pl.program_id(2)

    @pl.when(k == 0)
    def _():
        acc_ref[...] = jnp.zeros_like(acc_ref)

    acc_ref[...] += jnp.dot(x_ref[...], w_ref[...], preferred_element_type=jnp.float32)

    @pl.when(k == pl.num_programs(2) - 1)
    def _():
        o_ref[...] = acc_ref[...] + b_ref[...]


def linear(x2d, w, b):
    """Tiled y = x @ w + b (vocab projection; w columns pre-padded to lane-dense width)."""
    M, K = x2d.shape
    N = w.shape[1]
    tm = _pick_tile(M)
    tn = _pick_tile(N)
    tk = _pick_tile(K)
    return pl.pallas_call(
        _linear_kernel,
        grid=(M // tm, N // tn, K // tk),
        out_shape=jax.ShapeDtypeStruct((M, N), jnp.float32),
        in_specs=[
            pl.BlockSpec((tm, tk), lambda i, j, k: (i, k)),
            pl.BlockSpec((tk, tn), lambda i, j, k: (k, j)),
            pl.BlockSpec((1, tn), lambda i, j, k: (0, j)),
        ],
        out_specs=pl.BlockSpec((tm, tn), lambda i, j, k: (i, j)),
        scratch_shapes=[pltpu.VMEM((tm, tn), jnp.float32)],
        compiler_params=pltpu.CompilerParams(
            dimension_semantics=("parallel", "parallel", "arbitrary"),
            vmem_limit_bytes=VMEM_LIMIT),
    )(x2d, w, b.reshape(1, N))


# ----------------------------- parameter init -----------------------------

def init_params(key, vocab_size, d_model, nhead, num_layers,
                max_seq_length, embedding_dim, dim_feedforward):
    def dense(k, fan_in, fan_out):
        lim = 1.0 / math.sqrt(fan_in)
        kw, kb = jax.random.split(k)
        w = jax.random.uniform(kw, (fan_in, fan_out), jnp.float32, -lim, lim)
        b = jax.random.uniform(kb, (fan_out,), jnp.float32, -lim, lim)
        return w.astype(MATMUL_DTYPE), b        # weights pre-cast to bf16, biases f32

    keys = jax.random.split(key, 4 + num_layers)
    params = {}
    # pretrained embedding matrix (vocab_size, embedding_dim) — stored bf16 (MXU operand)
    params["embedding_matrix"] = jax.random.normal(
        keys[0], (vocab_size, embedding_dim), jnp.float32).astype(MATMUL_DTYPE)
    params["emb_lin_w"], params["emb_lin_b"] = dense(keys[1], embedding_dim, d_model)
    # PyTorch initializes positional_encoding to zeros; small random values here so the
    # broadcast-add path is actually exercised (deterministic, shape-identical).
    params["pos_enc"] = 0.02 * jax.random.normal(
        keys[2], (1, max_seq_length, d_model), jnp.float32)
    params["emb_ln_g"] = jnp.ones((d_model,), jnp.float32)
    params["emb_ln_b"] = jnp.zeros((d_model,), jnp.float32)

    layers = []
    for l in range(num_layers):
        lk = jax.random.split(keys[4 + l], 6)
        wq, bq = dense(lk[0], d_model, d_model)
        wk, bk = dense(lk[1], d_model, d_model)
        wv, bv = dense(lk[2], d_model, d_model)
        layer = {
            "w_qkv": jnp.stack([wq, wk, wv]),                         # (3, D, D) bf16
            "b_qkv": jnp.stack([bq, bk, bv]).reshape(3, 1, d_model),  # f32
        }
        layer["wo"], layer["bo"] = dense(lk[3], d_model, d_model)
        layer["w_ff1"], layer["b_ff1"] = dense(lk[4], d_model, dim_feedforward)
        layer["w_ff2"], layer["b_ff2"] = dense(lk[5], dim_feedforward, d_model)
        layer["ln1_g"] = jnp.ones((d_model,), jnp.float32)
        layer["ln1_b"] = jnp.zeros((d_model,), jnp.float32)
        layer["ln2_g"] = jnp.ones((d_model,), jnp.float32)
        layer["ln2_b"] = jnp.zeros((d_model,), jnp.float32)
        layers.append(layer)
    params["layers"] = layers

    # vocab projection, columns zero-padded to a multiple of 128 for lane-dense stores
    fc_w, fc_b = dense(keys[3], d_model, vocab_size)
    v_pad = ((vocab_size + 127) // 128) * 128
    if v_pad != vocab_size:
        fc_w = jnp.pad(fc_w, ((0, 0), (0, v_pad - vocab_size)))
        fc_b = jnp.pad(fc_b, (0, v_pad - vocab_size))
    params["fc_w"], params["fc_b"] = fc_w, fc_b
    return params


# ----------------------------- forward pass -----------------------------

def transformer_forward(params, x_tokens, *, nhead, vocab_size):
    S, B = x_tokens.shape                        # PyTorch batch_first=False convention
    d_model = params["emb_lin_w"].shape[1]
    hd = d_model // nhead
    scale = 1.0 / math.sqrt(hd)

    # Internal layout is (B, S, D): every kernel tiles over batch / flattened rows with
    # plain BlockSpec indexing and no XLA transposes between pallas_calls.
    tokens_bs = x_tokens.T                                        # (B, S) tiny int transpose
    emb = params["embedding_matrix"][tokens_bs]                   # (B, S, E) bf16 gather (XLA)
    # Faithful to the PyTorch code: positional_encoding[:, :x.size(1), :] with x of shape
    # (S, B, D) -> indexed by the *batch* index and broadcast over the sequence.
    pos = params["pos_enc"][0, :B, :].reshape(B, 1, d_model)

    # fused: embedding Linear + positional add + embedding LayerNorm (dropout = identity)
    h = embed_ln(emb, params["emb_lin_w"], params["emb_lin_b"], pos,
                 params["emb_ln_g"], params["emb_ln_b"])          # (B, S, D) bf16

    for layer in params["layers"]:
        # fused attention sub-layer: QKV proj + causal MHA + out proj + residual + LN1
        h = attn_block(h, layer["w_qkv"], layer["b_qkv"], layer["wo"], layer["bo"],
                       layer["ln1_g"], layer["ln1_b"], nhead, scale)        # (B, S, D) bf16
        # fused FFN (relu) + residual + LN2, hidden dim kept in VMEM
        h2d = ffn_ln(h.reshape(B * S, d_model),
                     layer["w_ff1"], layer["b_ff1"],
                     layer["w_ff2"], layer["b_ff2"],
                     layer["ln2_g"], layer["ln2_b"])                        # (B*S, D) bf16
        h = h2d.reshape(B, S, d_model)

    logits = linear(h.reshape(B * S, d_model), params["fc_w"], params["fc_b"])
    logits = logits[:, :vocab_size]                               # drop lane-padding cols
    return logits.reshape(B, S, vocab_size).transpose(1, 0, 2)    # back to (S, B, V)


# ----------------------------- demo -----------------------------

if __name__ == "__main__":
    vocab_size = 50
    d_model = 32
    nhead = 4
    num_layers = 2
    max_seq_length = 16
    embedding_dim = 24
    dim_feedforward = 2048   # torch.nn.TransformerEncoderLayer default
    S, B = 8, 2              # (seq, batch) — batch_first=False convention

    root = jax.random.PRNGKey(0)
    k_params, k_tokens = jax.random.split(root)
    params = init_params(k_params, vocab_size, d_model, nhead, num_layers,
                         max_seq_length, embedding_dim, dim_feedforward)
    x = jax.random.randint(k_tokens, (S, B), 0, vocab_size, dtype=jnp.int32)

    fwd = jax.jit(functools.partial(transformer_forward, nhead=nhead,
                                    vocab_size=vocab_size))
    logits = jax.block_until_ready(fwd(params, x))
    assert logits.shape == (S, B, vocab_size)
    assert bool(jnp.all(jnp.isfinite(logits)))
    print("KERNEL_OK")
</pallas_src>

<mosaic_0001>
module attributes {stable_mosaic.version = 11 : i64} {
  func.func @_attn_block_kernel(%arg0: i32, %arg1: memref<1x8x32xbf16, #tpu.memory_space<vmem>>, %arg2: memref<3x32x32xbf16, #tpu.memory_space<vmem>>, %arg3: memref<3x1x32xf32, #tpu.memory_space<vmem>>, %arg4: memref<32x32xbf16, #tpu.memory_space<vmem>>, %arg5: memref<1x32xf32, #tpu.memory_space<vmem>>, %arg6: memref<1x32xf32, #tpu.memory_space<vmem>>, %arg7: memref<1x32xf32, #tpu.memory_space<vmem>>, %arg8: memref<1x8x32xbf16, #tpu.memory_space<vmem>>) attributes {dimension_semantics = [#tpu.dimension_semantics<parallel>], iteration_bounds = array<i64: 2>, scalar_prefetch = 0 : i64, scratch_operands = 0 : i64, tpu.core_type = #tpu.core_type<tc>, window_params = [{transform_indices = @transform_0, window_bounds = array<i64: 1, 8, 32>}, {pipeline_mode = #tpu.pipeline_mode<synchronous>, transform_indices = @transform_1, window_bounds = array<i64: 3, 32, 32>}, {pipeline_mode = #tpu.pipeline_mode<synchronous>, transform_indices = @transform_2, window_bounds = array<i64: 3, 1, 32>}, {pipeline_mode = #tpu.pipeline_mode<synchronous>, transform_indices = @transform_3, window_bounds = array<i64: 32, 32>}, {pipeline_mode = #tpu.pipeline_mode<synchronous>, transform_indices = @transform_4, window_bounds = array<i64: 1, 32>}, {pipeline_mode = #tpu.pipeline_mode<synchronous>, transform_indices = @transform_5, window_bounds = array<i64: 1, 32>}, {pipeline_mode = #tpu.pipeline_mode<synchronous>, transform_indices = @transform_6, window_bounds = array<i64: 1, 32>}, {transform_indices = @transform_7, window_bounds = array<i64: 1, 8, 32>}]} {
    %c0 = arith.constant 0 : index
    %c0_0 = arith.constant 0 : index
    %c0_1 = arith.constant 0 : index
    %0 = vector.load %arg1[%c0, %c0_0, %c0_1] : memref<1x8x32xbf16, #tpu.memory_space<vmem>>, vector<1x8x32xbf16>
    %1 = vector.shape_cast %0 : vector<1x8x32xbf16> to vector<8x32xbf16>
    %c0_2 = arith.constant 0 : index
    %c0_3 = arith.constant 0 : index
    %c0_4 = arith.constant 0 : index
    %2 = vector.load %arg2[%c0_2, %c0_3, %c0_4] : memref<3x32x32xbf16, #tpu.memory_space<vmem>>, vector<1x32x32xbf16>
    %3 = vector.shape_cast %2 : vector<1x32x32xbf16> to vector<32x32xbf16>
    %cst = arith.constant dense<0.000000e+00> : vector<8x32xf32>
    %4 = tpu.matmul %1, %3, %cst {dimension_numbers = #tpu.dot_dimension_numbers<[1], [0], [0], [1], [0, 0, 1, 1], [], []>} : vector<8x32xbf16>, vector<32x32xbf16>, vector<8x32xf32> -> vector<8x32xf32>
    %c0_5 = arith.constant 0 : index
    %c0_6 = arith.constant 0 : index
    %c0_7 = arith.constant 0 : index
    %5 = vector.load %arg3[%c0_5, %c0_6, %c0_7] : memref<3x1x32xf32, #tpu.memory_space<vmem>>, vector<1x1x32xf32>
    %6 = vector.shape_cast %5 : vector<1x1x32xf32> to vector<1x32xf32>
    %7 = vector.broadcast %6 : vector<1x32xf32> to vector<8x32xf32>
    %8 = arith.addf %4, %7 : vector<8x32xf32>
    %c1 = arith.constant 1 : index
    %c0_8 = arith.constant 0 : index
    %c0_9 = arith.constant 0 : index
    %9 = vector.load %arg2[%c1, %c0_8, %c0_9] : memref<3x32x32xbf16, #tpu.memory_space<vmem>>, vector<1x32x32xbf16>
    %10 = vector.shape_cast %9 : vector<1x32x32xbf16> to vector<32x32xbf16>
    %cst_10 = arith.constant dense<0.000000e+00> : vector<8x32xf32>
    %11 = tpu.matmul %1, %10, %cst_10 {dimension_numbers = #tpu.dot_dimension_numbers<[1], [0], [0], [1], [0, 0, 1, 1], [], []>} : vector<8x32xbf16>, vector<32x32xbf16>, vector<8x32xf32> -> vector<8x32xf32>
    %c1_11 = arith.constant 1 : index
    %c0_12 = arith.constant 0 : index
    %c0_13 = arith.constant 0 : index
    %12 = vector.load %arg3[%c1_11, %c0_12, %c0_13] : memref<3x1x32xf32, #tpu.memory_space<vmem>>, vector<1x1x32xf32>
    %13 = vector.shape_cast %12 : vector<1x1x32xf32> to vector<1x32xf32>
    %14 = vector.broadcast %13 : vector<1x32xf32> to vector<8x32xf32>
    %15 = arith.addf %11, %14 : vector<8x32xf32>
    %c2 = arith.constant 2 : index
    %c0_14 = arith.constant 0 : index
    %c0_15 = arith.constant 0 : index
    %16 = vector.load %arg2[%c2, %c0_14, %c0_15] : memref<3x32x32xbf16, #tpu.memory_space<vmem>>, vector<1x32x32xbf16>
    %17 = vector.shape_cast %16 : vector<1x32x32xbf16> to vector<32x32xbf16>
    %cst_16 = arith.constant dense<0.000000e+00> : vector<8x32xf32>
    %18 = tpu.matmul %1, %17, %cst_16 {dimension_numbers = #tpu.dot_dimension_numbers<[1], [0], [0], [1], [0, 0, 1, 1], [], []>} : vector<8x32xbf16>, vector<32x32xbf16>, vector<8x32xf32> -> vector<8x32xf32>
    %c2_17 = arith.constant 2 : index
    %c0_18 = arith.constant 0 : index
    %c0_19 = arith.constant 0 : index
    %19 = vector.load %arg3[%c2_17, %c0_18, %c0_19] : memref<3x1x32xf32, #tpu.memory_space<vmem>>, vector<1x1x32xf32>
    %20 = vector.shape_cast %19 : vector<1x1x32xf32> to vector<1x32xf32>
    %21 = vector.broadcast %20 : vector<1x32xf32> to vector<8x32xf32>
    %22 = arith.addf %18, %21 : vector<8x32xf32>
    %23 = tpu.iota {dimensions = array<i32: 0>} : vector<8x8xi32>
    %24 = tpu.iota {dimensions = array<i32: 1>} : vector<8x8xi32>
    %25 = arith.cmpi sge, %23, %24 : vector<8x8xi32>
    %26 = vector.extract_strided_slice %8 {offsets = [0, 0], sizes = [8, 8], strides = [1, 1]} : vector<8x32xf32> to vector<8x8xf32>
    %27 = arith.truncf %26 : vector<8x8xf32> to vector<8x8xbf16>
    %28 = vector.extract_strided_slice %15 {offsets = [0, 0], sizes = [8, 8], strides = [1, 1]} : vector<8x32xf32> to vector<8x8xf32>
    %29 = arith.truncf %28 : vector<8x8xf32> to vector<8x8xbf16>
    %30 = vector.extract_strided_slice %22 {offsets = [0, 0], sizes = [8, 8], strides = [1, 1]} : vector<8x32xf32> to vector<8x8xf32>
    %31 = arith.truncf %30 : vector<8x8xf32> to vector<8x8xbf16>
    %cst_20 = arith.constant dense<0.000000e+00> : vector<8x8xf32>
    %32 = tpu.matmul %27, %29, %cst_20 {dimension_numbers = #tpu.dot_dimension_numbers<[1], [1], [0], [0], [0, 0, 1, 0], [], []>} : vector<8x8xbf16>, vector<8x8xbf16>, vector<8x8xf32> -> vector<8x8xf32>
    %cst_21 = arith.constant 0.353553385 : f32
    %33 = vector.broadcast %cst_21 : f32 to vector<8x8xf32>
    %34 = arith.mulf %32, %33 : vector<8x8xf32>
    %cst_22 = arith.constant -1.000000e+30 : f32
    %35 = vector.broadcast %cst_22 : f32 to vector<8x8xf32>
    %36 = arith.select %25, %34, %35 : vector<8x8xi1>, vector<8x8xf32>
    %cst_23 = arith.constant dense<0xFF800000> : vector<8xf32>
    %37 = vector.multi_reduction <maximumf>, %36, %cst_23 [1] : vector<8x8xf32> to vector<8xf32>
    %38 = vector.shape_cast %37 : vector<8xf32> to vector<8x1xf32>
    %39 = vector.broadcast %38 : vector<8x1xf32> to vector<8x8xf32>
    %40 = arith.subf %36, %39 : vector<8x8xf32>
    %41 = math.exp %40 : vector<8x8xf32>
    %cst_24 = arith.constant dense<0.000000e+00> : vector<8xf32>
    %42 = vector.multi_reduction <add>, %41, %cst_24 [1] : vector<8x8xf32> to vector<8xf32>
    %43 = vector.shape_cast %42 : vector<8xf32> to vector<8x1xf32>
    %44 = tpu.reciprocal %43 {approx = true} : vector<8x1xf32> -> vector<8x1xf32>
    %45 = vector.broadcast %44 : vector<8x1xf32> to vector<8x8xf32>
    %46 = arith.mulf %41, %45 : vector<8x8xf32>
    %47 = arith.truncf %46 : vector<8x8xf32> to vector<8x8xbf16>
    %cst_25 = arith.constant dense<0.000000e+00> : vector<8x8xf32>
    %48 = tpu.matmul %47, %31, %cst_25 {dimension_numbers = #tpu.dot_dimension_numbers<[1], [0], [0], [1], [0, 0, 1, 1], [], []>} : vector<8x8xbf16>, vector<8x8xbf16>, vector<8x8xf32> -> vector<8x8xf32>
    %49 = vector.extract_strided_slice %8 {offsets = [0, 8], sizes = [8, 8], strides = [1, 1]} : vector<8x32xf32> to vector<8x8xf32>
    %50 = arith.truncf %49 : vector<8x8xf32> to vector<8x8xbf16>
    %51 = vector.extract_strided_slice %15 {offsets = [0, 8], sizes = [8, 8], strides = [1, 1]} : vector<8x32xf32> to vector<8x8xf32>
    %52 = arith.truncf %51 : vector<8x8xf32> to vector<8x8xbf16>
    %53 = vector.extract_strided_slice %22 {offsets = [0, 8], sizes = [8, 8], strides = [1, 1]} : vector<8x32xf32> to vector<8x8xf32>
    %54 = arith.truncf %53 : vector<8x8xf32> to vector<8x8xbf16>
    %cst_26 = arith.constant dense<0.000000e+00> : vector<8x8xf32>
    %55 = tpu.matmul %50, %52, %cst_26 {dimension_numbers = #tpu.dot_dimension_numbers<[1], [1], [0], [0], [0, 0, 1, 0], [], []>} : vector<8x8xbf16>, vector<8x8xbf16>, vector<8x8xf32> -> vector<8x8xf32>
    %cst_27 = arith.constant 0.353553385 : f32
    %56 = vector.broadcast %cst_27 : f32 to vector<8x8xf32>
    %57 = arith.mulf %55, %56 : vector<8x8xf32>
    %cst_28 = arith.constant -1.000000e+30 : f32
    %58 = vector.broadcast %cst_28 : f32 to vector<8x8xf32>
    %59 = arith.select %25, %57, %58 : vector<8x8xi1>, vector<8x8xf32>
    %cst_29 = arith.constant dense<0xFF800000> : vector<8xf32>
    %60 = vector.multi_reduction <maximumf>, %59, %cst_29 [1] : vector<8x8xf32> to vector<8xf32>
    %61 = vector.shape_cast %60 : vector<8xf32> to vector<8x1xf32>
    %62 = vector.broadcast %61 : vector<8x1xf32> to vector<8x8xf32>
    %63 = arith.subf %59, %62 : vector<8x8xf32>
    %64 = math.exp %63 : vector<8x8xf32>
    %cst_30 = arith.constant dense<0.000000e+00> : vector<8xf32>
    %65 = vector.multi_reduction <add>, %64, %cst_30 [1] : vector<8x8xf32> to vector<8xf32>
    %66 = vector.shape_cast %65 : vector<8xf32> to vector<8x1xf32>
    %67 = tpu.reciprocal %66 {approx = true} : vector<8x1xf32> -> vector<8x1xf32>
    %68 = vector.broadcast %67 : vector<8x1xf32> to vector<8x8xf32>
    %69 = arith.mulf %64, %68 : vector<8x8xf32>
    %70 = arith.truncf %69 : vector<8x8xf32> to vector<8x8xbf16>
    %cst_31 = arith.constant dense<0.000000e+00> : vector<8x8xf32>
    %71 = tpu.matmul %70, %54, %cst_31 {dimension_numbers = #tpu.dot_dimension_numbers<[1], [0], [0], [1], [0, 0, 1, 1], [], []>} : vector<8x8xbf16>, vector<8x8xbf16>, vector<8x8xf32> -> vector<8x8xf32>
    %72 = vector.extract_strided_slice %8 {offsets = [0, 16], sizes = [8, 8], strides = [1, 1]} : vector<8x32xf32> to vector<8x8xf32>
    %73 = arith.truncf %72 : vector<8x8xf32> to vector<8x8xbf16>
    %74 = vector.extract_strided_slice %15 {offsets = [0, 16], sizes = [8, 8], strides = [1, 1]} : vector<8x32xf32> to vector<8x8xf32>
    %75 = arith.truncf %74 : vector<8x8xf32> to vector<8x8xbf16>
    %76 = vector.extract_strided_slice %22 {offsets = [0, 16], sizes = [8, 8], strides = [1, 1]} : vector<8x32xf32> to vector<8x8xf32>
    %77 = arith.truncf %76 : vector<8x8xf32> to vector<8x8xbf16>
    %cst_32 = arith.constant dense<0.000000e+00> : vector<8x8xf32>
    %78 = tpu.matmul %73, %75, %cst_32 {dimension_numbers = #tpu.dot_dimension_numbers<[1], [1], [0], [0], [0, 0, 1, 0], [], []>} : vector<8x8xbf16>, vector<8x8xbf16>, vector<8x8xf32> -> vector<8x8xf32>
    %cst_33 = arith.constant 0.353553385 : f32
    %79 = vector.broadcast %cst_33 : f32 to vector<8x8xf32>
    %80 = arith.mulf %78, %79 : vector<8x8xf32>
    %cst_34 = arith.constant -1.000000e+30 : f32
    %81 = vector.broadcast %cst_34 : f32 to vector<8x8xf32>
    %82 = arith.select %25, %80, %81 : vector<8x8xi1>, vector<8x8xf32>
    %cst_35 = arith.constant dense<0xFF800000> : vector<8xf32>
    %83 = vector.multi_reduction <maximumf>, %82, %cst_35 [1] : vector<8x8xf32> to vector<8xf32>
    %84 = vector.shape_cast %83 : vector<8xf32> to vector<8x1xf32>
    %85 = vector.broadcast %84 : vector<8x1xf32> to vector<8x8xf32>
    %86 = arith.subf %82, %85 : vector<8x8xf32>
    %87 = math.exp %86 : vector<8x8xf32>
    %cst_36 = arith.constant dense<0.000000e+00> : vector<8xf32>
    %88 = vector.multi_reduction <add>, %87, %cst_36 [1] : vector<8x8xf32> to vector<8xf32>
    %89 = vector.shape_cast %88 : vector<8xf32> to vector<8x1xf32>
    %90 = tpu.reciprocal %89 {approx = true} : vector<8x1xf32> -> vector<8x1xf32>
    %91 = vector.broadcast %90 : vector<8x1xf32> to vector<8x8xf32>
    %92 = arith.mulf %87, %91 : vector<8x8xf32>
    %93 = arith.truncf %92 : vector<8x8xf32> to vector<8x8xbf16>
    %cst_37 = arith.constant dense<0.000000e+00> : vector<8x8xf32>
    %94 = tpu.matmul %93, %77, %cst_37 {dimension_numbers = #tpu.dot_dimension_numbers<[1], [0], [0], [1], [0, 0, 1, 1], [], []>} : vector<8x8xbf16>, vector<8x8xbf16>, vector<8x8xf32> -> vector<8x8xf32>
    %95 = vector.extract_strided_slice %8 {offsets = [0, 24], sizes = [8, 8], strides = [1, 1]} : vector<8x32xf32> to vector<8x8xf32>
    %96 = arith.truncf %95 : vector<8x8xf32> to vector<8x8xbf16>
    %97 = vector.extract_strided_slice %15 {offsets = [0, 24], sizes = [8, 8], strides = [1, 1]} : vector<8x32xf32> to vector<8x8xf32>
    %98 = arith.truncf %97 : vector<8x8xf32> to vector<8x8xbf16>
    %99 = vector.extract_strided_slice %22 {offsets = [0, 24], sizes = [8, 8], strides = [1, 1]} : vector<8x32xf32> to vector<8x8xf32>
    %100 = arith.truncf %99 : vector<8x8xf32> to vector<8x8xbf16>
    %cst_38 = arith.constant dense<0.000000e+00> : vector<8x8xf32>
    %101 = tpu.matmul %96, %98, %cst_38 {dimension_numbers = #tpu.dot_dimension_numbers<[1], [1], [0], [0], [0, 0, 1, 0], [], []>} : vector<8x8xbf16>, vector<8x8xbf16>, vector<8x8xf32> -> vector<8x8xf32>
    %cst_39 = arith.constant 0.353553385 : f32
    %102 = vector.broadcast %cst_39 : f32 to vector<8x8xf32>
    %103 = arith.mulf %101, %102 : vector<8x8xf32>
    %cst_40 = arith.constant -1.000000e+30 : f32
    %104 = vector.broadcast %cst_40 : f32 to vector<8x8xf32>
    %105 = arith.select %25, %103, %104 : vector<8x8xi1>, vector<8x8xf32>
    %cst_41 = arith.constant dense<0xFF800000> : vector<8xf32>
    %106 = vector.multi_reduction <maximumf>, %105, %cst_41 [1] : vector<8x8xf32> to vector<8xf32>
    %107 = vector.shape_cast %106 : vector<8xf32> to vector<8x1xf32>
    %108 = vector.broadcast %107 : vector<8x1xf32> to vector<8x8xf32>
    %109 = arith.subf %105, %108 : vector<8x8xf32>
    %110 = math.exp %109 : vector<8x8xf32>
    %cst_42 = arith.constant dense<0.000000e+00> : vector<8xf32>
    %111 = vector.multi_reduction <add>, %110, %cst_42 [1] : vector<8x8xf32> to vector<8xf32>
    %112 = vector.shape_cast %111 : vector<8xf32> to vector<8x1xf32>
    %113 = tpu.reciprocal %112 {approx = true} : vector<8x1xf32> -> vector<8x1xf32>
    %114 = vector.broadcast %113 : vector<8x1xf32> to vector<8x8xf32>
    %115 = arith.mulf %110, %114 : vector<8x8xf32>
    %116 = arith.truncf %115 : vector<8x8xf32> to vector<8x8xbf16>
    %cst_43 = arith.constant dense<0.000000e+00> : vector<8x8xf32>
    %117 = tpu.matmul %116, %100, %cst_43 {dimension_numbers = #tpu.dot_dimension_numbers<[1], [0], [0], [1], [0, 0, 1, 1], [], []>} : vector<8x8xbf16>, vector<8x8xbf16>, vector<8x8xf32> -> vector<8x8xf32>
    %118 = tpu.concatenate %48, %71, %94, %117 in 1 : vector<8x8xf32>, vector<8x8xf32>, vector<8x8xf32>, vector<8x8xf32> -> vector<8x32xf32>
    %119 = arith.truncf %118 : vector<8x32xf32> to vector<8x32xbf16>
    %c0_44 = arith.constant 0 : index
    %c0_45 = arith.constant 0 : index
    %120 = vector.load %arg4[%c0_44, %c0_45] : memref<32x32xbf16, #tpu.memory_space<vmem>>, vector<32x32xbf16>
    %cst_46 = arith.constant dense<0.000000e+00> : vector<8x32xf32>
    %121 = tpu.matmul %119, %120, %cst_46 {dimension_numbers = #tpu.dot_dimension_numbers<[1], [0], [0], [1], [0, 0, 1, 1], [], []>} : vector<8x32xbf16>, vector<32x32xbf16>, vector<8x32xf32> -> vector<8x32xf32>
    %c0_47 = arith.constant 0 : index
    %c0_48 = arith.constant 0 : index
    %122 = vector.load %arg5[%c0_47, %c0_48] : memref<1x32xf32, #tpu.memory_space<vmem>>, vector<1x32xf32>
    %123 = vector.broadcast %122 : vector<1x32xf32> to vector<8x32xf32>
    %124 = arith.addf %121, %123 : vector<8x32xf32>
    %125 = arith.extf %1 : vector<8x32xbf16> to vector<8x32xf32>
    %126 = arith.addf %124, %125 : vector<8x32xf32>
    %cst_49 = arith.constant dense<0.000000e+00> : vector<8xf32>
    %127 = vector.multi_reduction <add>, %126, %cst_49 [1] : vector<8x32xf32> to vector<8xf32>
    %128 = vector.shape_cast %127 : vector<8xf32> to vector<8x1xf32>
    %cst_50 = arith.constant 3.200000e+01 : f32
    %129 = vector.broadcast %cst_50 : f32 to vector<8x1xf32>
    %130 = arith.divf %128, %129 : vector<8x1xf32>
    %131 = vector.broadcast %130 : vector<8x1xf32> to vector<8x32xf32>
    %132 = arith.subf %126, %131 : vector<8x32xf32>
    %133 = arith.mulf %132, %132 : vector<8x32xf32>
    %cst_51 = arith.constant dense<0.000000e+00> : vector<8xf32>
    %134 = vector.multi_reduction <add>, %133, %cst_51 [1] : vector<8x32xf32> to vector<8xf32>
    %135 = vector.shape_cast %134 : vector<8xf32> to vector<8x1xf32>
    %cst_52 = arith.constant 3.200000e+01 : f32
    %136 = vector.broadcast %cst_52 : f32 to vector<8x1xf32>
    %137 = arith.divf %135, %136 : vector<8x1xf32>
    %cst_53 = arith.constant 9.99999974E-6 : f32
    %138 = vector.broadcast %cst_53 : f32 to vector<8x1xf32>
    %139 = arith.addf %137, %138 : vector<8x1xf32>
    %140 = math.rsqrt %139 : vector<8x1xf32>
    %141 = vector.broadcast %140 : vector<8x1xf32> to vector<8x32xf32>
    %142 = arith.mulf %132, %141 : vector<8x32xf32>
    %c0_54 = arith.constant 0 : index
    %c0_55 = arith.constant 0 : index
    %143 = vector.load %arg6[%c0_54, %c0_55] : memref<1x32xf32, #tpu.memory_space<vmem>>, vector<1x32xf32>
    %144 = vector.broadcast %143 : vector<1x32xf32> to vector<8x32xf32>
    %145 = arith.mulf %142, %144 : vector<8x32xf32>
    %c0_56 = arith.constant 0 : index
    %c0_57 = arith.constant 0 : index
    %146 = vector.load %arg7[%c0_56, %c0_57] : memref<1x32xf32, #tpu.memory_space<vmem>>, vector<1x32xf32>
    %147 = vector.broadcast %146 : vector<1x32xf32> to vector<8x32xf32>
    %148 = arith.addf %145, %147 : vector<8x32xf32>
    %149 = arith.truncf %148 : vector<8x32xf32> to vector<8x32xbf16>
    %c0_58 = arith.constant 0 : index
    %c0_59 = arith.constant 0 : index
    %c0_60 = arith.constant 0 : index
    %150 = vector.load %arg8[%c0_58, %c0_59, %c0_60] : memref<1x8x32xbf16, #tpu.memory_space<vmem>>, vector<1x8x32xbf16>
    %151 = vector.shape_cast %150 : vector<1x8x32xbf16> to vector<8x32xbf16>
    %152 = vector.shape_cast %149 : vector<8x32xbf16> to vector<1x8x32xbf16>
    tpu.vector_store %arg8[%c0_58, %c0_59, %c0_60], %152 {strides = array<i32>} : memref<1x8x32xbf16, #tpu.memory_space<vmem>>, vector<1x8x32xbf16>,
    return
  }
  func.func @transform_0(%arg0: i32) -> (i32, i32, i32) {
    %c0_i32 = arith.constant 0 : i32
    %c0_i32_0 = arith.constant 0 : i32
    %c0_i32_1 = arith.constant 0 : i32
    return %arg0, %c0_i32, %c0_i32_0 : i32, i32, i32
  }
  func.func @transform_1(%arg0: i32) -> (i32, i32, i32) {
    %c0_i32 = arith.constant 0 : i32
    %c0_i32_0 = arith.constant 0 : i32
    %c0_i32_1 = arith.constant 0 : i32
    %c0_i32_2 = arith.constant 0 : i32
    return %c0_i32, %c0_i32_0, %c0_i32_1 : i32, i32, i32
  }
  func.func @transform_2(%arg0: i32) -> (i32, i32, i32) {
    %c0_i32 = arith.constant 0 : i32
    %c0_i32_0 = arith.constant 0 : i32
    %c0_i32_1 = arith.constant 0 : i32
    %c0_i32_2 = arith.constant 0 : i32
    return %c0_i32, %c0_i32_0, %c0_i32_1 : i32, i32, i32
  }
  func.func @transform_3(%arg0: i32) -> (i32, i32) {
    %c0_i32 = arith.constant 0 : i32
    %c0_i32_0 = arith.constant 0 : i32
    %c0_i32_1 = arith.constant 0 : i32
    return %c0_i32, %c0_i32_0 : i32, i32
  }
  func.func @transform_4(%arg0: i32) -> (i32, i32) {
    %c0_i32 = arith.constant 0 : i32
    %c0_i32_0 = arith.constant 0 : i32
    %c0_i32_1 = arith.constant 0 : i32
    return %c0_i32, %c0_i32_0 : i32, i32
  }
  func.func @transform_5(%arg0: i32) -> (i32, i32) {
    %c0_i32 = arith.constant 0 : i32
    %c0_i32_0 = arith.constant 0 : i32
    %c0_i32_1 = arith.constant 0 : i32
    return %c0_i32, %c0_i32_0 : i32, i32
  }
  func.func @transform_6(%arg0: i32) -> (i32, i32) {
    %c0_i32 = arith.constant 0 : i32
    %c0_i32_0 = arith.constant 0 : i32
    %c0_i32_1 = arith.constant 0 : i32
    return %c0_i32, %c0_i32_0 : i32, i32
  }
  func.func @transform_7(%arg0: i32) -> (i32, i32, i32) {
    %c0_i32 = arith.constant 0 : i32
    %c0_i32_0 = arith.constant 0 : i32
    %c0_i32_1 = arith.constant 0 : i32
    return %arg0, %c0_i32, %c0_i32_0 : i32, i32, i32
  }
}

module attributes {stable_mosaic.version = 11 : i64} {
  func.func @_embed_ln_kernel(%arg0: i32, %arg1: memref<1x8x24xbf16, #tpu.memory_space<vmem>>, %arg2: memref<24x32xbf16, #tpu.memory_space<vmem>>, %arg3: memref<1x32xf32, #tpu.memory_space<vmem>>, %arg4: memref<1x1x32xf32, #tpu.memory_space<vmem>>, %arg5: memref<1x32xf32, #tpu.memory_space<vmem>>, %arg6: memref<1x32xf32, #tpu.memory_space<vmem>>, %arg7: memref<1x8x32xbf16, #tpu.memory_space<vmem>>) attributes {dimension_semantics = [#tpu.dimension_semantics<parallel>], iteration_bounds = array<i64: 2>, scalar_prefetch = 0 : i64, scratch_operands = 0 : i64, tpu.core_type = #tpu.core_type<tc>, window_params = [{transform_indices = @transform_0, window_bounds = array<i64: 1, 8, 24>}, {pipeline_mode = #tpu.pipeline_mode<synchronous>, transform_indices = @transform_1, window_bounds = array<i64: 24, 32>}, {pipeline_mode = #tpu.pipeline_mode<synchronous>, transform_indices = @transform_2, window_bounds = array<i64: 1, 32>}, {transform_indices = @transform_3, window_bounds = array<i64: 1, 1, 32>}, {pipeline_mode = #tpu.pipeline_mode<synchronous>, transform_indices = @transform_4, window_bounds = array<i64: 1, 32>}, {pipeline_mode = #tpu.pipeline_mode<synchronous>, transform_indices = @transform_5, window_bounds = array<i64: 1, 32>}, {transform_indices = @transform_6, window_bounds = array<i64: 1, 8, 32>}]} {
    %c0 = arith.constant 0 : index
    %c0_0 = arith.constant 0 : index
    %c0_1 = arith.constant 0 : index
    %0 = vector.load %arg1[%c0, %c0_0, %c0_1] : memref<1x8x24xbf16, #tpu.memory_space<vmem>>, vector<1x8x24xbf16>
    %1 = vector.shape_cast %0 : vector<1x8x24xbf16> to vector<8x24xbf16>
    %c0_2 = arith.constant 0 : index
    %c0_3 = arith.constant 0 : index
    %2 = vector.load %arg2[%c0_2, %c0_3] : memref<24x32xbf16, #tpu.memory_space<vmem>>, vector<24x32xbf16>
    %cst = arith.constant dense<0.000000e+00> : vector<8x32xf32>
    %3 = tpu.matmul %1, %2, %cst {dimension_numbers = #tpu.dot_dimension_numbers<[1], [0], [0], [1], [0, 0, 1, 1], [], []>} : vector<8x24xbf16>, vector<24x32xbf16>, vector<8x32xf32> -> vector<8x32xf32>
    %c0_4 = arith.constant 0 : index
    %c0_5 = arith.constant 0 : index
    %4 = vector.load %arg3[%c0_4, %c0_5] : memref<1x32xf32, #tpu.memory_space<vmem>>, vector<1x32xf32>
    %5 = vector.broadcast %4 : vector<1x32xf32> to vector<8x32xf32>
    %6 = arith.addf %3, %5 : vector<8x32xf32>
    %c0_6 = arith.constant 0 : index
    %c0_7 = arith.constant 0 : index
    %c0_8 = arith.constant 0 : index
    %7 = vector.load %arg4[%c0_6, %c0_7, %c0_8] : memref<1x1x32xf32, #tpu.memory_space<vmem>>, vector<1x1x32xf32>
    %8 = vector.shape_cast %7 : vector<1x1x32xf32> to vector<1x32xf32>
    %9 = vector.broadcast %8 : vector<1x32xf32> to vector<8x32xf32>
    %10 = arith.addf %6, %9 : vector<8x32xf32>
    %cst_9 = arith.constant dense<0.000000e+00> : vector<8xf32>
    %11 = vector.multi_reduction <add>, %10, %cst_9 [1] : vector<8x32xf32> to vector<8xf32>
    %12 = vector.shape_cast %11 : vector<8xf32> to vector<8x1xf32>
    %cst_10 = arith.constant 3.200000e+01 : f32
    %13 = vector.broadcast %cst_10 : f32 to vector<8x1xf32>
    %14 = arith.divf %12, %13 : vector<8x1xf32>
    %15 = vector.broadcast %14 : vector<8x1xf32> to vector<8x32xf32>
    %16 = arith.subf %10, %15 : vector<8x32xf32>
    %17 = arith.mulf %16, %16 : vector<8x32xf32>
    %cst_11 = arith.constant dense<0.000000e+00> : vector<8xf32>
    %18 = vector.multi_reduction <add>, %17, %cst_11 [1] : vector<8x32xf32> to vector<8xf32>
    %19 = vector.shape_cast %18 : vector<8xf32> to vector<8x1xf32>
    %cst_12 = arith.constant 3.200000e+01 : f32
    %20 = vector.broadcast %cst_12 : f32 to vector<8x1xf32>
    %21 = arith.divf %19, %20 : vector<8x1xf32>
    %cst_13 = arith.constant 9.99999974E-6 : f32
    %22 = vector.broadcast %cst_13 : f32 to vector<8x1xf32>
    %23 = arith.addf %21, %22 : vector<8x1xf32>
    %24 = math.rsqrt %23 : vector<8x1xf32>
    %25 = vector.broadcast %24 : vector<8x1xf32> to vector<8x32xf32>
    %26 = arith.mulf %16, %25 : vector<8x32xf32>
    %c0_14 = arith.constant 0 : index
    %c0_15 = arith.constant 0 : index
    %27 = vector.load %arg5[%c0_14, %c0_15] : memref<1x32xf32, #tpu.memory_space<vmem>>, vector<1x32xf32>
    %28 = vector.broadcast %27 : vector<1x32xf32> to vector<8x32xf32>
    %29 = arith.mulf %26, %28 : vector<8x32xf32>
    %c0_16 = arith.constant 0 : index
    %c0_17 = arith.constant 0 : index
    %30 = vector.load %arg6[%c0_16, %c0_17] : memref<1x32xf32, #tpu.memory_space<vmem>>, vector<1x32xf32>
    %31 = vector.broadcast %30 : vector<1x32xf32> to vector<8x32xf32>
    %32 = arith.addf %29, %31 : vector<8x32xf32>
    %33 = arith.truncf %32 : vector<8x32xf32> to vector<8x32xbf16>
    %c0_18 = arith.constant 0 : index
    %c0_19 = arith.constant 0 : index
    %c0_20 = arith.constant 0 : index
    %34 = vector.load %arg7[%c0_18, %c0_19, %c0_20] : memref<1x8x32xbf16, #tpu.memory_space<vmem>>, vector<1x8x32xbf16>
    %35 = vector.shape_cast %34 : vector<1x8x32xbf16> to vector<8x32xbf16>
    %36 = vector.shape_cast %33 : vector<8x32xbf16> to vector<1x8x32xbf16>
    tpu.vector_store %arg7[%c0_18, %c0_19, %c0_20], %36 {strides = array<i32>} : memref<1x8x32xbf16, #tpu.memory_space<vmem>>, vector<1x8x32xbf16>,
    return
  }
  func.func @transform_0(%arg0: i32) -> (i32, i32, i32) {
    %c0_i32 = arith.constant 0 : i32
    %c0_i32_0 = arith.constant 0 : i32
    %c0_i32_1 = arith.constant 0 : i32
    return %arg0, %c0_i32, %c0_i32_0 : i32, i32, i32
  }
  func.func @transform_1(%arg0: i32) -> (i32, i32) {
    %c0_i32 = arith.constant 0 : i32
    %c0_i32_0 = arith.constant 0 : i32
    %c0_i32_1 = arith.constant 0 : i32
    return %c0_i32, %c0_i32_0 : i32, i32
  }
  func.func @transform_2(%arg0: i32) -> (i32, i32) {
    %c0_i32 = arith.constant 0 : i32
    %c0_i32_0 = arith.constant 0 : i32
    %c0_i32_1 = arith.constant 0 : i32
    return %c0_i32, %c0_i32_0 : i32, i32
  }
  func.func @transform_3(%arg0: i32) -> (i32, i32, i32) {
    %c0_i32 = arith.constant 0 : i32
    %c0_i32_0 = arith.constant 0 : i32
    %c0_i32_1 = arith.constant 0 : i32
    return %arg0, %c0_i32, %c0_i32_0 : i32, i32, i32
  }
  func.func @transform_4(%arg0: i32) -> (i32, i32) {
    %c0_i32 = arith.constant 0 : i32
    %c0_i32_0 = arith.constant 0 : i32
    %c0_i32_1 = arith.constant 0 : i32
    return %c0_i32, %c0_i32_0 : i32, i32
  }
  func.func @transform_5(%arg0: i32) -> (i32, i32) {
    %c0_i32 = arith.constant 0 : i32
    %c0_i32_0 = arith.constant 0 : i32
    %c0_i32_1 = arith.constant 0 : i32
    return %c0_i32, %c0_i32_0 : i32, i32
  }
  func.func @transform_6(%arg0: i32) -> (i32, i32, i32) {
    %c0_i32 = arith.constant 0 : i32
    %c0_i32_0 = arith.constant 0 : i32
    %c0_i32_1 = arith.constant 0 : i32
    return %arg0, %c0_i32, %c0_i32_0 : i32, i32, i32
  }
}

module attributes {stable_mosaic.version = 11 : i64} {
  func.func @_ffn_ln_kernel(%arg0: i32, %arg1: i32, %arg2: memref<16x32xbf16, #tpu.memory_space<vmem>>, %arg3: memref<32x256xbf16, #tpu.memory_space<vmem>>, %arg4: memref<1x256xf32, #tpu.memory_space<vmem>>, %arg5: memref<256x32xbf16, #tpu.memory_space<vmem>>, %arg6: memref<1x32xf32, #tpu.memory_space<vmem>>, %arg7: memref<1x32xf32, #tpu.memory_space<vmem>>, %arg8: memref<1x32xf32, #tpu.memory_space<vmem>>, %arg9: memref<16x32xbf16, #tpu.memory_space<vmem>>, %arg10: memref<16x32xf32, #tpu.memory_space<vmem>>) attributes {dimension_semantics = [#tpu.dimension_semantics<parallel>, #tpu.dimension_semantics<arbitrary>], iteration_bounds = array<i64: 1, 8>, scalar_prefetch = 0 : i64, scratch_operands = 1 : i64, tpu.core_type = #tpu.core_type<tc>, window_params = [{transform_indices = @transform_0, window_bounds = array<i64: 16, 32>}, {transform_indices = @transform_1, window_bounds = array<i64: 32, 256>}, {transform_indices = @transform_2, window_bounds = array<i64: 1, 256>}, {transform_indices = @transform_3, window_bounds = array<i64: 256, 32>}, {pipeline_mode = #tpu.pipeline_mode<synchronous>, transform_indices = @transform_4, window_bounds = array<i64: 1, 32>}, {pipeline_mode = #tpu.pipeline_mode<synchronous>, transform_indices = @transform_5, window_bounds = array<i64: 1, 32>}, {pipeline_mode = #tpu.pipeline_mode<synchronous>, transform_indices = @transform_6, window_bounds = array<i64: 1, 32>}, {transform_indices = @transform_7, window_bounds = array<i64: 16, 32>}]} {
    %c0_i32 = arith.constant 0 : i32
    %0 = arith.cmpi eq, %arg1, %c0_i32 : i32
    %1 = arith.extui %0 : i1 to i32
    %c0_i32_0 = arith.constant 0 : i32
    %2 = arith.cmpi ne, %1, %c0_i32_0 : i32
    scf.if %2 {
      %cst_15 = arith.constant 0.000000e+00 : f32
      %20 = vector.broadcast %cst_15 : f32 to vector<16x32xf32>
      %c0_16 = arith.constant 0 : index
      %c0_17 = arith.constant 0 : index
      %21 = vector.load %arg10[%c0_16, %c0_17] : memref<16x32xf32, #tpu.memory_space<vmem>>, vector<16x32xf32>
      tpu.vector_store %arg10[%c0_16, %c0_17], %20 {strides = array<i32>} : memref<16x32xf32, #tpu.memory_space<vmem>>, vector<16x32xf32>,
    } else {
    }
    %c0 = arith.constant 0 : index
    %c0_1 = arith.constant 0 : index
    %3 = vector.load %arg2[%c0, %c0_1] : memref<16x32xbf16, #tpu.memory_space<vmem>>, vector<16x32xbf16>
    %c0_2 = arith.constant 0 : index
    %c0_3 = arith.constant 0 : index
    %4 = vector.load %arg3[%c0_2, %c0_3] : memref<32x256xbf16, #tpu.memory_space<vmem>>, vector<32x256xbf16>
    %cst = arith.constant dense<0.000000e+00> : vector<16x256xf32>
    %5 = tpu.matmul %3, %4, %cst {dimension_numbers = #tpu.dot_dimension_numbers<[1], [0], [0], [1], [0, 0, 1, 1], [], []>} : vector<16x32xbf16>, vector<32x256xbf16>, vector<16x256xf32> -> vector<16x256xf32>
    %c0_4 = arith.constant 0 : index
    %c0_5 = arith.constant 0 : index
    %6 = vector.load %arg4[%c0_4, %c0_5] : memref<1x256xf32, #tpu.memory_space<vmem>>, vector<1x256xf32>
    %7 = vector.broadcast %6 : vector<1x256xf32> to vector<16x256xf32>
    %8 = arith.addf %5, %7 : vector<16x256xf32>
    %cst_6 = arith.constant 0.000000e+00 : f32
    %9 = vector.broadcast %cst_6 : f32 to vector<16x256xf32>
    %10 = arith.maximumf %8, %9 : vector<16x256xf32>
    %11 = arith.truncf %10 : vector<16x256xf32> to vector<16x256xbf16>
    %c0_7 = arith.constant 0 : index
    %c0_8 = arith.constant 0 : index
    %12 = vector.load %arg10[%c0_7, %c0_8] : memref<16x32xf32, #tpu.memory_space<vmem>>, vector<16x32xf32>
    %c0_9 = arith.constant 0 : index
    %c0_10 = arith.constant 0 : index
    %13 = vector.load %arg5[%c0_9, %c0_10] : memref<256x32xbf16, #tpu.memory_space<vmem>>, vector<256x32xbf16>
    %cst_11 = arith.constant dense<0.000000e+00> : vector<16x32xf32>
    %14 = tpu.matmul %11, %13, %cst_11 {dimension_numbers = #tpu.dot_dimension_numbers<[1], [0], [0], [1], [0, 0, 1, 1], [], []>} : vector<16x256xbf16>, vector<256x32xbf16>, vector<16x32xf32> -> vector<16x32xf32>
    %15 = arith.addf %12, %14 : vector<16x32xf32>
    %c0_12 = arith.constant 0 : index
    %c0_13 = arith.constant 0 : index
    %16 = vector.load %arg10[%c0_12, %c0_13] : memref<16x32xf32, #tpu.memory_space<vmem>>, vector<16x32xf32>
    tpu.vector_store %arg10[%c0_12, %c0_13], %15 {strides = array<i32>} : memref<16x32xf32, #tpu.memory_space<vmem>>, vector<16x32xf32>,
    %c7_i32 = arith.constant 7 : i32
    %17 = arith.cmpi eq, %arg1, %c7_i32 : i32
    %18 = arith.extui %17 : i1 to i32
    %c0_i32_14 = arith.constant 0 : i32
    %19 = arith.cmpi ne, %18, %c0_i32_14 : i32
    scf.if %19 {
      %c0_15 = arith.constant 0 : index
      %c0_16 = arith.constant 0 : index
      %20 = vector.load %arg10[%c0_15, %c0_16] : memref<16x32xf32, #tpu.memory_space<vmem>>, vector<16x32xf32>
      %c0_17 = arith.constant 0 : index
      %c0_18 = arith.constant 0 : index
      %21 = vector.load %arg6[%c0_17, %c0_18] : memref<1x32xf32, #tpu.memory_space<vmem>>, vector<1x32xf32>
      %22 = vector.broadcast %21 : vector<1x32xf32> to vector<16x32xf32>
      %23 = arith.addf %20, %22 : vector<16x32xf32>
      %c0_19 = arith.constant 0 : index
      %c0_20 = arith.constant 0 : index
      %24 = vector.load %arg2[%c0_19, %c0_20] : memref<16x32xbf16, #tpu.memory_space<vmem>>, vector<16x32xbf16>
      %25 = arith.extf %24 : vector<16x32xbf16> to vector<16x32xf32>
      %26 = arith.addf %23, %25 : vector<16x32xf32>
      %cst_21 = arith.constant dense<0.000000e+00> : vector<16xf32>
      %27 = vector.multi_reduction <add>, %26, %cst_21 [1] : vector<16x32xf32> to vector<16xf32>
      %28 = vector.shape_cast %27 : vector<16xf32> to vector<16x1xf32>
      %cst_22 = arith.constant 3.200000e+01 : f32
      %29 = vector.broadcast %cst_22 : f32 to vector<16x1xf32>
      %30 = arith.divf %28, %29 : vector<16x1xf32>
      %31 = vector.broadcast %30 : vector<16x1xf32> to vector<16x32xf32>
      %32 = arith.subf %26, %31 : vector<16x32xf32>
      %33 = arith.mulf %32, %32 : vector<16x32xf32>
      %cst_23 = arith.constant dense<0.000000e+00> : vector<16xf32>
      %34 = vector.multi_reduction <add>, %33, %cst_23 [1] : vector<16x32xf32> to vector<16xf32>
      %35 = vector.shape_cast %34 : vector<16xf32> to vector<16x1xf32>
      %cst_24 = arith.constant 3.200000e+01 : f32
      %36 = vector.broadcast %cst_24 : f32 to vector<16x1xf32>
      %37 = arith.divf %35, %36 : vector<16x1xf32>
      %cst_25 = arith.constant 9.99999974E-6 : f32
      %38 = vector.broadcast %cst_25 : f32 to vector<16x1xf32>
      %39 = arith.addf %37, %38 : vector<16x1xf32>
      %40 = math.rsqrt %39 : vector<16x1xf32>
      %41 = vector.broadcast %40 : vector<16x1xf32> to vector<16x32xf32>
      %42 = arith.mulf %32, %41 : vector<16x32xf32>
      %c0_26 = arith.constant 0 : index
      %c0_27 = arith.constant 0 : index
      %43 = vector.load %arg7[%c0_26, %c0_27] : memref<1x32xf32, #tpu.memory_space<vmem>>, vector<1x32xf32>
      %44 = vector.broadcast %43 : vector<1x32xf32> to vector<16x32xf32>
      %45 = arith.mulf %42, %44 : vector<16x32xf32>
      %c0_28 = arith.constant 0 : index
      %c0_29 = arith.constant 0 : index
      %46 = vector.load %arg8[%c0_28, %c0_29] : memref<1x32xf32, #tpu.memory_space<vmem>>, vector<1x32xf32>
      %47 = vector.broadcast %46 : vector<1x32xf32> to vector<16x32xf32>
      %48 = arith.addf %45, %47 : vector<16x32xf32>
      %49 = arith.truncf %48 : vector<16x32xf32> to vector<16x32xbf16>
      %c0_30 = arith.constant 0 : index
      %c0_31 = arith.constant 0 : index
      %50 = vector.load %arg9[%c0_30, %c0_31] : memref<16x32xbf16, #tpu.memory_space<vmem>>, vector<16x32xbf16>
      tpu.vector_store %arg9[%c0_30, %c0_31], %49 {strides = array<i32>} : memref<16x32xbf16, #tpu.memory_space<vmem>>, vector<16x32xbf16>,
    } else {
    }
    return
  }
  func.func @transform_0(%arg0: i32, %arg1: i32) -> (i32, i32) {
    %c0_i32 = arith.constant 0 : i32
    %c0_i32_0 = arith.constant 0 : i32
    return %arg0, %c0_i32 : i32, i32
  }
  func.func @transform_1(%arg0: i32, %arg1: i32) -> (i32, i32) {
    %c0_i32 = arith.constant 0 : i32
    %c0_i32_0 = arith.constant 0 : i32
    return %c0_i32, %arg1 : i32, i32
  }
  func.func @transform_2(%arg0: i32, %arg1: i32) -> (i32, i32) {
    %c0_i32 = arith.constant 0 : i32
    %c0_i32_0 = arith.constant 0 : i32
    return %c0_i32, %arg1 : i32, i32
  }
  func.func @transform_3(%arg0: i32, %arg1: i32) -> (i32, i32) {
    %c0_i32 = arith.constant 0 : i32
    %c0_i32_0 = arith.constant 0 : i32
    return %arg1, %c0_i32 : i32, i32
  }
  func.func @transform_4(%arg0: i32, %arg1: i32) -> (i32, i32) {
    %c0_i32 = arith.constant 0 : i32
    %c0_i32_0 = arith.constant 0 : i32
    %c0_i32_1 = arith.constant 0 : i32
    return %c0_i32, %c0_i32_0 : i32, i32
  }
  func.func @transform_5(%arg0: i32, %arg1: i32) -> (i32, i32) {
    %c0_i32 = arith.constant 0 : i32
    %c0_i32_0 = arith.constant 0 : i32
    %c0_i32_1 = arith.constant 0 : i32
    return %c0_i32, %c0_i32_0 : i32, i32
  }
  func.func @transform_6(%arg0: i32, %arg1: i32) -> (i32, i32) {
    %c0_i32 = arith.constant 0 : i32
    %c0_i32_0 = arith.constant 0 : i32
    %c0_i32_1 = arith.constant 0 : i32
    return %c0_i32, %c0_i32_0 : i32, i32
  }
  func.func @transform_7(%arg0: i32, %arg1: i32) -> (i32, i32) {
    %c0_i32 = arith.constant 0 : i32
    %c0_i32_0 = arith.constant 0 : i32
    return %arg0, %c0_i32 : i32, i32
  }
}

module attributes {stable_mosaic.version = 11 : i64} {
  func.func @_attn_block_kernel(%arg0: i32, %arg1: memref<1x8x32xbf16, #tpu.memory_space<vmem>>, %arg2: memref<3x32x32xbf16, #tpu.memory_space<vmem>>, %arg3: memref<3x1x32xf32, #tpu.memory_space<vmem>>, %arg4: memref<32x32xbf16, #tpu.memory_space<vmem>>, %arg5: memref<1x32xf32, #tpu.memory_space<vmem>>, %arg6: memref<1x32xf32, #tpu.memory_space<vmem>>, %arg7: memref<1x32xf32, #tpu.memory_space<vmem>>, %arg8: memref<1x8x32xbf16, #tpu.memory_space<vmem>>) attributes {dimension_semantics = [#tpu.dimension_semantics<parallel>], iteration_bounds = array<i64: 2>, scalar_prefetch = 0 : i64, scratch_operands = 0 : i64, tpu.core_type = #tpu.core_type<tc>, window_params = [{transform_indices = @transform_0, window_bounds = array<i64: 1, 8, 32>}, {pipeline_mode = #tpu.pipeline_mode<synchronous>, transform_indices = @transform_1, window_bounds = array<i64: 3, 32, 32>}, {pipeline_mode = #tpu.pipeline_mode<synchronous>, transform_indices = @transform_2, window_bounds = array<i64: 3, 1, 32>}, {pipeline_mode = #tpu.pipeline_mode<synchronous>, transform_indices = @transform_3, window_bounds = array<i64: 32, 32>}, {pipeline_mode = #tpu.pipeline_mode<synchronous>, transform_indices = @transform_4, window_bounds = array<i64: 1, 32>}, {pipeline_mode = #tpu.pipeline_mode<synchronous>, transform_indices = @transform_5, window_bounds = array<i64: 1, 32>}, {pipeline_mode = #tpu.pipeline_mode<synchronous>, transform_indices = @transform_6, window_bounds = array<i64: 1, 32>}, {transform_indices = @transform_7, window_bounds = array<i64: 1, 8, 32>}]} {
    %c0 = arith.constant 0 : index
    %c0_0 = arith.constant 0 : index
    %c0_1 = arith.constant 0 : index
    %0 = vector.load %arg1[%c0, %c0_0, %c0_1] : memref<1x8x32xbf16, #tpu.memory_space<vmem>>, vector<1x8x32xbf16>
    %1 = vector.shape_cast %0 : vector<1x8x32xbf16> to vector<8x32xbf16>
    %c0_2 = arith.constant 0 : index
    %c0_3 = arith.constant 0 : index
    %c0_4 = arith.constant 0 : index
    %2 = vector.load %arg2[%c0_2, %c0_3, %c0_4] : memref<3x32x32xbf16, #tpu.memory_space<vmem>>, vector<1x32x32xbf16>
    %3 = vector.shape_cast %2 : vector<1x32x32xbf16> to vector<32x32xbf16>
    %cst = arith.constant dense<0.000000e+00> : vector<8x32xf32>
    %4 = tpu.matmul %1, %3, %cst {dimension_numbers = #tpu.dot_dimension_numbers<[1], [0], [0], [1], [0, 0, 1, 1], [], []>} : vector<8x32xbf16>, vector<32x32xbf16>, vector<8x32xf32> -> vector<8x32xf32>
    %c0_5 = arith.constant 0 : index
    %c0_6 = arith.constant 0 : index
    %c0_7 = arith.constant 0 : index
    %5 = vector.load %arg3[%c0_5, %c0_6, %c0_7] : memref<3x1x32xf32, #tpu.memory_space<vmem>>, vector<1x1x32xf32>
    %6 = vector.shape_cast %5 : vector<1x1x32xf32> to vector<1x32xf32>
    %7 = vector.broadcast %6 : vector<1x32xf32> to vector<8x32xf32>
    %8 = arith.addf %4, %7 : vector<8x32xf32>
    %c1 = arith.constant 1 : index
    %c0_8 = arith.constant 0 : index
    %c0_9 = arith.constant 0 : index
    %9 = vector.load %arg2[%c1, %c0_8, %c0_9] : memref<3x32x32xbf16, #tpu.memory_space<vmem>>, vector<1x32x32xbf16>
    %10 = vector.shape_cast %9 : vector<1x32x32xbf16> to vector<32x32xbf16>
    %cst_10 = arith.constant dense<0.000000e+00> : vector<8x32xf32>
    %11 = tpu.matmul %1, %10, %cst_10 {dimension_numbers = #tpu.dot_dimension_numbers<[1], [0], [0], [1], [0, 0, 1, 1], [], []>} : vector<8x32xbf16>, vector<32x32xbf16>, vector<8x32xf32> -> vector<8x32xf32>
    %c1_11 = arith.constant 1 : index
    %c0_12 = arith.constant 0 : index
    %c0_13 = arith.constant 0 : index
    %12 = vector.load %arg3[%c1_11, %c0_12, %c0_13] : memref<3x1x32xf32, #tpu.memory_space<vmem>>, vector<1x1x32xf32>
    %13 = vector.shape_cast %12 : vector<1x1x32xf32> to vector<1x32xf32>
    %14 = vector.broadcast %13 : vector<1x32xf32> to vector<8x32xf32>
    %15 = arith.addf %11, %14 : vector<8x32xf32>
    %c2 = arith.constant 2 : index
    %c0_14 = arith.constant 0 : index
    %c0_15 = arith.constant 0 : index
    %16 = vector.load %arg2[%c2, %c0_14, %c0_15] : memref<3x32x32xbf16, #tpu.memory_space<vmem>>, vector<1x32x32xbf16>
    %17 = vector.shape_cast %16 : vector<1x32x32xbf16> to vector<32x32xbf16>
    %cst_16 = arith.constant dense<0.000000e+00> : vector<8x32xf32>
    %18 = tpu.matmul %1, %17, %cst_16 {dimension_numbers = #tpu.dot_dimension_numbers<[1], [0], [0], [1], [0, 0, 1, 1], [], []>} : vector<8x32xbf16>, vector<32x32xbf16>, vector<8x32xf32> -> vector<8x32xf32>
    %c2_17 = arith.constant 2 : index
    %c0_18 = arith.constant 0 : index
    %c0_19 = arith.constant 0 : index
    %19 = vector.load %arg3[%c2_17, %c0_18, %c0_19] : memref<3x1x32xf32, #tpu.memory_space<vmem>>, vector<1x1x32xf32>
    %20 = vector.shape_cast %19 : vector<1x1x32xf32> to vector<1x32xf32>
    %21 = vector.broadcast %20 : vector<1x32xf32> to vector<8x32xf32>
    %22 = arith.addf %18, %21 : vector<8x32xf32>
    %23 = tpu.iota {dimensions = array<i32: 0>} : vector<8x8xi32>
    %24 = tpu.iota {dimensions = array<i32: 1>} : vector<8x8xi32>
    %25 = arith.cmpi sge, %23, %24 : vector<8x8xi32>
    %26 = vector.extract_strided_slice %8 {offsets = [0, 0], sizes = [8, 8], strides = [1, 1]} : vector<8x32xf32> to vector<8x8xf32>
    %27 = arith.truncf %26 : vector<8x8xf32> to vector<8x8xbf16>
    %28 = vector.extract_strided_slice %15 {offsets = [0, 0], sizes = [8, 8], strides = [1, 1]} : vector<8x32xf32> to vector<8x8xf32>
    %29 = arith.truncf %28 : vector<8x8xf32> to vector<8x8xbf16>
    %30 = vector.extract_strided_slice %22 {offsets = [0, 0], sizes = [8, 8], strides = [1, 1]} : vector<8x32xf32> to vector<8x8xf32>
    %31 = arith.truncf %30 : vector<8x8xf32> to vector<8x8xbf16>
    %cst_20 = arith.constant dense<0.000000e+00> : vector<8x8xf32>
    %32 = tpu.matmul %27, %29, %cst_20 {dimension_numbers = #tpu.dot_dimension_numbers<[1], [1], [0], [0], [0, 0, 1, 0], [], []>} : vector<8x8xbf16>, vector<8x8xbf16>, vector<8x8xf32> -> vector<8x8xf32>
    %cst_21 = arith.constant 0.353553385 : f32
    %33 = vector.broadcast %cst_21 : f32 to vector<8x8xf32>
    %34 = arith.mulf %32, %33 : vector<8x8xf32>
    %cst_22 = arith.constant -1.000000e+30 : f32
    %35 = vector.broadcast %cst_22 : f32 to vector<8x8xf32>
    %36 = arith.select %25, %34, %35 : vector<8x8xi1>, vector<8x8xf32>
    %cst_23 = arith.constant dense<0xFF800000> : vector<8xf32>
    %37 = vector.multi_reduction <maximumf>, %36, %cst_23 [1] : vector<8x8xf32> to vector<8xf32>
    %38 = vector.shape_cast %37 : vector<8xf32> to vector<8x1xf32>
    %39 = vector.broadcast %38 : vector<8x1xf32> to vector<8x8xf32>
    %40 = arith.subf %36, %39 : vector<8x8xf32>
    %41 = math.exp %40 : vector<8x8xf32>
    %cst_24 = arith.constant dense<0.000000e+00> : vector<8xf32>
    %42 = vector.multi_reduction <add>, %41, %cst_24 [1] : vector<8x8xf32> to vector<8xf32>
    %43 = vector.shape_cast %42 : vector<8xf32> to vector<8x1xf32>
    %44 = tpu.reciprocal %43 {approx = true} : vector<8x1xf32> -> vector<8x1xf32>
    %45 = vector.broadcast %44 : vector<8x1xf32> to vector<8x8xf32>
    %46 = arith.mulf %41, %45 : vector<8x8xf32>
    %47 = arith.truncf %46 : vector<8x8xf32> to vector<8x8xbf16>
    %cst_25 = arith.constant dense<0.000000e+00> : vector<8x8xf32>
    %48 = tpu.matmul %47, %31, %cst_25 {dimension_numbers = #tpu.dot_dimension_numbers<[1], [0], [0], [1], [0, 0, 1, 1], [], []>} : vector<8x8xbf16>, vector<8x8xbf16>, vector<8x8xf32> -> vector<8x8xf32>
    %49 = vector.extract_strided_slice %8 {offsets = [0, 8], sizes = [8, 8], strides = [1, 1]} : vector<8x32xf32> to vector<8x8xf32>
    %50 = arith.truncf %49 : vector<8x8xf32> to vector<8x8xbf16>
    %51 = vector.extract_strided_slice %15 {offsets = [0, 8], sizes = [8, 8], strides = [1, 1]} : vector<8x32xf32> to vector<8x8xf32>
    %52 = arith.truncf %51 : vector<8x8xf32> to vector<8x8xbf16>
    %53 = vector.extract_strided_slice %22 {offsets = [0, 8], sizes = [8, 8], strides = [1, 1]} : vector<8x32xf32> to vector<8x8xf32>
    %54 = arith.truncf %53 : vector<8x8xf32> to vector<8x8xbf16>
    %cst_26 = arith.constant dense<0.000000e+00> : vector<8x8xf32>
    %55 = tpu.matmul %50, %52, %cst_26 {dimension_numbers = #tpu.dot_dimension_numbers<[1], [1], [0], [0], [0, 0, 1, 0], [], []>} : vector<8x8xbf16>, vector<8x8xbf16>, vector<8x8xf32> -> vector<8x8xf32>
    %cst_27 = arith.constant 0.353553385 : f32
    %56 = vector.broadcast %cst_27 : f32 to vector<8x8xf32>
    %57 = arith.mulf %55, %56 : vector<8x8xf32>
    %cst_28 = arith.constant -1.000000e+30 : f32
    %58 = vector.broadcast %cst_28 : f32 to vector<8x8xf32>
    %59 = arith.select %25, %57, %58 : vector<8x8xi1>, vector<8x8xf32>
    %cst_29 = arith.constant dense<0xFF800000> : vector<8xf32>
    %60 = vector.multi_reduction <maximumf>, %59, %cst_29 [1] : vector<8x8xf32> to vector<8xf32>
    %61 = vector.shape_cast %60 : vector<8xf32> to vector<8x1xf32>
    %62 = vector.broadcast %61 : vector<8x1xf32> to vector<8x8xf32>
    %63 = arith.subf %59, %62 : vector<8x8xf32>
    %64 = math.exp %63 : vector<8x8xf32>
    %cst_30 = arith.constant dense<0.000000e+00> : vector<8xf32>
    %65 = vector.multi_reduction <add>, %64, %cst_30 [1] : vector<8x8xf32> to vector<8xf32>
    %66 = vector.shape_cast %65 : vector<8xf32> to vector<8x1xf32>
    %67 = tpu.reciprocal %66 {approx = true} : vector<8x1xf32> -> vector<8x1xf32>
    %68 = vector.broadcast %67 : vector<8x1xf32> to vector<8x8xf32>
    %69 = arith.mulf %64, %68 : vector<8x8xf32>
    %70 = arith.truncf %69 : vector<8x8xf32> to vector<8x8xbf16>
    %cst_31 = arith.constant dense<0.000000e+00> : vector<8x8xf32>
    %71 = tpu.matmul %70, %54, %cst_31 {dimension_numbers = #tpu.dot_dimension_numbers<[1], [0], [0], [1], [0, 0, 1, 1], [], []>} : vector<8x8xbf16>, vector<8x8xbf16>, vector<8x8xf32> -> vector<8x8xf32>
    %72 = vector.extract_strided_slice %8 {offsets = [0, 16], sizes = [8, 8], strides = [1, 1]} : vector<8x32xf32> to vector<8x8xf32>
    %73 = arith.truncf %72 : vector<8x8xf32> to vector<8x8xbf16>
    %74 = vector.extract_strided_slice %15 {offsets = [0, 16], sizes = [8, 8], strides = [1, 1]} : vector<8x32xf32> to vector<8x8xf32>
    %75 = arith.truncf %74 : vector<8x8xf32> to vector<8x8xbf16>
    %76 = vector.extract_strided_slice %22 {offsets = [0, 16], sizes = [8, 8], strides = [1, 1]} : vector<8x32xf32> to vector<8x8xf32>
    %77 = arith.truncf %76 : vector<8x8xf32> to vector<8x8xbf16>
    %cst_32 = arith.constant dense<0.000000e+00> : vector<8x8xf32>
    %78 = tpu.matmul %73, %75, %cst_32 {dimension_numbers = #tpu.dot_dimension_numbers<[1], [1], [0], [0], [0, 0, 1, 0], [], []>} : vector<8x8xbf16>, vector<8x8xbf16>, vector<8x8xf32> -> vector<8x8xf32>
    %cst_33 = arith.constant 0.353553385 : f32
    %79 = vector.broadcast %cst_33 : f32 to vector<8x8xf32>
    %80 = arith.mulf %78, %79 : vector<8x8xf32>
    %cst_34 = arith.constant -1.000000e+30 : f32
    %81 = vector.broadcast %cst_34 : f32 to vector<8x8xf32>
    %82 = arith.select %25, %80, %81 : vector<8x8xi1>, vector<8x8xf32>
    %cst_35 = arith.constant dense<0xFF800000> : vector<8xf32>
    %83 = vector.multi_reduction <maximumf>, %82, %cst_35 [1] : vector<8x8xf32> to vector<8xf32>
    %84 = vector.shape_cast %83 : vector<8xf32> to vector<8x1xf32>
    %85 = vector.broadcast %84 : vector<8x1xf32> to vector<8x8xf32>
    %86 = arith.subf %82, %85 : vector<8x8xf32>
    %87 = math.exp %86 : vector<8x8xf32>
    %cst_36 = arith.constant dense<0.000000e+00> : vector<8xf32>
    %88 = vector.multi_reduction <add>, %87, %cst_36 [1] : vector<8x8xf32> to vector<8xf32>
    %89 = vector.shape_cast %88 : vector<8xf32> to vector<8x1xf32>
    %90 = tpu.reciprocal %89 {approx = true} : vector<8x1xf32> -> vector<8x1xf32>
    %91 = vector.broadcast %90 : vector<8x1xf32> to vector<8x8xf32>
    %92 = arith.mulf %87, %91 : vector<8x8xf32>
    %93 = arith.truncf %92 : vector<8x8xf32> to vector<8x8xbf16>
    %cst_37 = arith.constant dense<0.000000e+00> : vector<8x8xf32>
    %94 = tpu.matmul %93, %77, %cst_37 {dimension_numbers = #tpu.dot_dimension_numbers<[1], [0], [0], [1], [0, 0, 1, 1], [], []>} : vector<8x8xbf16>, vector<8x8xbf16>, vector<8x8xf32> -> vector<8x8xf32>
    %95 = vector.extract_strided_slice %8 {offsets = [0, 24], sizes = [8, 8], strides = [1, 1]} : vector<8x32xf32> to vector<8x8xf32>
    %96 = arith.truncf %95 : vector<8x8xf32> to vector<8x8xbf16>
    %97 = vector.extract_strided_slice %15 {offsets = [0, 24], sizes = [8, 8], strides = [1, 1]} : vector<8x32xf32> to vector<8x8xf32>
    %98 = arith.truncf %97 : vector<8x8xf32> to vector<8x8xbf16>
    %99 = vector.extract_strided_slice %22 {offsets = [0, 24], sizes = [8, 8], strides = [1, 1]} : vector<8x32xf32> to vector<8x8xf32>
    %100 = arith.truncf %99 : vector<8x8xf32> to vector<8x8xbf16>
    %cst_38 = arith.constant dense<0.000000e+00> : vector<8x8xf32>
    %101 = tpu.matmul %96, %98, %cst_38 {dimension_numbers = #tpu.dot_dimension_numbers<[1], [1], [0], [0], [0, 0, 1, 0], [], []>} : vector<8x8xbf16>, vector<8x8xbf16>, vector<8x8xf32> -> vector<8x8xf32>
    %cst_39 = arith.constant 0.353553385 : f32
    %102 = vector.broadcast %cst_39 : f32 to vector<8x8xf32>
    %103 = arith.mulf %101, %102 : vector<8x8xf32>
    %cst_40 = arith.constant -1.000000e+30 : f32
    %104 = vector.broadcast %cst_40 : f32 to vector<8x8xf32>
    %105 = arith.select %25, %103, %104 : vector<8x8xi1>, vector<8x8xf32>
    %cst_41 = arith.constant dense<0xFF800000> : vector<8xf32>
    %106 = vector.multi_reduction <maximumf>, %105, %cst_41 [1] : vector<8x8xf32> to vector<8xf32>
    %107 = vector.shape_cast %106 : vector<8xf32> to vector<8x1xf32>
    %108 = vector.broadcast %107 : vector<8x1xf32> to vector<8x8xf32>
    %109 = arith.subf %105, %108 : vector<8x8xf32>
    %110 = math.exp %109 : vector<8x8xf32>
    %cst_42 = arith.constant dense<0.000000e+00> : vector<8xf32>
    %111 = vector.multi_reduction <add>, %110, %cst_42 [1] : vector<8x8xf32> to vector<8xf32>
    %112 = vector.shape_cast %111 : vector<8xf32> to vector<8x1xf32>
    %113 = tpu.reciprocal %112 {approx = true} : vector<8x1xf32> -> vector<8x1xf32>
    %114 = vector.broadcast %113 : vector<8x1xf32> to vector<8x8xf32>
    %115 = arith.mulf %110, %114 : vector<8x8xf32>
    %116 = arith.truncf %115 : vector<8x8xf32> to vector<8x8xbf16>
    %cst_43 = arith.constant dense<0.000000e+00> : vector<8x8xf32>
    %117 = tpu.matmul %116, %100, %cst_43 {dimension_numbers = #tpu.dot_dimension_numbers<[1], [0], [0], [1], [0, 0, 1, 1], [], []>} : vector<8x8xbf16>, vector<8x8xbf16>, vector<8x8xf32> -> vector<8x8xf32>
    %118 = tpu.concatenate %48, %71, %94, %117 in 1 : vector<8x8xf32>, vector<8x8xf32>, vector<8x8xf32>, vector<8x8xf32> -> vector<8x32xf32>
    %119 = arith.truncf %118 : vector<8x32xf32> to vector<8x32xbf16>
    %c0_44 = arith.constant 0 : index
    %c0_45 = arith.constant 0 : index
    %120 = vector.load %arg4[%c0_44, %c0_45] : memref<32x32xbf16, #tpu.memory_space<vmem>>, vector<32x32xbf16>
    %cst_46 = arith.constant dense<0.000000e+00> : vector<8x32xf32>
    %121 = tpu.matmul %119, %120, %cst_46 {dimension_numbers = #tpu.dot_dimension_numbers<[1], [0], [0], [1], [0, 0, 1, 1], [], []>} : vector<8x32xbf16>, vector<32x32xbf16>, vector<8x32xf32> -> vector<8x32xf32>
    %c0_47 = arith.constant 0 : index
    %c0_48 = arith.constant 0 : index
    %122 = vector.load %arg5[%c0_47, %c0_48] : memref<1x32xf32, #tpu.memory_space<vmem>>, vector<1x32xf32>
    %123 = vector.broadcast %122 : vector<1x32xf32> to vector<8x32xf32>
    %124 = arith.addf %121, %123 : vector<8x32xf32>
    %125 = arith.extf %1 : vector<8x32xbf16> to vector<8x32xf32>
    %126 = arith.addf %124, %125 : vector<8x32xf32>
    %cst_49 = arith.constant dense<0.000000e+00> : vector<8xf32>
    %127 = vector.multi_reduction <add>, %126, %cst_49 [1] : vector<8x32xf32> to vector<8xf32>
    %128 = vector.shape_cast %127 : vector<8xf32> to vector<8x1xf32>
    %cst_50 = arith.constant 3.200000e+01 : f32
    %129 = vector.broadcast %cst_50 : f32 to vector<8x1xf32>
    %130 = arith.divf %128, %129 : vector<8x1xf32>
    %131 = vector.broadcast %130 : vector<8x1xf32> to vector<8x32xf32>
    %132 = arith.subf %126, %131 : vector<8x32xf32>
    %133 = arith.mulf %132, %132 : vector<8x32xf32>
    %cst_51 = arith.constant dense<0.000000e+00> : vector<8xf32>
    %134 = vector.multi_reduction <add>, %133, %cst_51 [1] : vector<8x32xf32> to vector<8xf32>
    %135 = vector.shape_cast %134 : vector<8xf32> to vector<8x1xf32>
    %cst_52 = arith.constant 3.200000e+01 : f32
    %136 = vector.broadcast %cst_52 : f32 to vector<8x1xf32>
    %137 = arith.divf %135, %136 : vector<8x1xf32>
    %cst_53 = arith.constant 9.99999974E-6 : f32
    %138 = vector.broadcast %cst_53 : f32 to vector<8x1xf32>
    %139 = arith.addf %137, %138 : vector<8x1xf32>
    %140 = math.rsqrt %139 : vector<8x1xf32>
    %141 = vector.broadcast %140 : vector<8x1xf32> to vector<8x32xf32>
    %142 = arith.mulf %132, %141 : vector<8x32xf32>
    %c0_54 = arith.constant 0 : index
    %c0_55 = arith.constant 0 : index
    %143 = vector.load %arg6[%c0_54, %c0_55] : memref<1x32xf32, #tpu.memory_space<vmem>>, vector<1x32xf32>
    %144 = vector.broadcast %143 : vector<1x32xf32> to vector<8x32xf32>
    %145 = arith.mulf %142, %144 : vector<8x32xf32>
    %c0_56 = arith.constant 0 : index
    %c0_57 = arith.constant 0 : index
    %146 = vector.load %arg7[%c0_56, %c0_57] : memref<1x32xf32, #tpu.memory_space<vmem>>, vector<1x32xf32>
    %147 = vector.broadcast %146 : vector<1x32xf32> to vector<8x32xf32>
    %148 = arith.addf %145, %147 : vector<8x32xf32>
    %149 = arith.truncf %148 : vector<8x32xf32> to vector<8x32xbf16>
    %c0_58 = arith.constant 0 : index
    %c0_59 = arith.constant 0 : index
    %c0_60 = arith.constant 0 : index
    %150 = vector.load %arg8[%c0_58, %c0_59, %c0_60] : memref<1x8x32xbf16, #tpu.memory_space<vmem>>, vector<1x8x32xbf16>
    %151 = vector.shape_cast %150 : vector<1x8x32xbf16> to vector<8x32xbf16>
    %152 = vector.shape_cast %149 : vector<8x32xbf16> to vector<1x8x32xbf16>
    tpu.vector_store %arg8[%c0_58, %c0_59, %c0_60], %152 {strides = array<i32>} : memref<1x8x32xbf16, #tpu.memory_space<vmem>>, vector<1x8x32xbf16>,
    return
  }
  func.func @transform_0(%arg0: i32) -> (i32, i32, i32) {
    %c0_i32 = arith.constant 0 : i32
    %c0_i32_0 = arith.constant 0 : i32
    %c0_i32_1 = arith.constant 0 : i32
    return %arg0, %c0_i32, %c0_i32_0 : i32, i32, i32
  }
  func.func @transform_1(%arg0: i32) -> (i32, i32, i32) {
    %c0_i32 = arith.constant 0 : i32
    %c0_i32_0 = arith.constant 0 : i32
    %c0_i32_1 = arith.constant 0 : i32
    %c0_i32_2 = arith.constant 0 : i32
    return %c0_i32, %c0_i32_0, %c0_i32_1 : i32, i32, i32
  }
  func.func @transform_2(%arg0: i32) -> (i32, i32, i32) {
    %c0_i32 = arith.constant 0 : i32
    %c0_i32_0 = arith.constant 0 : i32
    %c0_i32_1 = arith.constant 0 : i32
    %c0_i32_2 = arith.constant 0 : i32
    return %c0_i32, %c0_i32_0, %c0_i32_1 : i32, i32, i32
  }
  func.func @transform_3(%arg0: i32) -> (i32, i32) {
    %c0_i32 = arith.constant 0 : i32
    %c0_i32_0 = arith.constant 0 : i32
    %c0_i32_1 = arith.constant 0 : i32
    return %c0_i32, %c0_i32_0 : i32, i32
  }
  func.func @transform_4(%arg0: i32) -> (i32, i32) {
    %c0_i32 = arith.constant 0 : i32
    %c0_i32_0 = arith.constant 0 : i32
    %c0_i32_1 = arith.constant 0 : i32
    return %c0_i32, %c0_i32_0 : i32, i32
  }
  func.func @transform_5(%arg0: i32) -> (i32, i32) {
    %c0_i32 = arith.constant 0 : i32
    %c0_i32_0 = arith.constant 0 : i32
    %c0_i32_1 = arith.constant 0 : i32
    return %c0_i32, %c0_i32_0 : i32, i32
  }
  func.func @transform_6(%arg0: i32) -> (i32, i32) {
    %c0_i32 = arith.constant 0 : i32
    %c0_i32_0 = arith.constant 0 : i32
    %c0_i32_1 = arith.constant 0 : i32
    return %c0_i32, %c0_i32_0 : i32, i32
  }
  func.func @transform_7(%arg0: i32) -> (i32, i32, i32) {
    %c0_i32 = arith.constant 0 : i32
    %c0_i32_0 = arith.constant 0 : i32
    %c0_i32_1 = arith.constant 0 : i32
    return %arg0, %c0_i32, %c0_i32_0 : i32, i32, i32
  }
}

module attributes {stable_mosaic.version = 11 : i64} {
  func.func @_linear_kernel(%arg0: i32, %arg1: i32, %arg2: i32, %arg3: memref<16x32xbf16, #tpu.memory_space<vmem>>, %arg4: memref<32x128xbf16, #tpu.memory_space<vmem>>, %arg5: memref<1x128xf32, #tpu.memory_space<vmem>>, %arg6: memref<16x128xf32, #tpu.memory_space<vmem>>, %arg7: memref<16x128xf32, #tpu.memory_space<vmem>>) attributes {dimension_semantics = [#tpu.dimension_semantics<parallel>, #tpu.dimension_semantics<parallel>, #tpu.dimension_semantics<arbitrary>], iteration_bounds = array<i64: 1, 1, 1>, scalar_prefetch = 0 : i64, scratch_operands = 1 : i64, tpu.core_type = #tpu.core_type<tc>, window_params = [{transform_indices = @transform_0, window_bounds = array<i64: 16, 32>}, {transform_indices = @transform_1, window_bounds = array<i64: 32, 128>}, {transform_indices = @transform_2, window_bounds = array<i64: 1, 128>}, {transform_indices = @transform_3, window_bounds = array<i64: 16, 128>}]} {
    %c0_i32 = arith.constant 0 : i32
    %0 = arith.cmpi eq, %arg2, %c0_i32 : i32
    %1 = arith.extui %0 : i1 to i32
    %c0_i32_0 = arith.constant 0 : i32
    %2 = arith.cmpi ne, %1, %c0_i32_0 : i32
    scf.if %2 {
      %cst_10 = arith.constant 0.000000e+00 : f32
      %12 = vector.broadcast %cst_10 : f32 to vector<16x128xf32>
      %c0_11 = arith.constant 0 : index
      %c0_12 = arith.constant 0 : index
      %13 = vector.load %arg7[%c0_11, %c0_12] : memref<16x128xf32, #tpu.memory_space<vmem>>, vector<16x128xf32>
      tpu.vector_store %arg7[%c0_11, %c0_12], %12 {strides = array<i32>} : memref<16x128xf32, #tpu.memory_space<vmem>>, vector<16x128xf32>,
    } else {
    }
    %c0 = arith.constant 0 : index
    %c0_1 = arith.constant 0 : index
    %3 = vector.load %arg7[%c0, %c0_1] : memref<16x128xf32, #tpu.memory_space<vmem>>, vector<16x128xf32>
    %c0_2 = arith.constant 0 : index
    %c0_3 = arith.constant 0 : index
    %4 = vector.load %arg3[%c0_2, %c0_3] : memref<16x32xbf16, #tpu.memory_space<vmem>>, vector<16x32xbf16>
    %c0_4 = arith.constant 0 : index
    %c0_5 = arith.constant 0 : index
    %5 = vector.load %arg4[%c0_4, %c0_5] : memref<32x128xbf16, #tpu.memory_space<vmem>>, vector<32x128xbf16>
    %cst = arith.constant dense<0.000000e+00> : vector<16x128xf32>
    %6 = tpu.matmul %4, %5, %cst {dimension_numbers = #tpu.dot_dimension_numbers<[1], [0], [0], [1], [0, 0, 1, 1], [], []>} : vector<16x32xbf16>, vector<32x128xbf16>, vector<16x128xf32> -> vector<16x128xf32>
    %7 = arith.addf %3, %6 : vector<16x128xf32>
    %c0_6 = arith.constant 0 : index
    %c0_7 = arith.constant 0 : index
    %8 = vector.load %arg7[%c0_6, %c0_7] : memref<16x128xf32, #tpu.memory_space<vmem>>, vector<16x128xf32>
    tpu.vector_store %arg7[%c0_6, %c0_7], %7 {strides = array<i32>} : memref<16x128xf32, #tpu.memory_space<vmem>>, vector<16x128xf32>,
    %c0_i32_8 = arith.constant 0 : i32
    %9 = arith.cmpi eq, %arg2, %c0_i32_8 : i32
    %10 = arith.extui %9 : i1 to i32
    %c0_i32_9 = arith.constant 0 : i32
    %11 = arith.cmpi ne, %10, %c0_i32_9 : i32
    scf.if %11 {
      %c0_10 = arith.constant 0 : index
      %c0_11 = arith.constant 0 : index
      %12 = vector.load %arg7[%c0_10, %c0_11] : memref<16x128xf32, #tpu.memory_space<vmem>>, vector<16x128xf32>
      %c0_12 = arith.constant 0 : index
      %c0_13 = arith.constant 0 : index
      %13 = vector.load %arg5[%c0_12, %c0_13] : memref<1x128xf32, #tpu.memory_space<vmem>>, vector<1x128xf32>
      %14 = vector.broadcast %13 : vector<1x128xf32> to vector<16x128xf32>
      %15 = arith.addf %12, %14 : vector<16x128xf32>
      %c0_14 = arith.constant 0 : index
      %c0_15 = arith.constant 0 : index
      %16 = vector.load %arg6[%c0_14, %c0_15] : memref<16x128xf32, #tpu.memory_space<vmem>>, vector<16x128xf32>
      tpu.vector_store %arg6[%c0_14, %c0_15], %15 {strides = array<i32>} : memref<16x128xf32, #tpu.memory_space<vmem>>, vector<16x128xf32>,
    } else {
    }
    return
  }
  func.func @transform_0(%arg0: i32, %arg1: i32, %arg2: i32) -> (i32, i32) {
    %c0_i32 = arith.constant 0 : i32
    return %arg0, %arg2 : i32, i32
  }
  func.func @transform_1(%arg0: i32, %arg1: i32, %arg2: i32) -> (i32, i32) {
    %c0_i32 = arith.constant 0 : i32
    return %arg2, %arg1 : i32, i32
  }
  func.func @transform_2(%arg0: i32, %arg1: i32, %arg2: i32) -> (i32, i32) {
    %c0_i32 = arith.constant 0 : i32
    %c0_i32_0 = arith.constant 0 : i32
    return %c0_i32, %arg1 : i32, i32
  }
  func.func @transform_3(%arg0: i32, %arg1: i32, %arg2: i32) -> (i32, i32) {
    %c0_i32 = arith.constant 0 : i32
    return %arg0, %arg1 : i32, i32
  }
}

</mosaic_0001>

<bundles_post_ra>
// kernel: transformer_forward.6
= control target key start
LH: loop header
LB: loop body
LE: loop exit
PB: predicated region body
PF: predicated region fallthrough
CT: control target
= control target key end

     0   :  { %11 = vsyncpa [#allocation3], 0  ;;  %s958_s0 = inlined_call_operand.vmem [shape: bf16[2,8,24], index: 0, kind: input, shape index: {}]   ;;  %s959_s1 = inlined_call_operand.hbm [shape: bf16[24,32], index: 1, kind: input, shape index: {}]   ;;  %s960_s2 = inlined_call_operand.hbm [shape: f32[1,32], index: 2, kind: input, shape index: {}]   ;;  %s961_s3 = inlined_call_operand.vmem [shape: f32[2,1,32], index: 3, kind: input, shape index: {}]   ;;  %s962_s4 = inlined_call_operand.hbm [shape: f32[1,32], index: 4, kind: input, shape index: {}]   ;;  %s963_s5 = inlined_call_operand.hbm [shape: f32[1,32], index: 5, kind: input, shape index: {}]   ;;  %s964_s6 = inlined_call_operand.vmem [shape: bf16[2,8,32], index: 6, kind: output, shape index: {}]  }
   0x1   :  { %12 = vsyncpa [#allocation5], 0 }
   0x2   :  { %13 = vsyncpa [#allocation8], 0  ;;  %s795_s21 = smov 0  }
   0x3 LB: > { %s752_s22 = smov [#allocation4]   ;;  %s801_s24 = sadd.s32 4294967295, %s750_s21   ;;  %s750_s21 = sphi %s795_s21, %s19_s21  }
   0x4   : > { %s212_s23 = sshll.u32 %s752_s22, 4  ;;  %p530_p0 = scmp.ge.s32.totalorder %s750_s21, 1  ;;  %s806_s23 = int_to_ptr.vmem [resolvable:$true] %s212_s23 }
   0x5   : > { %p186_p1 = scmp.lt.s32.totalorder %s750_s21, 3  ;;  %p965_p2 = scmp.eq.s32.totalorder %s801_s24, 0 }
   0x6   : > { %s753_s26 = smov [#allocation2]   ;;  %s754_s29 = smov [#allocation6]  }
   0x7   : > { %p808_p3 = pnand %p530_p0, %p186_p1  ;;  %s198_s27 = sshll.u32 %s753_s26, 4  ;;  %s814_s27 = int_to_ptr.vmem [resolvable:$true] %s198_s27 }
   0x8   : > { %s223_s30 = sshll.u32 %s754_s29, 4  ;;  %s755_s7 = smov [#allocation7]   ;;  %s822_s30 = int_to_ptr.vmem [resolvable:$true] %s223_s30 }
   0x9   : > { %s967_s25 = scalar_select %p808_p3, 1, 0 }
   0xa   : > { %p579_p4 = pneg %p808_p3  ;;  %s824_s8 = sshll.u32 %s755_s7, 4  ;;  %s235_s8 = int_to_ptr.vmem [resolvable:$true] %s824_s8 }
   0xb   : > { %s620_s11 = scalar_lea.hbm %s960_s2, 16 }
   0xc   : > { %p818_p5 = pnand %p965_p2, %p579_p4  ;;  %p621_p6 = scmp.ne.s32.totalorder %s960_s2, %s620_s11 }
   0xd   : > { %p627_p10 = scmp.lt.u32.totalorder %s620_s11, %s960_s2 }
   0xe   : > { %p834_p7 = pneg %p818_p5 }
  0x10   : > { %p623_p8 = pnand %p834_p7, %p621_p6 }
  0x12   : > { %p624_p9 = pneg %p623_p8 }
  0x14   : > { %p629_p11 = pnand %p627_p10, %p624_p9 }
  0x16   : > { %632 = shalt.err (!%p629_p11)
}
  0x17   : > { %s633_s17 = scalar_lea.vmem %s806_s23, 16  ;;  %s640_s18 = scalar_lea.vmem %s806_s23, 32 }
  0x18   : > { %p634_p12 = scmp.ne.s32.totalorder %s806_s23, %s633_s17  ;;  %p641_p1 = scmp.lt.s32.totalorder %s806_s23, %s806_s23 }
  0x19   : > { %p642_p4 = scmp.lt.s32.totalorder %s640_s18, %s633_s17 }
  0x1a   : > { %p636_p13 = pnand %p634_p12, %p834_p7 }
  0x1b   : > { %p643_p6 = por %p642_p4, %p641_p1 }
  0x1c   : > { %p637_p0 = pneg %p636_p13 }
  0x1e   : > { %p644_p8 = pnand %p643_p6, %p637_p0 }
  0x20   : > { %647 = shalt.err (!%p644_p8)
}
  0x21   : > { %585 = dma.hbm_to_vmem [thread:$0]  (!%p818_p5), %s960_s2, 16, %s806_s23, [#allocation5]  }
  0x22   : > { %s648_s29 = scalar_lea.hbm %s959_s1, 192 }
  0x23   : > { %p649_p9 = scmp.ne.s32.totalorder %s959_s1, %s648_s29  ;;  %p655_p12 = scmp.lt.u32.totalorder %s648_s29, %s959_s1 }
  0x25   : > { %p651_p10 = pnand %p649_p9, %p834_p7 }
  0x27   : > { %p652_p11 = pneg %p651_p10 }
  0x29   : > { %p657_p13 = pnand %p655_p12, %p652_p11 }
  0x2b   : > { %660 = shalt.err (!%p657_p13)
}
  0x2c   : > { %s661_s23 = scalar_lea.vmem %s814_s27, 192  ;;  %p669_p6 = scmp.lt.s32.totalorder %s814_s27, %s814_s27 }
  0x2d   : > { %p662_p0 = scmp.ne.s32.totalorder %s814_s27, %s661_s23  ;;  %p670_p8 = scmp.lt.s32.totalorder %s661_s23, %s661_s23 }
  0x2f   : > { %p664_p1 = pnand %p662_p0, %p834_p7  ;;  %p671_p9 = por %p670_p8, %p669_p6 }
  0x31   : > { %p665_p4 = pneg %p664_p1 }
  0x33   : > { %p672_p10 = pnand %p671_p9, %p665_p4 }
  0x35   : > { %675 = shalt.err (!%p672_p10)
}
  0x36   : > { %s756_s12 = smov 64   ;;  %s757_s13 = smov 4  }
  0x37   : > { %582 = dma.hbm_to_vmem [thread:$0]  (!%p818_p5), %s959_s1, 192, %s814_s27, [#allocation3], %s756_s12, %s756_s12, %s757_s13  }
  0x38   : > { %s676_s19 = scalar_lea.hbm %s962_s4, 16 }
  0x39   : > { %p677_p11 = scmp.ne.s32.totalorder %s962_s4, %s676_s19  ;;  %p683_p0 = scmp.lt.u32.totalorder %s676_s19, %s962_s4 }
  0x3b   : > { %p679_p12 = pnand %p677_p11, %p834_p7 }
  0x3d   : > { %p680_p13 = pneg %p679_p12 }
  0x3f   : > { %p685_p1 = pnand %p683_p0, %p680_p13 }
  0x41   : > { %688 = shalt.err (!%p685_p1)
}
  0x42   : > { %s689_s27 = scalar_lea.vmem %s822_s30, 16  ;;  %s696_s7 = scalar_lea.vmem %s822_s30, 32 }
  0x43   : > { %p690_p4 = scmp.ne.s32.totalorder %s822_s30, %s689_s27  ;;  %p697_p9 = scmp.lt.s32.totalorder %s822_s30, %s822_s30 }
  0x44   : > { %p698_p10 = scmp.lt.s32.totalorder %s696_s7, %s689_s27 }
  0x45   : > { %p692_p6 = pnand %p690_p4, %p834_p7 }
  0x46   : > { %p699_p11 = por %p698_p10, %p697_p9 }
  0x47   : > { %p693_p8 = pneg %p692_p6 }
  0x49   : > { %p700_p12 = pnand %p699_p11, %p693_p8 }
  0x4b   : > { %703 = shalt.err (!%p700_p12)
}
  0x4c   : > { %588 = dma.hbm_to_vmem [thread:$0]  (!%p818_p5), %s962_s4, 16, %s822_s30, [#allocation5]  }
  0x4d   : > { %s704_s12 = scalar_lea.hbm %s963_s5, 16 }
  0x4e   : > { %p705_p13 = scmp.ne.s32.totalorder %s963_s5, %s704_s12  ;;  %p711_p4 = scmp.lt.u32.totalorder %s704_s12, %s963_s5 }
  0x50   : > { %p707_p0 = pnand %p705_p13, %p834_p7 }
  0x52   : > { %p708_p1 = pneg %p707_p0 }
  0x54   : > { %p713_p6 = pnand %p711_p4, %p708_p1 }
  0x56   : > { %716 = shalt.err (!%p713_p6)
}
  0x57   : > { %s717_s18 = scalar_lea.vmem %s235_s8, 16  ;;  %s724_s30 = scalar_lea.vmem %s235_s8, 32 }
  0x58   : > { %p718_p8 = scmp.ne.s32.totalorder %s235_s8, %s717_s18  ;;  %p725_p11 = scmp.lt.s32.totalorder %s235_s8, %s235_s8 }
  0x59   : > { %p726_p12 = scmp.lt.s32.totalorder %s724_s30, %s717_s18 }
  0x5a   : > { %p720_p9 = pnand %p718_p8, %p834_p7 }
  0x5b   : > { %p727_p2 = por %p726_p12, %p725_p11 }
  0x5c   : > { %p721_p10 = pneg %p720_p9 }
  0x5e   : > { %p728_p3 = pnand %p727_p2, %p721_p10 }
  0x60   : > { %731 = shalt.err (!%p728_p3)
}
  0x61   : > { %591 = dma.hbm_to_vmem [thread:$0]  (!%p818_p5), %s963_s5, 16, %s235_s8, [#allocation8]  }
  0x62   : > { %p970_p13 = scmp.ne.s32.totalorder %s967_s25, 0 }
  0x63   : > { %p971_p0 = scmp.eq.s32.totalorder (!%p970_p13), %s801_s24, 0 }
  0x64   : > { %260 = sbr.rel (%p970_p13) target bundleno = 655 (0x28f), region = 44 }
  0x6b   : > { %737 = dma.done.wait (%p971_p0), [#allocation3], 192   ;;  %p972_p7 = pmov %p971_p0 }
  0x6c   : > { %p973_p1 = pmov %p971_p0 }
  0x6d   : > { %739 = vsyncadd (%p972_p7), [#allocation3], 4294967104 }
  0x6e   : > { %741 = dma.done.wait (%p973_p1), [#allocation5], 32   ;;  %p974_p2 = pmov %p971_p0 }
  0x6f   : > { %p975_p3 = pmov %p971_p0 }
  0x70   : > { %743 = vsyncadd (%p974_p2), [#allocation5], 4294967264 }
  0x71   : > { %745 = dma.done.wait (%p975_p3), [#allocation8], 16   ;;  %p976_p5 = pmov %p971_p0 }
  0x72   : > { %p303_p4 = scmp.lt.s32.totalorder %s801_s24, 1  ;;  %v758_v0 = vmov 0.0   ;;  %vm759_vm0 = vmmov 0   ;;  %vm339_vm1 = vcmask 1043456   ;;  %v616_v1 = vld [vmem:[#allocation2] sm:$0xff]   ;;  %vm335_vm2 = vcmask 195584  }
  0x73   : > { %747 = vsyncadd (%p976_p5), [#allocation8], 4294967280  ;;  %555 = vmatprep.subr.bf16.mxu0 %v758_v0  ;;  %559 = vmatprep.mubr.msk.bf16.mxu0 %vm759_vm0, %v758_v0  ;;  %v617_v2 = vld [vmem:[#allocation2 + $0x8] ss:$0 sps:$4 sm:$0xff]   ;;  %v543_v5 = vld [vmem:[#allocation4] ss:$0 sm:$0xff] }
  0x74   : > { %s978_s24 = smov (!%p303_p4, %s801_s24), 1  ;;  %556 = vmatpush3.bf16.msra.mxu0 %v616_v1  ;;  %v341_v3 = vsel %vm339_vm1, %v617_v2, 0  ;;  %vm391_vm3 = vcmask 261120   ;;  %v548_v23 = vld [vmem:[#allocation6] ss:$0 sm:$0xff]  ;;  %vm423_vm4 = vcmask 257024  }
  0x75   : > { %s541_s25 = sshll.u32 %s978_s24, 2  ;;  %557 = vmatprep.subr.bf16.mxu0 %v758_v0  ;;  %s309_s29 = scalar_lea.vmem %s961_s3, %s978_s24  ;;  %v549_v25 = vld [vmem:[#allocation7] ss:$0 sm:$0xff] }
  0x76   : > { %s306_s14 = scalar_lea.vmem %s958_s0, %s541_s25  ;;  %v547_v7 = vld [vmem:[%s309_s29] ss:$0 sm:$0xff]  ;;  %s313_s9 = scalar_lea.vmem %s964_s6, %s541_s25 }
  0x77   : > { %v315_v4 = vld [vmem:[%s306_s14] sm:$0xf] }
  0x78   : > { %558 = vmatpush3.bf16.msra.mxu0 %v341_v3 }
  0x7b   : > { %560 = vmatmul.mubr.msk.bf16.vlgmr.msra.gmra.mrb[0].mxu0 %vm335_vm2, %v315_v4 }
 0x14e   : > { %v377_v6 = vpop.f32.mrb[0].mxu0 }
 0x14f   : > { %v378_v8 = vadd.f32 %v543_v5, %v377_v6  ;;  %v561_v9 = vpop.f32.mrb[1].mxu0 }
 0x150   : > { %v380_v10 = vpop.f32.mrb[2].mxu0 }
 0x151   : > { %v562_v11 = vpop.f32.mrb[3].mxu0  ;;  %v390_v12 = vadd.f32 %v547_v7, %v378_v8 }
 0x153   : > { %v392_v13 = vsel %vm391_vm3, %v390_v12, 0.0 }
 0x154   : > { %393 = vadd.xlane.f32.xlu0 %v392_v13 }
 0x1e1   : > { %v394_v14 = vpop.xlane.xlu0 %393 }
 0x1e2   : > { %v396_v15 = vmul.f32 0.03125, %v394_v14 }
 0x1e4   : > { %v397_v16 = vsub.f32 %v390_v12, %v396_v15 }
 0x1e6   : > { %v398_v17 = vmul.f32 %v397_v16, %v397_v16 }
 0x1e8   : > { %v399_v18 = vsel %vm391_vm3, %v398_v17, 0.0 }
 0x1e9   : > { %400 = vadd.xlane.f32.xlu0 %v399_v18 }
 0x276   : > { %v401_v19 = vpop.xlane.xlu0 %400 }
 0x277   : > { %v402_v20 = vmul.f32 0.03125, %v401_v19 }
 0x279   : > { %v403_v21 = vadd.f32 1e-05, %v402_v20 }
 0x27b   : > { %618 = vrsqrt.f32 %v403_v21 }
 0x285   : > { %v619_v22 = vpop.eup %618 }
 0x286   : > { %v405_v24 = vmul.f32 %v619_v22, %v397_v16 }
 0x288   : > { %v413_v26 = vmul.f32 %v548_v23, %v405_v24 }
 0x28a   : > { %v421_v27 = vadd.f32 %v549_v25, %v413_v26 }
 0x28c   : > { %v422_v28 = vpack.c.bf16 %v421_v27, %v421_v27 }
 0x28e   : > { %424 = vst.msk [vmem:[%s313_s9] sm:$0xf] %vm423_vm4, %v422_v28 }
 0x28f PF: > { %s19_s21 = sadd.s32 1, %s750_s21  }
 0x290   : > { %p16_p6 = scmp.ge.s32.totalorder %s19_s21, 4  }
 0x292   :  { %18 = sbr.rel (!%p16_p6) target bundleno = 3 (0x3), region = 94 }
 0x299   :  { %444 = vsyncpa [#allocation3], 1 }
 0x29a   :  { %446 = vsyncpa [#allocation3 + $0x1], 1 }
 0x29b   :  { %447 = vsyncpa [#allocation5], 1 }
 0x29c   :  { %448 = vsyncpa [#allocation8], 1 }

// kernel: transformer_forward.7
= control target key start
LH: loop header
LB: loop body
LE: loop exit
PB: predicated region body
PF: predicated region fallthrough
CT: control target
= control target key end

     0   :  { %12 = vsyncpa [#allocation3], 0  ;;  %s1982_s0 = inlined_call_operand.vmem [shape: bf16[2,8,32], index: 0, kind: input, shape index: {}]   ;;  %s1983_s1 = inlined_call_operand.vmem [shape: bf16[3,32,32], index: 1, kind: input, shape index: {}]   ;;  %s1984_s2 = inlined_call_operand.hbm [shape: f32[3,1,32], index: 2, kind: input, shape index: {}]   ;;  %s1985_s3 = inlined_call_operand.hbm [shape: bf16[32,32], index: 3, kind: input, shape index: {}]   ;;  %s1986_s4 = inlined_call_operand.hbm [shape: f32[1,32], index: 4, kind: input, shape index: {}]   ;;  %s1987_s5 = inlined_call_operand.hbm [shape: f32[1,32], index: 5, kind: input, shape index: {}]   ;;  %s1988_s6 = inlined_call_operand.hbm [shape: f32[1,32], index: 6, kind: input, shape index: {}]   ;;  %s1989_s7 = inlined_call_operand.vmem [shape: bf16[2,8,32], index: 7, kind: output, shape index: {}]  }
   0x1   :  { %13 = vsyncpa [#allocation5], 0 }
   0x2   :  { %14 = vsyncpa [#allocation8], 0  ;;  %s1692_s24 = smov 0  }
   0x3 LB: > { %s1635_s25 = smov [#allocation4]   ;;  %s1698_s27 = sadd.s32 4294967295, %s1633_s24   ;;  %s1633_s24 = sphi %s1692_s24, %s20_s24  }
   0x4   : > { %s231_s26 = sshll.u32 %s1635_s25, 4  ;;  %p1219_p0 = scmp.ge.s32.totalorder %s1633_s24, 1  ;;  %s1703_s26 = int_to_ptr.vmem [resolvable:$true] %s231_s26 }
   0x5   : > { %p203_p1 = scmp.lt.s32.totalorder %s1633_s24, 3  ;;  %p1990_p2 = scmp.eq.s32.totalorder %s1698_s27, 0 }
   0x6   : > { %s1636_s29 = smov [#allocation7]   ;;  %s1637_s9 = smov [#allocation2]  }
   0x7   : > { %p1705_p3 = pnand %p1219_p0, %p203_p1  ;;  %s256_s30 = sshll.u32 %s1636_s29, 4  ;;  %s1711_s30 = int_to_ptr.vmem [resolvable:$true] %s256_s30 }
   0x8   : > { %s218_s10 = sshll.u32 %s1637_s9, 4  ;;  %s1475_s13 = scalar_lea.hbm %s1985_s3, 256  ;;  %s1719_s10 = int_to_ptr.vmem [resolvable:$true] %s218_s10 }
   0x9   : > { %s1992_s28 = scalar_select %p1705_p3, 1, 0 }
   0xa   : > { %p1398_p4 = pneg %p1705_p3  ;;  %p1476_p6 = scmp.ne.s32.totalorder %s1985_s3, %s1475_s13 }
   0xb   : > { %p1482_p10 = scmp.lt.u32.totalorder %s1475_s13, %s1985_s3 }
   0xc   : > { %p1715_p5 = pnand %p1990_p2, %p1398_p4 }
   0xe   : > { %p1729_p7 = pneg %p1715_p5 }
  0x10   : > { %p1478_p8 = pnand %p1729_p7, %p1476_p6 }
  0x12   : > { %p1479_p9 = pneg %p1478_p8 }
  0x14   : > { %p1484_p11 = pnand %p1482_p10, %p1479_p9 }
  0x16   : > { %1487 = shalt.err (!%p1484_p11)
}
  0x17   : > { %s1488_s19 = scalar_lea.vmem %s1703_s26, 256  ;;  %p1496_p1 = scmp.lt.s32.totalorder %s1703_s26, %s1703_s26 }
  0x18   : > { %p1489_p12 = scmp.ne.s32.totalorder %s1703_s26, %s1488_s19  ;;  %p1497_p4 = scmp.lt.s32.totalorder %s1488_s19, %s1488_s19 }
  0x1a   : > { %p1491_p13 = pnand %p1489_p12, %p1729_p7  ;;  %p1498_p6 = por %p1497_p4, %p1496_p1 }
  0x1c   : > { %p1492_p0 = pneg %p1491_p13 }
  0x1e   : > { %p1499_p8 = pnand %p1498_p6, %p1492_p0 }
  0x20   : > { %1502 = shalt.err (!%p1499_p8)
}
  0x21   : > { %s1638_s20 = smov 64   ;;  %s1639_s21 = smov 4  }
  0x22   : > { %1404 = dma.hbm_to_vmem [thread:$0]  (!%p1715_p5), %s1985_s3, 256, %s1703_s26, [#allocation5], %s1638_s20, %s1638_s20, %s1639_s21  }
  0x23   : > { %s1503_s9 = scalar_lea.hbm %s1987_s5, 16 }
  0x24   : > { %p1504_p9 = scmp.ne.s32.totalorder %s1987_s5, %s1503_s9  ;;  %p1510_p12 = scmp.lt.u32.totalorder %s1503_s9, %s1987_s5 }
  0x26   : > { %p1506_p10 = pnand %p1504_p9, %p1729_p7 }
  0x28   : > { %p1507_p11 = pneg %p1506_p10 }
  0x2a   : > { %p1512_p13 = pnand %p1510_p12, %p1507_p11 }
  0x2c   : > { %1515 = shalt.err (!%p1512_p13)
}
  0x2d   : > { %s1516_s26 = scalar_lea.vmem %s1711_s30, 16  ;;  %s1523_s15 = scalar_lea.vmem %s1711_s30, 32 }
  0x2e   : > { %p1517_p0 = scmp.ne.s32.totalorder %s1711_s30, %s1516_s26  ;;  %p1524_p6 = scmp.lt.s32.totalorder %s1711_s30, %s1711_s30 }
  0x2f   : > { %p1525_p8 = scmp.lt.s32.totalorder %s1523_s15, %s1516_s26 }
  0x30   : > { %p1519_p1 = pnand %p1517_p0, %p1729_p7 }
  0x31   : > { %p1526_p9 = por %p1525_p8, %p1524_p6 }
  0x32   : > { %p1520_p4 = pneg %p1519_p1 }
  0x34   : > { %p1527_p10 = pnand %p1526_p9, %p1520_p4 }
  0x36   : > { %1530 = shalt.err (!%p1527_p10)
}
  0x37   : > { %1410 = dma.hbm_to_vmem [thread:$0]  (!%p1715_p5), %s1987_s5, 16, %s1711_s30, [#allocation8]  }
  0x38   : > { %s1531_s21 = scalar_lea.hbm %s1984_s2, 48 }
  0x39   : > { %p1532_p11 = scmp.ne.s32.totalorder %s1984_s2, %s1531_s21  ;;  %p1538_p0 = scmp.lt.u32.totalorder %s1531_s21, %s1984_s2 }
  0x3b   : > { %p1534_p12 = pnand %p1532_p11, %p1729_p7 }
  0x3d   : > { %p1535_p13 = pneg %p1534_p12 }
  0x3f   : > { %p1540_p1 = pnand %p1538_p0, %p1535_p13 }
  0x41   : > { %1543 = shalt.err (!%p1540_p1)
}
  0x42   : > { %s1544_s30 = scalar_lea.vmem %s1719_s10, 48  ;;  %s1551_s9 = scalar_lea.vmem %s1719_s10, 64 }
  0x43   : > { %p1545_p4 = scmp.ne.s32.totalorder %s1719_s10, %s1544_s30  ;;  %p1552_p9 = scmp.lt.s32.totalorder %s1719_s10, %s1719_s10 }
  0x44   : > { %p1553_p10 = scmp.lt.s32.totalorder %s1551_s9, %s1544_s30 }
  0x45   : > { %p1547_p6 = pnand %p1545_p4, %p1729_p7 }
  0x46   : > { %p1554_p11 = por %p1553_p10, %p1552_p9 }
  0x47   : > { %p1548_p8 = pneg %p1547_p6 }
  0x49   : > { %p1555_p12 = pnand %p1554_p11, %p1548_p8 }
  0x4b   : > { %1558 = shalt.err (!%p1555_p12)
}
  0x4c   : > { %s1640_s11 = smov 16   ;;  %s1641_s12 = smov 1  }
  0x4d   : > { %1401 = dma.hbm_to_vmem [thread:$0]  (!%p1715_p5), %s1984_s2, 48, %s1719_s10, [#allocation3], %s1640_s11, %s1640_s11, %s1641_s12  }
  0x4e   : > { %s1642_s26 = smov [#allocation6]   ;;  %s1643_s17 = smov [#allocation9]  }
  0x4f   : > { %s245_s15 = sshll.u32 %s1642_s26, 4  ;;  %s267_s18 = sshll.u32 %s1643_s17, 4  ;;  %s246_s15 = int_to_ptr.vmem [resolvable:$true] %s245_s15  ;;  %s1798_s18 = int_to_ptr.vmem [resolvable:$true] %s267_s18 }
  0x50   : > { %s1559_s21 = scalar_lea.hbm %s1986_s4, 16 }
  0x51   : > { %p1560_p13 = scmp.ne.s32.totalorder %s1986_s4, %s1559_s21  ;;  %p1566_p4 = scmp.lt.u32.totalorder %s1559_s21, %s1986_s4 }
  0x53   : > { %p1562_p0 = pnand %p1560_p13, %p1729_p7 }
  0x55   : > { %p1563_p1 = pneg %p1562_p0 }
  0x57   : > { %p1568_p6 = pnand %p1566_p4, %p1563_p1 }
  0x59   : > { %1571 = shalt.err (!%p1568_p6)
}
  0x5a   : > { %s1572_s29 = scalar_lea.vmem %s246_s15, 16  ;;  %s1579_s30 = scalar_lea.vmem %s246_s15, 32 }
  0x5b   : > { %p1573_p8 = scmp.ne.s32.totalorder %s246_s15, %s1572_s29  ;;  %p1580_p11 = scmp.lt.s32.totalorder %s246_s15, %s246_s15 }
  0x5c   : > { %p1581_p12 = scmp.lt.s32.totalorder %s1579_s30, %s1572_s29 }
  0x5d   : > { %p1575_p9 = pnand %p1573_p8, %p1729_p7 }
  0x5e   : > { %p1582_p2 = por %p1581_p12, %p1580_p11 }
  0x5f   : > { %p1576_p10 = pneg %p1575_p9 }
  0x61   : > { %p1583_p3 = pnand %p1582_p2, %p1576_p10 }
  0x63   : > { %1586 = shalt.err (!%p1583_p3)
}
  0x64   : > { %1407 = dma.hbm_to_vmem [thread:$0]  (!%p1715_p5), %s1986_s4, 16, %s246_s15, [#allocation5]  }
  0x65   : > { %s1587_s14 = scalar_lea.hbm %s1988_s6, 16 }
  0x66   : > { %p1588_p13 = scmp.ne.s32.totalorder %s1988_s6, %s1587_s14  ;;  %p1594_p2 = scmp.lt.u32.totalorder %s1587_s14, %s1988_s6 }
  0x68   : > { %p1590_p0 = pnand %p1588_p13, %p1729_p7 }
  0x6a   : > { %p1591_p1 = pneg %p1590_p0 }
  0x6c   : > { %p1596_p3 = pnand %p1594_p2, %p1591_p1 }
  0x6e   : > { %1599 = shalt.err (!%p1596_p3)
}
  0x6f   : > { %s1600_s15 = scalar_lea.vmem %s1798_s18, 16  ;;  %s1607_s21 = scalar_lea.vmem %s1798_s18, 32 }
  0x70   : > { %p1601_p4 = scmp.ne.s32.totalorder %s1798_s18, %s1600_s15  ;;  %p1608_p9 = scmp.lt.s32.totalorder %s1798_s18, %s1798_s18 }
  0x71   : > { %p1609_p10 = scmp.lt.s32.totalorder %s1607_s21, %s1600_s15 }
  0x72   : > { %p1603_p6 = pnand %p1601_p4, %p1729_p7 }
  0x73   : > { %p1610_p11 = por %p1609_p10, %p1608_p9 }
  0x74   : > { %p1604_p8 = pneg %p1603_p6 }
  0x76   : > { %p1611_p12 = pnand %p1610_p11, %p1604_p8 }
  0x78   : > { %1614 = shalt.err (!%p1611_p12)
}
  0x79   : > { %1413 = dma.hbm_to_vmem [thread:$0]  (!%p1715_p5), %s1988_s6, 16, %s1798_s18, [#allocation8]  }
  0x7a   : > { %p1995_p13 = scmp.ne.s32.totalorder %s1992_s28, 0 }
  0x7b   : > { %p1996_p7 = scmp.eq.s32.totalorder (!%p1995_p13), %s1698_s27, 0 }
  0x7c   : > { %287 = sbr.rel (%p1995_p13) target bundleno = 1898 (0x76a), region = 48 }
  0x83   : > { %1620 = dma.done.wait (%p1996_p7), [#allocation3], 48   ;;  %p1997_p0 = pmov %p1996_p7 }
  0x85   : > { %1622 = vsyncadd (%p1997_p0), [#allocation3], 4294967248  ;;  %p1998_p1 = pmov %p1997_p0 }
  0x86   : > { %p1999_p2 = pmov %p1997_p0 }
  0x87   : > { %1624 = dma.done.wait (%p1998_p1), [#allocation5], 272  }
  0x88   : > { %1626 = vsyncadd (%p1999_p2), [#allocation5], 4294967024  ;;  %p2000_p3 = pmov %p1997_p0 }
  0x89   : > { %p2001_p5 = pmov %p1997_p0 }
  0x8a   : > { %1628 = dma.done.wait (%p2000_p3), [#allocation8], 32  }
  0x8b   : > { %1630 = vsyncadd (%p2001_p5), [#allocation8], 4294967264  ;;  %p333_p4 = scmp.lt.s32.totalorder %s1698_s27, 1  ;;  %v1644_v0 = vmov 0.0   ;;  %vm1645_vm0 = vmmov 0   ;;  %v1449_v1 = vld [vmem:[%s1983_s1 + $0x10] sm:$0xff]   ;;  %v540_v32 = vlaneseq }
  0x8c   : > { %1306 = vmatprep.subr.bf16.mxu1 %v1644_v0  ;;  %1298 = vmatprep.subr.bf16.mxu0 %v1644_v0  ;;  %v1450_v2 = vld [vmem:[%s1983_s1] sm:$0xff]   ;;  %v1451_v3 = vld [vmem:[%s1983_s1 + $0x18] sm:$0xff]   ;;  %vm366_vm1 = vcmask 261120   ;;  %v1452_v5 = vld [vmem:[%s1983_s1 + $0x8] sm:$0xff]   ;;  %vm548_vm2 = vcmask 64512   ;;  %s1646_s14 = smov 112  }
  0x8d   : > { %1310 = vmatprep.mubr.msk.bf16.mxu1 %vm1645_vm0, %v1644_v0  ;;  %s2003_s27 = smov (!%p333_p4, %s1698_s27), 1  ;;  %1302 = vmatprep.mubr.msk.bf16.mxu0 %vm1645_vm0, %v1644_v0  ;;  %v1242_v6 = vld [vmem:[#allocation2 + $0x1] ss:$0 sm:$0xff]  ;;  %v1234_v7 = vld [vmem:[#allocation2] ss:$0 sm:$0xff]  ;;  %s1647_s26 = smov 120  }
  0x8e   : > { %s1232_s28 = sshll.u32 %s2003_s27, 2  ;;  %1307 = vmatpush3.bf16.msra.mxu1 %v1449_v1  ;;  %1299 = vmatpush3.bf16.msra.mxu0 %v1450_v2  ;;  %s1648_s17 = smov 104   ;;  %v1453_v21 = vld [vmem:[%s1983_s1 + $0x20] sm:$0xff]   ;;  %v1454_v22 = vld [vmem:[%s1983_s1 + $0x28] sm:$0xff]   ;;  %v541_v33 = vshrl.u32 %v540_v32, 7  ;;  %v543_v34 = vand.u32 127, %v540_v32 }
  0x8f   : > { %s336_s30 = scalar_lea.vmem %s1982_s0, %s1232_s28  ;;  %1308 = vmatprep.subr.bf16.mxu1 %v1644_v0  ;;  %1300 = vmatprep.subr.bf16.mxu0 %v1644_v0  ;;  %v1250_v42 = vld [vmem:[#allocation2 + $0x2] ss:$0 sm:$0xff]  ;;  %vm612_vm4 = vcmask 1043456   ;;  %s1649_s22 = smov 8   ;;  %vm1008_vm5 = vcmask 130048   ;;  %vm1010_vm6 = vcmask 195584  }
  0x90   : > { %v1883_v4 = vld [vmem:[%s336_s30] sm:$0xf]  ;;  %vm544_vm3 = vcmp.ge.s32.totalorder %v541_v33, %v543_v34  ;;  %s1650_s23 = smov 16   ;;  %s1651_s8 = smov 24   ;;  %vm1112_vm7 = vcmask 257024  }
  0x91   : > { %s340_s25 = scalar_lea.vmem %s1989_s7, %s1232_s28 }
  0x92   : > { %1309 = vmatpush3.bf16.msra.mxu1 %v1451_v3  ;;  %1301 = vmatpush3.bf16.msra.mxu0 %v1452_v5 }
  0x93   : > { %1322 = vmatprep.subr.bf16.mxu1 %v1644_v0  ;;  %1314 = vmatprep.subr.bf16.mxu0 %v1644_v0 }
  0x95   : > { %1311 = vmatmul.mubr.msk.bf16.vlgmr.msra.gmra.mrb[0].mxu1 %vm366_vm1, %v1883_v4  ;;  %1303 = vmatmul.mubr.msk.bf16.vlgmr.msra.gmra.mrb[0].mxu0 %vm366_vm1, %v1883_v4 }
  0x96   : > { %1324 = vmatprep.mubr.msk.bf16.mxu1 %vm1645_vm0, %v1644_v0  ;;  %1318 = vmatprep.mubr.msk.bf16.mxu0 %vm1645_vm0, %v1644_v0 }
  0x97   : > { %1315 = vmatpush3.bf16.msra.mxu0 %v1453_v21 }
  0x98   : > { %1316 = vmatprep.subr.bf16.mxu0 %v1644_v0 }
  0x9b   : > { %1317 = vmatpush3.bf16.msra.mxu0 %v1454_v22 }
  0x9c   : > { %1328 = vmatprep.subr.bf16.mxu0 %v1644_v0 }
  0x9e   : > { %1319 = vmatmul.mubr.msk.bf16.vlgmr.msra.gmra.mrb[4].mxu0 %vm366_vm1, %v1883_v4 }
  0x9f   : > { %1330 = vmatprep.mubr.msk.bf16.mxu0 %vm1645_vm0, %v1644_v0 }
 0x168   : > { %v469_v8 = vpop.f32.mrb[0].mxu1  ;;  %v404_v11 = vpop.f32.mrb[0].mxu0 }
 0x169   : > { %v470_v9 = vadd.f32 %v1242_v6, %v469_v8  ;;  %v1312_v10 = vpop.f32.mrb[1].mxu1  ;;  %v405_v13 = vadd.f32 %v1234_v7, %v404_v11  ;;  %v1304_v14 = vpop.f32.mrb[1].mxu0 }
 0x16a   : > { %v472_v12 = vpop.f32.mrb[2].mxu1  ;;  %v407_v17 = vpop.f32.mrb[2].mxu0 }
 0x16b   : > { %v546_v15 = vpack.c.bf16 %v470_v9, %v470_v9  ;;  %v1313_v16 = vpop.f32.mrb[3].mxu1  ;;  %v1305_v18 = vpop.f32.mrb[3].mxu0  ;;  %v545_v19 = vpack.c.bf16 %v405_v13, %v405_v13 }
 0x16d   : > { %773 = vrot.lane.b32.xlu1 %v546_v15, %s1646_s14  ;;  %660 = vrot.lane.b32.xlu0 %v546_v15, %s1647_s26  ;;  %v553_v20 = vsel %vm548_vm2, %v546_v15, 0 }
 0x16e   : > { %1323 = vmatpush3.bf16.xpose.msra.mxu1 %v553_v20 }
 0x16f   : > { %1334 = vmatprep.subr.bf16.mxu1 %v1644_v0 }
 0x171   : > { %771 = vrot.lane.b32.xlu1 %v545_v19, %s1646_s14  ;;  %657 = vrot.lane.b32.xlu0 %v545_v19, %s1647_s26  ;;  %v534_v43 = vpop.f32.mrb[4].mxu0 }
 0x172   : > { %v535_v44 = vadd.f32 %v1250_v42, %v534_v43  ;;  %v1320_v45 = vpop.f32.mrb[5].mxu0 }
 0x173   : > { %v537_v46 = vpop.f32.mrb[6].mxu0 }
 0x174   : > { %v547_v47 = vpack.c.bf16 %v535_v44, %v535_v44  ;;  %v1321_v48 = vpop.f32.mrb[7].mxu0 }
 0x175   : > { %883 = vrot.lane.b32.xlu1 %v545_v19, %s1648_s17  ;;  %885 = vrot.lane.b32.xlu0 %v546_v15, %s1648_s17 }
 0x176   : > { %1325 = vmatmul.mubr.msk.bf16.vlgmr.msra.gmra.mrb[4].mxu1 %vm548_vm2, %v545_v19  ;;  %v614_v49 = vsel %vm612_vm4, %v547_v47, 0 }
 0x177   : > { %1336 = vmatprep.mubr.msk.bf16.mxu1 %vm1645_vm0, %v1644_v0  ;;  %1329 = vmatpush3.bf16.msra.mxu0 %v614_v49 }
 0x178   : > { %1340 = vmatprep.subr.bf16.mxu0 %v1644_v0 }
 0x1df   : > { %v661_v23 = vpop.permute.xlu0 %660  ;;  %v774_v25 = vpop.permute.xlu1 %773 }
 0x1e0   : > { %v666_v24 = vsel %vm548_vm2, %v661_v23, 0  ;;  %v779_v27 = vsel %vm548_vm2, %v774_v25, 0 }
 0x1e1   : > { %1335 = vmatpush3.bf16.xpose.msra.mxu1 %v666_v24 }
 0x1e2   : > { %1346 = vmatprep.subr.bf16.mxu1 %v1644_v0 }
 0x1e3   : > { %v658_v26 = vpop.permute.xlu0 %657  ;;  %v772_v29 = vpop.permute.xlu1 %771 }
 0x1e7   : > { %v886_v28 = vpop.permute.xlu0 %885  ;;  %v884_v31 = vpop.permute.xlu1 %883 }
 0x1e8   : > { %1337 = vmatmul.mubr.msk.bf16.vlgmr.msra.gmra.mrb[8].mxu1 %vm548_vm2, %v658_v26  ;;  %v891_v30 = vsel %vm548_vm2, %v886_v28, 0 }
 0x1e9   : > { %1347 = vmatpush3.bf16.xpose.msra.mxu1 %v779_v27  ;;  %1348 = vmatprep.mubr.msk.bf16.mxu1 %vm1645_vm0, %v1644_v0 }
 0x1ea   : > { %1358 = vmatprep.subr.bf16.mxu1 %v1644_v0 }
 0x1f0   : > { %1349 = vmatmul.mubr.msk.bf16.vlgmr.msra.gmra.mrb[12].mxu1 %vm548_vm2, %v772_v29 }
 0x1f1   : > { %1359 = vmatpush3.bf16.xpose.msra.mxu1 %v891_v30  ;;  %1360 = vmatprep.mubr.msk.bf16.mxu1 %vm1645_vm0, %v1644_v0 }
 0x1f2   : > { %1370 = vmatprep.subr.bf16.mxu1 %v1644_v0 }
 0x1f8   : > { %1361 = vmatmul.mubr.msk.bf16.vlgmr.msra.gmra.mrb[16].mxu1 %vm548_vm2, %v884_v31 }
 0x1f9   : > { %1374 = vmatprep.mubr.msk.bf16.mxu1 %vm1645_vm0, %v1644_v0 }
 0x249   : > { %v589_v35 = vpop.f32.mrb[4].mxu1 }
 0x24a   : > { %v595_v36 = vmul.f32 0.35355338, %v589_v35  ;;  %v1326_v37 = vpop.f32.mrb[5].mxu1 }
 0x24b   : > { %v592_v38 = vpop.f32.mrb[6].mxu1 }
 0x24c   : > { %v1327_v39 = vpop.f32.mrb[7].mxu1  ;;  %v596_v40 = vsel %vm544_vm3, %v595_v36, -1e+30 }
 0x24d   : > { %v597_v41 = vsel %vm548_vm2, %v596_v40, -inf }
 0x24e   : > { %598 = vmax.xlane.f32.xlu0 %v597_v41 }
 0x2bb   : > { %v702_v50 = vpop.f32.mrb[8].mxu1 }
 0x2bc   : > { %v708_v51 = vmul.f32 0.35355338, %v702_v50  ;;  %v1338_v52 = vpop.f32.mrb[9].mxu1 }
 0x2bd   : > { %v705_v53 = vpop.f32.mrb[10].mxu1 }
 0x2be   : > { %v1339_v54 = vpop.f32.mrb[11].mxu1  ;;  %v709_v55 = vsel %vm544_vm3, %v708_v51, -1e+30 }
 0x2bf   : > { %v710_v56 = vsel %vm548_vm2, %v709_v55, -inf }
 0x2c0   : > { %711 = vmax.xlane.f32.xlu1 %v710_v56 }
 0x2c3   : > { %v815_v57 = vpop.f32.mrb[12].mxu1 }
 0x2c4   : > { %v821_v58 = vmul.f32 0.35355338, %v815_v57  ;;  %v1350_v59 = vpop.f32.mrb[13].mxu1 }
 0x2c5   : > { %v818_v60 = vpop.f32.mrb[14].mxu1 }
 0x2c6   : > { %v1351_v61 = vpop.f32.mrb[15].mxu1  ;;  %v822_v62 = vsel %vm544_vm3, %v821_v58, -1e+30  ;;  %v1456_v60 = vld [vmem:[#allocation4 + $0x8] sm:$0xff]  }
 0x2c7   : > { %v823_v63 = vsel %vm548_vm2, %v822_v62, -inf }
 0x2c8   : > { %824 = vmax.xlane.f32.xlu0 %v823_v63 }
 0x2cb   : > { %v927_v1 = vpop.f32.mrb[16].mxu1 }
 0x2cc   : > { %v933_v2 = vmul.f32 0.35355338, %v927_v1  ;;  %v1362_v3 = vpop.f32.mrb[17].mxu1 }
 0x2cd   : > { %v930_v5 = vpop.f32.mrb[18].mxu1 }
 0x2ce   : > { %v1363_v6 = vpop.f32.mrb[19].mxu1  ;;  %v934_v7 = vsel %vm544_vm3, %v933_v2, -1e+30 }
 0x2cf   : > { %v935_v8 = vsel %vm548_vm2, %v934_v7, -inf }
 0x2d0   : > { %936 = vmax.xlane.f32.xlu0 %v935_v8 }
 0x2db   : > { %v599_v9 = vpop.xlane.xlu0 %598 }
 0x2dc   : > { %v600_v10 = vsub.f32 %v596_v40, %v599_v9 }
 0x2de   : > { %v601_v11 = vmul.f32 1.442695, %v600_v10 }
 0x2e0   : > { %1457 = vpow2.f32 %v601_v11 }
 0x2ea   : > { %v1458_v12 = vpop.eup %1457 }
 0x2eb   : > { %v603_v13 = vsel %vm548_vm2, %v1458_v12, 0.0 }
 0x2ec   : > { %604 = vadd.xlane.f32.xlu1 %v603_v13  ;;  %v1262_v13 = vld [vmem:[#allocation6] ss:$0 sm:$0xff] }
 0x2fd   : > { %723 = vrot.lane.b32.xlu1 %v547_v47, %s1647_s26 }
 0x34d   : > { %v712_v14 = vpop.xlane.xlu1 %711 }
 0x34e   : > { %v713_v15 = vsub.f32 %v709_v55, %v712_v14  ;;  %v1455_v55 = vld [vmem:[#allocation4] sm:$0xff]   ;;  %v1079_v14 = vunpack.c.l.bf16 %v1883_v4 }
 0x34f   : > { %1371 = vmatpush3.bf16.msra.mxu1 %v1455_v55 }
 0x350   : > { %v714_v16 = vmul.f32 1.442695, %v713_v15  ;;  %1372 = vmatprep.subr.bf16.mxu1 %v1644_v0 }
 0x352   : > { %1459 = vpow2.f32 %v714_v16 }
 0x353   : > { %1373 = vmatpush3.bf16.msra.mxu1 %v1456_v60 }
 0x355   : > { %v825_v17 = vpop.xlane.xlu0 %824 }
 0x356   : > { %v826_v18 = vsub.f32 %v822_v62, %v825_v17 }
 0x358   : > { %v827_v19 = vmul.f32 1.442695, %v826_v18 }
 0x35a   : > { %1461 = vpow2.f32 %v827_v19 }
 0x35c   : > { %v1460_v20 = vpop.eup %1459 }
 0x35d   : > { %v937_v21 = vpop.xlane.xlu0 %936  ;;  %v716_v22 = vsel %vm548_vm2, %v1460_v20, 0.0 }
 0x35e   : > { %v938_v23 = vsub.f32 %v934_v7, %v937_v21  ;;  %717 = vadd.xlane.f32.xlu0 %v716_v22 }
 0x360   : > { %v939_v24 = vmul.f32 1.442695, %v938_v23 }
 0x362   : > { %1463 = vpow2.f32 %v939_v24 }
 0x364   : > { %v1462_v25 = vpop.eup %1461 }
 0x365   : > { %v829_v26 = vsel %vm548_vm2, %v1462_v25, 0.0 }
 0x366   : > { %830 = vadd.xlane.f32.xlu1 %v829_v26 }
 0x36c   : > { %v1464_v27 = vpop.eup %1463 }
 0x36d   : > { %v941_v28 = vsel %vm548_vm2, %v1464_v27, 0.0 }
 0x36e   : > { %942 = vadd.xlane.f32.xlu0 %v941_v28 }
 0x377   : > { %947 = vrot.lane.b32.xlu1 %v547_v47, %s1648_s17 }
 0x379   : > { %v605_v29 = vpop.xlane.xlu1 %604 }
 0x37a   : > { %1465 = vrcp.f32 %v605_v29 }
 0x37d   : > { %v724_v31 = vpop.permute.xlu1 %723 }
 0x37e   : > { %v729_v34 = vsel %vm612_vm4, %v724_v31, 0 }
 0x384   : > { %v1466_v30 = vpop.eup %1465  ;;  %835 = vrot.lane.b32.xlu0 %v547_v47, %s1646_s14 }
 0x385   : > { %v607_v32 = vmul.f32 %v1466_v30, %v1458_v12  ;;  %v1266_v30 = vld [vmem:[#allocation7] ss:$0 sm:$0xff] }
 0x387   : > { %v608_v33 = vpack.c.bf16 %v607_v32, %v607_v32  ;;  %v1267_v32 = vld [vmem:[#allocation9] ss:$0 sm:$0xff] }
 0x389   : > { %1331 = vmatmul.mubr.msk.bf16.vlgmr.msra.gmra.mrb[8].mxu0 %vm548_vm2, %v608_v33 }
 0x38a   : > { %1341 = vmatpush3.bf16.msra.mxu0 %v729_v34  ;;  %1342 = vmatprep.mubr.msk.bf16.mxu0 %vm1645_vm0, %v1644_v0 }
 0x38b   : > { %1352 = vmatprep.subr.bf16.mxu0 %v1644_v0 }
 0x3eb   : > { %v718_v35 = vpop.xlane.xlu0 %717 }
 0x3ec   : > { %1467 = vrcp.f32 %v718_v35 }
 0x3f3   : > { %v831_v36 = vpop.xlane.xlu1 %830 }
 0x3f4   : > { %1469 = vrcp.f32 %v831_v36 }
 0x3f6   : > { %v1468_v37 = vpop.eup %1467 }
 0x3f7   : > { %v720_v38 = vmul.f32 %v1468_v37, %v1460_v20  ;;  %v948_v45 = vpop.permute.xlu1 %947 }
 0x3f8   : > { %v953_v47 = vsel %vm612_vm4, %v948_v45, 0 }
 0x3f9   : > { %v721_v39 = vpack.c.bf16 %v720_v38, %v720_v38 }
 0x3fb   : > { %v943_v40 = vpop.xlane.xlu0 %942  ;;  %1343 = vmatmul.mubr.msk.bf16.vlgmr.msra.gmra.mrb[12].mxu0 %vm548_vm2, %v721_v39 }
 0x3fc   : > { %1471 = vrcp.f32 %v943_v40  ;;  %1354 = vmatprep.mubr.msk.bf16.mxu0 %vm1645_vm0, %v1644_v0 }
 0x3fe   : > { %v1470_v41 = vpop.eup %1469 }
 0x3ff   : > { %v833_v42 = vmul.f32 %v1470_v41, %v1462_v25  ;;  %v836_v43 = vpop.permute.xlu0 %835 }
 0x400   : > { %v841_v44 = vsel %vm612_vm4, %v836_v43, 0 }
 0x401   : > { %1353 = vmatpush3.bf16.msra.mxu0 %v841_v44  ;;  %v834_v46 = vpack.c.bf16 %v833_v42, %v833_v42 }
 0x402   : > { %1364 = vmatprep.subr.bf16.mxu0 %v1644_v0 }
 0x404   : > { %1355 = vmatmul.mubr.msk.bf16.vlgmr.msra.gmra.mrb[16].mxu0 %vm548_vm2, %v834_v46 }
 0x405   : > { %1365 = vmatpush3.bf16.msra.mxu0 %v953_v47  ;;  %1366 = vmatprep.mubr.msk.bf16.mxu0 %vm1645_vm0, %v1644_v0 }
 0x406   : > { %v1472_v48 = vpop.eup %1471 }
 0x407   : > { %v945_v49 = vmul.f32 %v1472_v48, %v1464_v27 }
 0x409   : > { %v946_v50 = vpack.c.bf16 %v945_v49, %v945_v49 }
 0x40c   : > { %1367 = vmatmul.mubr.msk.bf16.vlgmr.msra.gmra.mrb[20].mxu0 %vm548_vm2, %v946_v50 }
 0x45c   : > { %v650_v51 = vpop.f32.mrb[8].mxu0 }
 0x45d   : > { %v1332_v52 = vpop.f32.mrb[9].mxu0 }
 0x45e   : > { %v653_v53 = vpop.f32.mrb[10].mxu0 }
 0x45f   : > { %v1333_v54 = vpop.f32.mrb[11].mxu0 }
 0x4ce   : > { %v765_v56 = vpop.f32.mrb[12].mxu0 }
 0x4cf   : > { %996 = vrot.lane.b32.xlu1 %v765_v56, %s1649_s22  ;;  %v1344_v57 = vpop.f32.mrb[13].mxu0 }
 0x4d0   : > { %v768_v58 = vpop.f32.mrb[14].mxu0 }
 0x4d1   : > { %v1345_v59 = vpop.f32.mrb[15].mxu0 }
 0x4d7   : > { %v877_v61 = vpop.f32.mrb[16].mxu0 }
 0x4d8   : > { %1000 = vrot.lane.b32.xlu0 %v877_v61, %s1650_s23  ;;  %v1356_v62 = vpop.f32.mrb[17].mxu0 }
 0x4d9   : > { %v880_v63 = vpop.f32.mrb[18].mxu0 }
 0x4da   : > { %v1357_v1 = vpop.f32.mrb[19].mxu0 }
 0x4df   : > { %v989_v2 = vpop.f32.mrb[20].mxu0 }
 0x4e0   : > { %1004 = vrot.lane.b32.xlu1 %v989_v2, %s1651_s8  ;;  %v1368_v3 = vpop.f32.mrb[21].mxu0 }
 0x4e1   : > { %v992_v5 = vpop.f32.mrb[22].mxu0 }
 0x4e2   : > { %v1369_v6 = vpop.f32.mrb[23].mxu0 }
 0x541   : > { %v997_v0 = vpop.permute.xlu1 %996 }
 0x542   : > { %v1007_v8 = vsel %vm548_vm2, %v650_v51, %v997_v0 }
 0x54a   : > { %v1001_v7 = vpop.permute.xlu0 %1000 }
 0x54b   : > { %v1009_v9 = vsel %vm1008_vm5, %v1007_v8, %v1001_v7 }
 0x552   : > { %v1005_v10 = vpop.permute.xlu1 %1004 }
 0x553   : > { %v1011_v11 = vsel %vm1010_vm6, %v1009_v9, %v1005_v10 }
 0x554   : > { %v1012_v12 = vpack.c.bf16 %v1011_v11, %v1011_v11 }
 0x556   : > { %1375 = vmatmul.mubr.msk.bf16.vlgmr.msra.gmra.mrb[20].mxu1 %vm366_vm1, %v1012_v12 }
 0x629   : > { %v1073_v15 = vpop.f32.mrb[20].mxu1 }
 0x62a   : > { %v1074_v16 = vadd.f32 %v1262_v13, %v1073_v15  ;;  %v1376_v17 = vpop.f32.mrb[21].mxu1 }
 0x62b   : > { %v1076_v18 = vpop.f32.mrb[22].mxu1 }
 0x62c   : > { %v1377_v19 = vpop.f32.mrb[23].mxu1  ;;  %v1080_v20 = vadd.f32 %v1079_v14, %v1074_v16 }
 0x62e   : > { %v1081_v21 = vsel %vm366_vm1, %v1080_v20, 0.0 }
 0x62f   : > { %1082 = vadd.xlane.f32.xlu0 %v1081_v21 }
 0x6bc   : > { %v1083_v22 = vpop.xlane.xlu0 %1082 }
 0x6bd   : > { %v1085_v23 = vmul.f32 0.03125, %v1083_v22 }
 0x6bf   : > { %v1086_v24 = vsub.f32 %v1080_v20, %v1085_v23 }
 0x6c1   : > { %v1087_v25 = vmul.f32 %v1086_v24, %v1086_v24 }
 0x6c3   : > { %v1088_v26 = vsel %vm366_vm1, %v1087_v25, 0.0 }
 0x6c4   : > { %1089 = vadd.xlane.f32.xlu1 %v1088_v26 }
 0x751   : > { %v1090_v27 = vpop.xlane.xlu1 %1089 }
 0x752   : > { %v1091_v28 = vmul.f32 0.03125, %v1090_v27 }
 0x754   : > { %v1092_v4 = vadd.f32 1e-05, %v1091_v28 }
 0x756   : > { %1473 = vrsqrt.f32 %v1092_v4 }
 0x760   : > { %v1474_v29 = vpop.eup %1473 }
 0x761   : > { %v1094_v31 = vmul.f32 %v1474_v29, %v1086_v24 }
 0x763   : > { %v1102_v33 = vmul.f32 %v1266_v30, %v1094_v31 }
 0x765   : > { %v1110_v34 = vadd.f32 %v1267_v32, %v1102_v33 }
 0x767   : > { %v1111_v35 = vpack.c.bf16 %v1110_v34, %v1110_v34 }
 0x769   : > { %1113 = vst.msk [vmem:[%s340_s25] sm:$0xf] %vm1112_vm7, %v1111_v35 }
 0x76a PF: > { %s20_s24 = sadd.s32 1, %s1633_s24  }
 0x76b   : > { %p17_p6 = scmp.ge.s32.totalorder %s20_s24, 4  }
 0x76d   :  { %19 = sbr.rel (!%p17_p6) target bundleno = 3 (0x3), region = 103 }
 0x774   :  { %1133 = vsyncpa [#allocation3], 1 }
 0x775   :  { %1135 = vsyncpa [#allocation3 + $0x1], 1 }
 0x776   :  { %1136 = vsyncpa [#allocation5], 1 }
 0x777   :  { %1137 = vsyncpa [#allocation8], 1 }

// kernel: transformer_forward.8
= control target key start
LH: loop header
LB: loop body
LE: loop exit
PB: predicated region body
PF: predicated region fallthrough
CT: control target
= control target key end

     0   :  { %s1088_s24 = smov 0   ;;  %s1090_s25 = smov 0   ;;  %s1213_s0 = inlined_call_operand.vmem [shape: bf16[16,32], index: 0, kind: input, shape index: {}]   ;;  %s1214_s1 = inlined_call_operand.vmem [shape: bf16[32,2048], index: 1, kind: input, shape index: {}]   ;;  %s1215_s2 = inlined_call_operand.vmem [shape: f32[1,2048], index: 2, kind: input, shape index: {}]   ;;  %s1216_s3 = inlined_call_operand.vmem [shape: bf16[2048,32], index: 3, kind: input, shape index: {}]   ;;  %s1217_s4 = inlined_call_operand.vmem [shape: f32[1,32], index: 4, kind: input, shape index: {}]   ;;  %s1218_s5 = inlined_call_operand.vmem [shape: f32[1,32], index: 5, kind: input, shape index: {}]   ;;  %s1219_s6 = inlined_call_operand.vmem [shape: f32[1,32], index: 6, kind: input, shape index: {}]   ;;  %s1220_s7 = inlined_call_operand.vmem [shape: bf16[16,32], index: 7, kind: output, shape index: {}]  }
   0x1   :  { %s1092_s26 = smov 0   ;;  %s1094_s27 = smov 0  }
   0x2   :  { %s1096_s28 = smov 0  }
   0x3 LB: > { %s26_s29 = sadd.s32 1, %s1040_s27  ;;  %p69_p1 = scmp.ne.s32.totalorder %s1032_s25, %s1028_s24  ;;  %s1044_s28 = sphi %s1096_s28, %s17_s28   ;;  %s1040_s27 = sphi %s1094_s27, %s1224_s27   ;;  %s1036_s26 = sphi %s1092_s26, %s1223_s26   ;;  %s1032_s25 = sphi %s1090_s25, %s1222_s25   ;;  %s1028_s24 = sphi %s1088_s24, %s1221_s24  }
   0x4   : > { %p27_p0 = scmp.ge.s32.totalorder %s26_s29, 8  ;;  %p70_p2 = scmp.eq.s32.totalorder %s1044_s28, 0 }
   0x5   : > { %s62_s8 = sadd.s32 1, %s1032_s25  ;;  %p866_p5 = scmp.ge.s32.totalorder %s1044_s28, 8 }
   0x6   : > { %s1226_s29 = smov (%p27_p0, %s26_s29), 0  ;;  %p71_p3 = por %p70_p2, %p69_p1 }
   0x7   : > { %s59_s30 = ssub.s32 %s1040_s27, %s1226_s29  ;;  %254 = sbr.rel (%p866_p5) target bundleno = 22 (0x16), region = 32 }
   0x8   : > { %p60_p4 = scmp.eq.s32.totalorder %s59_s30, 0 }
   0xa   : > { %s1123_s9 = scalar_select %p60_p4, %s1032_s25, %s62_s8  }
   0xe   : > { %257 = sbr.rel (!%p71_p3) target bundleno = 22 (0x16), region = 36  ;;  %s259_s10 = sand.u32 (%p71_p3), 1, %s1032_s25  }
   0xf   : > { %s908_s11 = sshll.u32 (%p71_p3), %s1040_s27, 3  ;;  %s867_s12 = sshll.u32 (%p71_p3), %s259_s10, 5 }
  0x10   : > { %s264_s15 = scalar_lea.vmem (%p71_p3), %s1214_s1, %s908_s11  ;;  %s261_s16 = scalar_lea.vmem (%p71_p3), [#allocation3], %s867_s12 }
  0x11   : > { %v298_v0 = vld [vmem:[%s264_s15] sm:$0xff] (%p71_p3) }
  0x12   : > { %v300_v1 = vld [vmem:[%s264_s15 + $0x40] sm:$0xff] (%p71_p3)  ;;  %299 = vst [vmem:[%s261_s16] sm:$0xff] (%p71_p3), %v298_v0 }
  0x13   : > { %v302_v2 = vld [vmem:[%s264_s15 + $0x80] sm:$0xff] (%p71_p3)  ;;  %301 = vst [vmem:[%s261_s16 + $0x8] sm:$0xff] (%p71_p3), %v300_v1 }
  0x14   : > { %303 = vst [vmem:[%s261_s16 + $0x10] sm:$0xff] (%p71_p3), %v302_v2  ;;  %v304_v3 = vld [vmem:[%s264_s15 + $0xc0] sm:$0xff] (%p71_p3) }
  0x15   : > { %305 = vst [vmem:[%s261_s16 + $0x18] sm:$0xff] %v304_v3 }
  0x16 PF: > { %p870_p6 = scmp.ge.s32.totalorder %s1044_s28, 1  ;;  %p327_p7 = scmp.lt.s32.totalorder %s1044_s28, 9 }
  0x18   : > { %p328_p8 = pnand %p870_p6, %p327_p7 }
  0x19   : > { %s334_s17 = sand.u32 (!%p328_p8), 1, %s1028_s24   ;;  %s872_s18 = sshll.u32 (!%p328_p8), %s1036_s26, 1 }
  0x1a   : > { %331 = sbr.rel (%p328_p8) target bundleno = 822 (0x336), region = 82  ;;  %s871_s19 = sshll.u32 (!%p328_p8), %s334_s17, 5 }
  0x1b   : > { %p387_p9 = scmp.lt.s32.totalorder (!%p328_p8), %s872_s18, 15  ;;  %s873_s20 = sshll.u32 (!%p328_p8), %s1036_s26, 5 }
  0x1c   : > { %p392_p10 = scmp.lt.s32.totalorder (!%p328_p8), %s873_s20, 255  ;;  %s336_s24 = scalar_lea.vmem (!%p328_p8), [#allocation3], %s871_s19 }
  0x1d   : > { %p875_p11 = scmp.ne.s32.totalorder (!%p328_p8), %s1036_s26, 0 }
  0x21   : > { %s1228_s18 = smov (!%p387_p9, %s872_s18), 15  ;;  %s1230_s20 = smov (!%p392_p10, %s873_s20), 255 }
  0x22   : > { %s389_s23 = scalar_lea.vmem %s1215_s2, %s1228_s18  ;;  %s874_s30 = sshll.u32 %s1230_s20, 2  ;;  %vm408_vm0 = vcmask (!%p875_p11), 261120   ;;  %v1046_v4 = vmov (!%p875_p11), 0.0  }
  0x23   : > { %s1145_s11 = scalar_lea.vmem %s1216_s3, %s874_s30  ;;  %407 = sbr.rel (%p875_p11) target bundleno = 42 (0x2a), region = 90  ;;  %409 = vst.msk [vmem:[#allocation2] sm:$0xff] (!%p875_p11), %vm408_vm0, %v1046_v4  ;;  %410 = vst.msk [vmem:[#allocation2 + $0x8] sm:$0xff] (!%p875_p11), %vm408_vm0, %v1046_v4 }
  0x2a PF: > { %v979_v5 = vld [vmem:[%s336_s24 + $0x4] ss:$8 sps:$4 sm:$0xff]   ;;  %v981_v6 = vld [vmem:[%s336_s24] ss:$8 sps:$4 sm:$0xff]   ;;  %v1047_v7 = vmov 0   ;;  %v985_v10 = vld [vmem:[%s1213_s0] sm:$0xff]   ;;  %v419_v27 = vlaneseq }
  0x2b   : > { %490 = vmatprep.mubr.bf16.mxu0 %v1047_v7  ;;  %458 = vmatprep.subr.bf16.mxu0 %v979_v5  ;;  %v982_v8 = vld [vmem:[%s336_s24 + $0x14] ss:$8 sps:$4 sm:$0xff]   ;;  %v984_v9 = vld [vmem:[%s336_s24 + $0x10] ss:$8 sps:$4 sm:$0xff]   ;;  %vm454_vm1 = vcmask 261120   ;;  %v990_v15 = vld [vmem:[%s1145_s11 + $0x50] sm:$0xff]  }
  0x2c   : > { %459 = vmatpush1.bf16.msra.mxu0 %v981_v6  ;;  %v986_v11 = vld [vmem:[%s1145_s11 + $0x40] sm:$0xff]   ;;  %v988_v13 = vld [vmem:[%s1145_s11 + $0x48] sm:$0xff]   ;;  %v991_v16 = vld [vmem:[%s1145_s11 + $0x10] sm:$0xff]   ;;  %v420_v28 = vshrl.u32 %v419_v27, 7  ;;  %p898_p12 = scmp.ne.s32.totalorder %s1036_s26, 7 }
  0x2d   : > { %460 = vmatprep.subr.bf16.mxu0 %v982_v8  ;;  %v987_v12 = vld [vmem:[%s1145_s11] sm:$0xff]   ;;  %915 = vmatprep.subr.bf16.mxu1 %v986_v11  ;;  %v989_v14 = vld [vmem:[%s1145_s11 + $0x8] sm:$0xff]   ;;  %v992_v17 = vld [vmem:[%s1145_s11 + $0x58] sm:$0xff]   ;;  %vm756_vm2 = vcmask (!%p898_p12), 257024  }
  0x2e   : > { %916 = vmatpush3.bf16.msra.mxu1 %v987_v12  ;;  %v993_v18 = vld [vmem:[%s1145_s11 + $0x18] sm:$0xff]   ;;  %v994_v19 = vld [vmem:[%s1145_s11 + $0x60] sm:$0xff]   ;;  %v996_v21 = vld [vmem:[%s1145_s11 + $0x68] sm:$0xff]   ;;  %v421_v29 = vsub.s32 0, %v420_v28  ;;  %v425_v31 = vsub.s32 1, %v420_v28 }
  0x2f   : > { %917 = vmatprep.subr.bf16.mxu1 %v988_v13  ;;  %v995_v20 = vld [vmem:[%s1145_s11 + $0x20] sm:$0xff]   ;;  %v997_v22 = vld [vmem:[%s1145_s11 + $0x28] sm:$0xff]   ;;  %v998_v23 = vld [vmem:[%s1145_s11 + $0x70] sm:$0xff]  }
  0x30   : > { %461 = vmatpush1.bf16.msra.mxu0 %v984_v9  ;;  %v999_v24 = vld [vmem:[%s1145_s11 + $0x30] sm:$0xff]   ;;  %v1000_v25 = vld [vmem:[%s1145_s11 + $0x78] sm:$0xff]   ;;  %v417_v30 = vld [vmem:[%s389_s23] sm:$0x3] }
  0x31   : > { %v1001_v26 = vld [vmem:[%s1145_s11 + $0x38] sm:$0xff]   ;;  %v422_v32 = vrot.slane %v417_v30, %v421_v29  ;;  %v426_v33 = vrot.slane %v417_v30, %v425_v31  ;;  %v507_v49 = vld [vmem:[#allocation2] sm:$0xff]  ;;  %v508_v53 = vld [vmem:[#allocation2 + $0x8] sm:$0xff] }
  0x32   : > { %918 = vmatpush3.bf16.msra.mxu1 %v989_v14  ;;  %v899_v59 = vld [vmem:[%s1217_s4] ss:$0 sm:$0xff] (!%p898_p12) }
  0x33   : > { %881 = vmatmul.mubr.msk.bf16.vlgmr.msra.gmra.mrb[0].mxu0 %vm454_vm1, %v985_v10  ;;  %919 = vmatprep.subr.bf16.mxu1 %v990_v15  ;;  %v912_v60 = vld [vmem:[%s1213_s0] sm:$0xff] (!%p898_p12)  }
  0x34   : > { %v913_v62 = vunpack.c.l.bf16 (!%p898_p12), %v912_v60  ;;  %v914_v0 = vunpack.c.h.bf16 (!%p898_p12), %v912_v60 }
  0x36   : > { %920 = vmatpush3.bf16.msra.mxu1 %v991_v16 }
  0x37   : > { %921 = vmatprep.subr.bf16.mxu1 %v992_v17 }
  0x3a   : > { %922 = vmatpush3.bf16.msra.mxu1 %v993_v18 }
  0x3b   : > { %923 = vmatprep.subr.bf16.mxu1 %v994_v19 }
  0x3e   : > { %924 = vmatpush3.bf16.msra.mxu1 %v995_v20 }
  0x3f   : > { %925 = vmatprep.subr.bf16.mxu1 %v996_v21 }
  0x42   : > { %926 = vmatpush3.bf16.msra.mxu1 %v997_v22 }
  0x43   : > { %927 = vmatprep.subr.bf16.mxu1 %v998_v23  ;;  %v900_v23 = vld [vmem:[%s1218_s5] ss:$0 sm:$0xff] (!%p898_p12) }
  0x46   : > { %928 = vmatpush3.bf16.msra.mxu1 %v999_v24 }
  0x47   : > { %929 = vmatprep.subr.bf16.mxu1 %v1000_v25  ;;  %v901_v25 = vld [vmem:[%s1219_s6] ss:$0 sm:$0xff] (!%p898_p12) }
  0x4a   : > { %930 = vmatpush3.bf16.msra.mxu1 %v1001_v26 }
 0x106   : > { %v492_v34 = vpop.f32.mrb[0].mxu0 }
 0x107   : > { %v493_v35 = vadd.f32 %v492_v34, %v422_v32  ;;  %v494_v36 = vpop.f32.mrb[1].mxu0 }
 0x108   : > { %v495_v37 = vadd.f32 %v494_v36, %v426_v33  ;;  %v496_v38 = vpop.f32.mrb[2].mxu0 }
 0x109   : > { %v497_v39 = vadd.f32 %v496_v38, %v422_v32  ;;  %v498_v40 = vpop.f32.mrb[3].mxu0  ;;  %v501_v42 = vmax.f32 %v493_v35, 0.0 }
 0x10a   : > { %v499_v41 = vadd.f32 %v498_v40, %v426_v33  ;;  %v502_v44 = vmax.f32 %v495_v37, 0.0 }
 0x10b   : > { %v503_v43 = vmax.f32 %v497_v39, 0.0 }
 0x10c   : > { %v504_v45 = vmax.f32 %v499_v41, 0.0 }
 0x10d   : > { %v505_v46 = vpack.c.bf16 %v503_v43, %v501_v42 }
 0x10e   : > { %v506_v47 = vpack.c.bf16 %v504_v45, %v502_v44 }
 0x110   : > { %669 = vmatprep.mubr.bf16.mxu1 %v506_v47 }
 0x111   : > { %670 = vmatmul.mubr.bf16.vlgmr.msra.gmra.mrb[0].mxu1 %v505_v46 }
 0x1e4   : > { %v931_v48 = vpop.f32.mrb[0].mxu1 }
 0x1e5   : > { %v932_v50 = vpop.f32.mrb[1].mxu1 }
 0x1e6   : > { %v933_v51 = vadd.f32 %v932_v50, %v931_v48  ;;  %v934_v52 = vpop.f32.mrb[2].mxu1  ;;  %685 = sbr.rel (%p898_p12) target bundleno = 822 (0x336), region = 94 }
 0x1e7   : > { %v935_v54 = vpop.f32.mrb[3].mxu1 }
 0x1e8   : > { %v678_v55 = vadd.f32 %v933_v51, %v507_v49  ;;  %v936_v56 = vadd.f32 %v935_v54, %v934_v52 }
 0x1ea   : > { %680 = vst.msk [vmem:[#allocation2] sm:$0xff] %vm454_vm1, %v678_v55  ;;  %v679_v57 = vadd.f32 %v936_v56, %v508_v53 }
 0x1ec   : > { %681 = vst.msk [vmem:[#allocation2 + $0x8] sm:$0xff] %vm454_vm1, %v679_v57 }
 0x1f1   : > { %v686_v58 = vld [vmem:[#allocation2] sm:$0xff] }
 0x1f2   : > { %v695_v61 = vadd.f32 %v899_v59, %v686_v58 }
 0x1f3   : > { %v687_v63 = vld [vmem:[#allocation2 + $0x8] sm:$0xff] }
 0x1f4   : > { %v696_v1 = vadd.f32 %v899_v59, %v687_v63  ;;  %v701_v2 = vadd.f32 %v913_v62, %v695_v61 }
 0x1f6   : > { %v702_v3 = vadd.f32 %v914_v0, %v696_v1  ;;  %v703_v4 = vsel %vm454_vm1, %v701_v2, 0.0 }
 0x1f7   : > { %704 = vadd.xlane.f32.xlu0 %v703_v4 }
 0x1f8   : > { %v706_v5 = vsel %vm454_vm1, %v702_v3, 0.0 }
 0x1fb   : > { %707 = vadd.xlane.f32.xlu0 %v706_v5 }
 0x284   : > { %v705_v6 = vpop.xlane.xlu0 %704 }
 0x285   : > { %v710_v7 = vmul.f32 0.03125, %v705_v6 }
 0x287   : > { %v712_v8 = vsub.f32 %v701_v2, %v710_v7 }
 0x288   : > { %v708_v9 = vpop.xlane.xlu0 %707 }
 0x289   : > { %v711_v10 = vmul.f32 0.03125, %v708_v9  ;;  %v714_v11 = vmul.f32 %v712_v8, %v712_v8 }
 0x28b   : > { %v713_v12 = vsub.f32 %v702_v3, %v711_v10  ;;  %v716_v13 = vsel %vm454_vm1, %v714_v11, 0.0 }
 0x28c   : > { %717 = vadd.xlane.f32.xlu1 %v716_v13 }
 0x28d   : > { %v715_v14 = vmul.f32 %v713_v12, %v713_v12 }
 0x28f   : > { %v719_v15 = vsel %vm454_vm1, %v715_v14, 0.0 }
 0x290   : > { %720 = vadd.xlane.f32.xlu1 %v719_v15 }
 0x319   : > { %v718_v16 = vpop.xlane.xlu1 %717 }
 0x31a   : > { %v722_v17 = vmul.f32 0.03125, %v718_v16 }
 0x31c   : > { %v724_v18 = vadd.f32 1e-05, %v722_v17 }
 0x31d   : > { %v721_v19 = vpop.xlane.xlu1 %720 }
 0x31e   : > { %1002 = vrsqrt.f32 %v724_v18  ;;  %v723_v20 = vmul.f32 0.03125, %v721_v19 }
 0x320   : > { %v725_v21 = vadd.f32 1e-05, %v723_v20 }
 0x322   : > { %1004 = vrsqrt.f32 %v725_v21 }
 0x328   : > { %v1003_v22 = vpop.eup %1002 }
 0x329   : > { %v728_v24 = vmul.f32 %v1003_v22, %v712_v8 }
 0x32b   : > { %v737_v26 = vmul.f32 %v900_v23, %v728_v24 }
 0x32c   : > { %v1005_v27 = vpop.eup %1004 }
 0x32d   : > { %v746_v28 = vadd.f32 %v901_v25, %v737_v26  ;;  %v729_v29 = vmul.f32 %v1005_v27, %v713_v12 }
 0x32f   : > { %v909_v30 = vpack.c.bf16 %v746_v28, %v746_v28  ;;  %v738_v31 = vmul.f32 %v900_v23, %v729_v29 }
 0x331   : > { %757 = vst.msk [vmem:[%s1220_s7] sm:$0xf] %vm756_vm2, %v909_v30  ;;  %v747_v32 = vadd.f32 %v901_v25, %v738_v31 }
 0x333   : > { %v910_v33 = vpack.c.bf16 %v747_v32, %v747_v32 }
 0x335   : > { %758 = vst.msk [vmem:[%s1220_s7 + $0x4] sm:$0xf] %vm756_vm2, %v910_v33 }
 0x336 PF: > { %s17_s28 = sadd.s32 1, %s1044_s28   ;;  %s1221_s24 = smov %s1032_s25 }
 0x337   : > { %p14_p13 = scmp.ge.s32.totalorder %s17_s28, 10   ;;  %s1222_s25 = smov %s1123_s9 }
 0x338   : > { %s1223_s26 = smov %s1040_s27  ;;  %s1224_s27 = smov %s1226_s29 }
 0x339   :  { %16 = sbr.rel (!%p14_p13) target bundleno = 3 (0x3), region = 138 }

// kernel: transformer_forward.11
= control target key start
LH: loop header
LB: loop body
LE: loop exit
PB: predicated region body
PF: predicated region fallthrough
CT: control target
= control target key end

     0   :  { %v136_v0 = vmov 0.0   ;;  %vm137_vm0 = vmmov 0   ;;  %vm46_vm1 = vcmask 261120   ;;  %s176_s1 = inlined_call_operand.vmem [shape: bf16[32,128], index: 1, kind: input, shape index: {}]   ;;  %s177_s0 = inlined_call_operand.vmem [shape: bf16[16,32], index: 0, kind: input, shape index: {}]   ;;  %s178_s2 = inlined_call_operand.vmem [shape: f32[1,128], index: 2, kind: input, shape index: {}]   ;;  %s179_s3 = inlined_call_operand.vmem [shape: f32[16,128], index: 3, kind: output, shape index: {}]  }
   0x1   :  { %123 = vmatprep.subr.bf16.mxu0 %v136_v0  ;;  %v133_v1 = vld [vmem:[%s176_s1] sm:$0xff]   ;;  %127 = vmatprep.mubr.msk.bf16.mxu0 %vm137_vm0, %v136_v0  ;;  %v134_v2 = vld [vmem:[%s176_s1 + $0x8] sm:$0xff]  }
   0x2   :  { %124 = vmatpush3.bf16.msra.mxu0 %v133_v1  ;;  %v135_v3 = vld [vmem:[%s177_s0] sm:$0xff]  }
   0x3   :  { %125 = vmatprep.subr.bf16.mxu0 %v136_v0  ;;  %v119_v4 = vld [vmem:[%s178_s2] ss:$0 sm:$0xff] }
   0x6   :  { %126 = vmatpush3.bf16.msra.mxu0 %v134_v2 }
   0x9   :  { %128 = vmatmul.mubr.msk.bf16.vlgmr.msra.gmra.mrb[0].mxu0 %vm46_vm1, %v135_v3 }
  0xdc   :  { %v84_v5 = vpop.f32.mrb[0].mxu0 }
  0xdd   :  { %v107_v6 = vadd.f32 %v119_v4, %v84_v5  ;;  %v129_v7 = vpop.f32.mrb[1].mxu0 }
  0xde   :  { %v87_v8 = vpop.f32.mrb[2].mxu0 }
  0xdf   :  { %109 = vst [vmem:[%s179_s3] sm:$0xff] %v107_v6  ;;  %v108_v9 = vadd.f32 %v119_v4, %v87_v8  ;;  %v130_v10 = vpop.f32.mrb[3].mxu0 }
  0xe1   :  { %110 = vst [vmem:[%s179_s3 + $0x8] sm:$0xff] %v108_v9 }

// kernel: transformer_forward.9
= control target key start
LH: loop header
LB: loop body
LE: loop exit
PB: predicated region body
PF: predicated region fallthrough
CT: control target
= control target key end

     0   :  { %s1351_s24 = smov 0   ;;  %s1507_s0 = inlined_call_operand.vmem [shape: bf16[2,8,32], index: 0, kind: input, shape index: {}]   ;;  %s1508_s1 = inlined_call_operand.vmem [shape: bf16[3,32,32], index: 1, kind: input, shape index: {}]   ;;  %s1509_s2 = inlined_call_operand.vmem [shape: f32[3,1,32], index: 2, kind: input, shape index: {}]   ;;  %s1510_s3 = inlined_call_operand.vmem [shape: bf16[32,32], index: 3, kind: input, shape index: {}]   ;;  %s1511_s4 = inlined_call_operand.vmem [shape: f32[1,32], index: 4, kind: input, shape index: {}]   ;;  %s1512_s5 = inlined_call_operand.vmem [shape: f32[1,32], index: 5, kind: input, shape index: {}]   ;;  %s1513_s6 = inlined_call_operand.vmem [shape: f32[1,32], index: 6, kind: input, shape index: {}]   ;;  %s1514_s7 = inlined_call_operand.vmem [shape: bf16[2,8,32], index: 7, kind: output, shape index: {}]  }
   0x1 LB: > { %s1100_s25 = sadd.s32 4294967295, %s1301_s24   ;;  %p1104_p0 = scmp.ge.s32.totalorder %s1301_s24, 1  ;;  %s1301_s24 = sphi %s1351_s24, %s17_s24  }
   0x2   : > { %p236_p1 = scmp.lt.s32.totalorder %s1301_s24, 3 }
   0x4   : > { %p237_p2 = pnand %p1104_p0, %p236_p1 }
   0x5   : > { %v1269_v0 = vld [vmem:[%s1508_s1 + $0x10] sm:$0xff] (!%p237_p2)   ;;  %v1303_v1 = vmov (!%p237_p2), 0.0   ;;  %v1270_v2 = vld [vmem:[%s1508_s1] sm:$0xff] (!%p237_p2)   ;;  %v1271_v3 = vld [vmem:[%s1508_s1 + $0x18] sm:$0xff] (!%p237_p2)   ;;  %vm1304_vm0 = vmmov (!%p237_p2), 0   ;;  %p266_p3 = scmp.lt.s32.totalorder (!%p237_p2), %s1100_s25, 1  ;;  %v473_v32 = vlaneseq (!%p237_p2) }
   0x6   : > { %240 = sbr.rel (%p237_p2) target bundleno = 1766 (0x6e6), region = 48  ;;  %1181 = vmatprep.subr.bf16.mxu1 (!%p237_p2), %v1303_v1  ;;  %1173 = vmatprep.subr.bf16.mxu0 (!%p237_p2), %v1303_v1  ;;  %v1272_v4 = vld [vmem:[%s1508_s1 + $0x8] sm:$0xff] (!%p237_p2)   ;;  %vm299_vm1 = vcmask (!%p237_p2), 261120   ;;  %v1116_v6 = vld [vmem:[%s1509_s2 + $0x1] ss:$0 sm:$0xff] (!%p237_p2)  ;;  %vm481_vm2 = vcmask (!%p237_p2), 64512  }
   0x7   : > { %1182 = vmatpush3.bf16.msra.mxu1 (!%p237_p2), %v1269_v0  ;;  %1185 = vmatprep.mubr.msk.bf16.mxu1 (!%p237_p2), %vm1304_vm0, %v1303_v1  ;;  %v1107_v7 = vld [vmem:[%s1509_s2] ss:$0 sm:$0xff] (!%p237_p2)  ;;  %s1305_s19 = smov (!%p237_p2), 112   ;;  %s1306_s20 = smov (!%p237_p2), 120   ;;  %v1274_v22 = vld [vmem:[%s1508_s1 + $0x28] sm:$0xff] (!%p237_p2)   ;;  %v474_v33 = vshrl.u32 (!%p237_p2), %v473_v32, 7 }
   0x8   : > { %1183 = vmatprep.subr.bf16.mxu1 (!%p237_p2), %v1303_v1  ;;  %1174 = vmatpush3.bf16.msra.mxu0 (!%p237_p2), %v1270_v2  ;;  %s1307_s21 = smov (!%p237_p2), 104   ;;  %v1273_v21 = vld [vmem:[%s1508_s1 + $0x20] sm:$0xff] (!%p237_p2)   ;;  %v476_v34 = vand.u32 (!%p237_p2), 127, %v473_v32  ;;  %vm545_vm4 = vcmask (!%p237_p2), 1043456   ;;  %s1308_s9 = smov (!%p237_p2), 8   ;;  %vm941_vm5 = vcmask (!%p237_p2), 130048  }
   0x9   : > { %1175 = vmatprep.subr.bf16.mxu0 (!%p237_p2), %v1303_v1  ;;  %1177 = vmatprep.mubr.msk.bf16.mxu0 (!%p237_p2), %vm1304_vm0, %v1303_v1  ;;  %v1125_v42 = vld [vmem:[%s1509_s2 + $0x2] ss:$0 sm:$0xff] (!%p237_p2)  ;;  %s1309_s13 = smov (!%p237_p2), 16   ;;  %vm943_vm6 = vcmask (!%p237_p2), 195584   ;;  %vm1045_vm7 = vcmask (!%p237_p2), 257024  }
   0xa   : > { %vm477_vm3 = vcmp.ge.s32.totalorder (!%p237_p2), %v474_v33, %v476_v34 }
   0xb   : > { %1184 = vmatpush3.bf16.msra.mxu1 (!%p237_p2), %v1271_v3 }
   0xc   : > { %1176 = vmatpush3.bf16.msra.mxu0 (!%p237_p2), %v1272_v4  ;;  %1197 = vmatprep.subr.bf16.mxu1 (!%p237_p2), %v1303_v1 }
   0xd   : > { %s1516_s25 = smov (!%p266_p3, %s1100_s25), 1  ;;  %1189 = vmatprep.subr.bf16.mxu0 %v1303_v1 }
   0xe   : > { %s1105_s11 = sshll.u32 %s1516_s25, 2 }
   0xf   : > { %s269_s14 = scalar_lea.vmem %s1507_s0, %s1105_s11  ;;  %s273_s23 = scalar_lea.vmem %s1514_s7, %s1105_s11 }
  0x10   : > { %v1388_v5 = vld [vmem:[%s269_s14] sm:$0xf]  ;;  %s1310_s14 = smov 24  }
  0x11   : > { %1186 = vmatmul.mubr.msk.bf16.vlgmr.msra.gmra.mrb[0].mxu1 %vm299_vm1, %v1388_v5  ;;  %1178 = vmatmul.mubr.msk.bf16.vlgmr.msra.gmra.mrb[0].mxu0 %vm299_vm1, %v1388_v5 }
  0x12   : > { %1199 = vmatprep.mubr.msk.bf16.mxu1 %vm1304_vm0, %v1303_v1  ;;  %1193 = vmatprep.mubr.msk.bf16.mxu0 %vm1304_vm0, %v1303_v1 }
  0x13   : > { %1190 = vmatpush3.bf16.msra.mxu0 %v1273_v21 }
  0x14   : > { %1191 = vmatprep.subr.bf16.mxu0 %v1303_v1 }
  0x17   : > { %1192 = vmatpush3.bf16.msra.mxu0 %v1274_v22 }
  0x18   : > { %1203 = vmatprep.subr.bf16.mxu0 %v1303_v1 }
  0x1a   : > { %1194 = vmatmul.mubr.msk.bf16.vlgmr.msra.gmra.mrb[4].mxu0 %vm299_vm1, %v1388_v5 }
  0x1b   : > { %1205 = vmatprep.mubr.msk.bf16.mxu0 %vm1304_vm0, %v1303_v1 }
  0xe4   : > { %v402_v8 = vpop.f32.mrb[0].mxu1  ;;  %v337_v11 = vpop.f32.mrb[0].mxu0 }
  0xe5   : > { %v403_v9 = vadd.f32 %v1116_v6, %v402_v8  ;;  %v1187_v10 = vpop.f32.mrb[1].mxu1  ;;  %v338_v13 = vadd.f32 %v1107_v7, %v337_v11  ;;  %v1179_v14 = vpop.f32.mrb[1].mxu0 }
  0xe6   : > { %v405_v12 = vpop.f32.mrb[2].mxu1  ;;  %v340_v17 = vpop.f32.mrb[2].mxu0 }
  0xe7   : > { %v479_v15 = vpack.c.bf16 %v403_v9, %v403_v9  ;;  %v1188_v16 = vpop.f32.mrb[3].mxu1  ;;  %v1180_v18 = vpop.f32.mrb[3].mxu0  ;;  %v478_v19 = vpack.c.bf16 %v338_v13, %v338_v13 }
  0xe9   : > { %706 = vrot.lane.b32.xlu1 %v479_v15, %s1305_s19  ;;  %593 = vrot.lane.b32.xlu0 %v479_v15, %s1306_s20  ;;  %v486_v20 = vsel %vm481_vm2, %v479_v15, 0 }
  0xea   : > { %1198 = vmatpush3.bf16.xpose.msra.mxu1 %v486_v20 }
  0xeb   : > { %1209 = vmatprep.subr.bf16.mxu1 %v1303_v1 }
  0xed   : > { %704 = vrot.lane.b32.xlu1 %v478_v19, %s1305_s19  ;;  %590 = vrot.lane.b32.xlu0 %v478_v19, %s1306_s20  ;;  %v467_v43 = vpop.f32.mrb[4].mxu0 }
  0xee   : > { %v468_v44 = vadd.f32 %v1125_v42, %v467_v43  ;;  %v1195_v45 = vpop.f32.mrb[5].mxu0 }
  0xef   : > { %v470_v46 = vpop.f32.mrb[6].mxu0 }
  0xf0   : > { %v480_v47 = vpack.c.bf16 %v468_v44, %v468_v44  ;;  %v1196_v48 = vpop.f32.mrb[7].mxu0 }
  0xf1   : > { %816 = vrot.lane.b32.xlu1 %v478_v19, %s1307_s21  ;;  %818 = vrot.lane.b32.xlu0 %v479_v15, %s1307_s21 }
  0xf2   : > { %1200 = vmatmul.mubr.msk.bf16.vlgmr.msra.gmra.mrb[4].mxu1 %vm481_vm2, %v478_v19  ;;  %v547_v49 = vsel %vm545_vm4, %v480_v47, 0 }
  0xf3   : > { %1211 = vmatprep.mubr.msk.bf16.mxu1 %vm1304_vm0, %v1303_v1  ;;  %1204 = vmatpush3.bf16.msra.mxu0 %v547_v49 }
  0xf4   : > { %1215 = vmatprep.subr.bf16.mxu0 %v1303_v1 }
 0x15b   : > { %v594_v23 = vpop.permute.xlu0 %593  ;;  %v707_v25 = vpop.permute.xlu1 %706 }
 0x15c   : > { %v599_v24 = vsel %vm481_vm2, %v594_v23, 0  ;;  %v712_v27 = vsel %vm481_vm2, %v707_v25, 0 }
 0x15d   : > { %1210 = vmatpush3.bf16.xpose.msra.mxu1 %v599_v24 }
 0x15e   : > { %1221 = vmatprep.subr.bf16.mxu1 %v1303_v1 }
 0x15f   : > { %v591_v26 = vpop.permute.xlu0 %590  ;;  %v705_v29 = vpop.permute.xlu1 %704 }
 0x163   : > { %v819_v28 = vpop.permute.xlu0 %818  ;;  %v817_v31 = vpop.permute.xlu1 %816 }
 0x164   : > { %1212 = vmatmul.mubr.msk.bf16.vlgmr.msra.gmra.mrb[8].mxu1 %vm481_vm2, %v591_v26  ;;  %v824_v30 = vsel %vm481_vm2, %v819_v28, 0 }
 0x165   : > { %1222 = vmatpush3.bf16.xpose.msra.mxu1 %v712_v27  ;;  %1223 = vmatprep.mubr.msk.bf16.mxu1 %vm1304_vm0, %v1303_v1 }
 0x166   : > { %1233 = vmatprep.subr.bf16.mxu1 %v1303_v1 }
 0x16c   : > { %1224 = vmatmul.mubr.msk.bf16.vlgmr.msra.gmra.mrb[12].mxu1 %vm481_vm2, %v705_v29 }
 0x16d   : > { %1234 = vmatpush3.bf16.xpose.msra.mxu1 %v824_v30  ;;  %1235 = vmatprep.mubr.msk.bf16.mxu1 %vm1304_vm0, %v1303_v1 }
 0x16e   : > { %1245 = vmatprep.subr.bf16.mxu1 %v1303_v1 }
 0x174   : > { %1236 = vmatmul.mubr.msk.bf16.vlgmr.msra.gmra.mrb[16].mxu1 %vm481_vm2, %v817_v31 }
 0x175   : > { %1249 = vmatprep.mubr.msk.bf16.mxu1 %vm1304_vm0, %v1303_v1 }
 0x1c5   : > { %v522_v35 = vpop.f32.mrb[4].mxu1 }
 0x1c6   : > { %v528_v36 = vmul.f32 0.35355338, %v522_v35  ;;  %v1201_v37 = vpop.f32.mrb[5].mxu1 }
 0x1c7   : > { %v525_v38 = vpop.f32.mrb[6].mxu1 }
 0x1c8   : > { %v1202_v39 = vpop.f32.mrb[7].mxu1  ;;  %v529_v40 = vsel %vm477_vm3, %v528_v36, -1e+30 }
 0x1c9   : > { %v530_v41 = vsel %vm481_vm2, %v529_v40, -inf }
 0x1ca   : > { %531 = vmax.xlane.f32.xlu0 %v530_v41 }
 0x237   : > { %v635_v50 = vpop.f32.mrb[8].mxu1 }
 0x238   : > { %v641_v51 = vmul.f32 0.35355338, %v635_v50  ;;  %v1213_v52 = vpop.f32.mrb[9].mxu1 }
 0x239   : > { %v638_v53 = vpop.f32.mrb[10].mxu1 }
 0x23a   : > { %v1214_v54 = vpop.f32.mrb[11].mxu1  ;;  %v642_v55 = vsel %vm477_vm3, %v641_v51, -1e+30 }
 0x23b   : > { %v643_v56 = vsel %vm481_vm2, %v642_v55, -inf }
 0x23c   : > { %644 = vmax.xlane.f32.xlu1 %v643_v56 }
 0x23f   : > { %v748_v57 = vpop.f32.mrb[12].mxu1 }
 0x240   : > { %v754_v58 = vmul.f32 0.35355338, %v748_v57  ;;  %v1225_v59 = vpop.f32.mrb[13].mxu1 }
 0x241   : > { %v751_v60 = vpop.f32.mrb[14].mxu1 }
 0x242   : > { %v1226_v61 = vpop.f32.mrb[15].mxu1  ;;  %v755_v62 = vsel %vm477_vm3, %v754_v58, -1e+30  ;;  %v1276_v60 = vld [vmem:[%s1510_s3 + $0x8] sm:$0xff]  }
 0x243   : > { %v756_v63 = vsel %vm481_vm2, %v755_v62, -inf }
 0x244   : > { %757 = vmax.xlane.f32.xlu0 %v756_v63 }
 0x247   : > { %v860_v0 = vpop.f32.mrb[16].mxu1 }
 0x248   : > { %v866_v2 = vmul.f32 0.35355338, %v860_v0  ;;  %v1237_v3 = vpop.f32.mrb[17].mxu1 }
 0x249   : > { %v863_v4 = vpop.f32.mrb[18].mxu1 }
 0x24a   : > { %v1238_v6 = vpop.f32.mrb[19].mxu1  ;;  %v867_v7 = vsel %vm477_vm3, %v866_v2, -1e+30 }
 0x24b   : > { %v868_v8 = vsel %vm481_vm2, %v867_v7, -inf }
 0x24c   : > { %869 = vmax.xlane.f32.xlu0 %v868_v8 }
 0x257   : > { %v532_v9 = vpop.xlane.xlu0 %531 }
 0x258   : > { %v533_v10 = vsub.f32 %v529_v40, %v532_v9 }
 0x25a   : > { %v534_v11 = vmul.f32 1.442695, %v533_v10 }
 0x25c   : > { %1277 = vpow2.f32 %v534_v11 }
 0x266   : > { %v1278_v12 = vpop.eup %1277 }
 0x267   : > { %v536_v13 = vsel %vm481_vm2, %v1278_v12, 0.0 }
 0x268   : > { %537 = vadd.xlane.f32.xlu1 %v536_v13  ;;  %v1137_v13 = vld [vmem:[%s1511_s4] ss:$0 sm:$0xff] }
 0x279   : > { %656 = vrot.lane.b32.xlu1 %v480_v47, %s1306_s20 }
 0x2c9   : > { %v645_v14 = vpop.xlane.xlu1 %644 }
 0x2ca   : > { %v646_v15 = vsub.f32 %v642_v55, %v645_v14  ;;  %v1275_v55 = vld [vmem:[%s1510_s3] sm:$0xff]   ;;  %v1012_v14 = vunpack.c.l.bf16 %v1388_v5 }
 0x2cb   : > { %1246 = vmatpush3.bf16.msra.mxu1 %v1275_v55 }
 0x2cc   : > { %v647_v16 = vmul.f32 1.442695, %v646_v15  ;;  %1247 = vmatprep.subr.bf16.mxu1 %v1303_v1 }
 0x2ce   : > { %1279 = vpow2.f32 %v647_v16 }
 0x2cf   : > { %1248 = vmatpush3.bf16.msra.mxu1 %v1276_v60 }
 0x2d1   : > { %v758_v17 = vpop.xlane.xlu0 %757 }
 0x2d2   : > { %v759_v18 = vsub.f32 %v755_v62, %v758_v17 }
 0x2d4   : > { %v760_v19 = vmul.f32 1.442695, %v759_v18 }
 0x2d6   : > { %1281 = vpow2.f32 %v760_v19 }
 0x2d8   : > { %v1280_v20 = vpop.eup %1279 }
 0x2d9   : > { %v870_v21 = vpop.xlane.xlu0 %869  ;;  %v649_v22 = vsel %vm481_vm2, %v1280_v20, 0.0 }
 0x2da   : > { %v871_v23 = vsub.f32 %v867_v7, %v870_v21  ;;  %650 = vadd.xlane.f32.xlu0 %v649_v22 }
 0x2dc   : > { %v872_v24 = vmul.f32 1.442695, %v871_v23 }
 0x2de   : > { %1283 = vpow2.f32 %v872_v24 }
 0x2e0   : > { %v1282_v25 = vpop.eup %1281 }
 0x2e1   : > { %v762_v26 = vsel %vm481_vm2, %v1282_v25, 0.0 }
 0x2e2   : > { %763 = vadd.xlane.f32.xlu1 %v762_v26 }
 0x2e8   : > { %v1284_v27 = vpop.eup %1283 }
 0x2e9   : > { %v874_v28 = vsel %vm481_vm2, %v1284_v27, 0.0 }
 0x2ea   : > { %875 = vadd.xlane.f32.xlu0 %v874_v28 }
 0x2f3   : > { %880 = vrot.lane.b32.xlu1 %v480_v47, %s1307_s21 }
 0x2f5   : > { %v538_v29 = vpop.xlane.xlu1 %537 }
 0x2f6   : > { %1285 = vrcp.f32 %v538_v29 }
 0x2f9   : > { %v657_v31 = vpop.permute.xlu1 %656 }
 0x2fa   : > { %v662_v34 = vsel %vm545_vm4, %v657_v31, 0 }
 0x300   : > { %v1286_v30 = vpop.eup %1285  ;;  %768 = vrot.lane.b32.xlu0 %v480_v47, %s1305_s19 }
 0x301   : > { %v540_v32 = vmul.f32 %v1286_v30, %v1278_v12  ;;  %v1141_v30 = vld [vmem:[%s1512_s5] ss:$0 sm:$0xff] }
 0x303   : > { %v541_v33 = vpack.c.bf16 %v540_v32, %v540_v32  ;;  %v1142_v32 = vld [vmem:[%s1513_s6] ss:$0 sm:$0xff] }
 0x305   : > { %1206 = vmatmul.mubr.msk.bf16.vlgmr.msra.gmra.mrb[8].mxu0 %vm481_vm2, %v541_v33 }
 0x306   : > { %1216 = vmatpush3.bf16.msra.mxu0 %v662_v34  ;;  %1217 = vmatprep.mubr.msk.bf16.mxu0 %vm1304_vm0, %v1303_v1 }
 0x307   : > { %1227 = vmatprep.subr.bf16.mxu0 %v1303_v1 }
 0x367   : > { %v651_v35 = vpop.xlane.xlu0 %650 }
 0x368   : > { %1287 = vrcp.f32 %v651_v35 }
 0x36f   : > { %v764_v36 = vpop.xlane.xlu1 %763 }
 0x370   : > { %1289 = vrcp.f32 %v764_v36 }
 0x372   : > { %v1288_v37 = vpop.eup %1287 }
 0x373   : > { %v653_v38 = vmul.f32 %v1288_v37, %v1280_v20  ;;  %v881_v45 = vpop.permute.xlu1 %880 }
 0x374   : > { %v886_v47 = vsel %vm545_vm4, %v881_v45, 0 }
 0x375   : > { %v654_v39 = vpack.c.bf16 %v653_v38, %v653_v38 }
 0x377   : > { %v876_v40 = vpop.xlane.xlu0 %875  ;;  %1218 = vmatmul.mubr.msk.bf16.vlgmr.msra.gmra.mrb[12].mxu0 %vm481_vm2, %v654_v39 }
 0x378   : > { %1291 = vrcp.f32 %v876_v40  ;;  %1229 = vmatprep.mubr.msk.bf16.mxu0 %vm1304_vm0, %v1303_v1 }
 0x37a   : > { %v1290_v41 = vpop.eup %1289 }
 0x37b   : > { %v766_v42 = vmul.f32 %v1290_v41, %v1282_v25  ;;  %v769_v43 = vpop.permute.xlu0 %768 }
 0x37c   : > { %v774_v44 = vsel %vm545_vm4, %v769_v43, 0 }
 0x37d   : > { %1228 = vmatpush3.bf16.msra.mxu0 %v774_v44  ;;  %v767_v46 = vpack.c.bf16 %v766_v42, %v766_v42 }
 0x37e   : > { %1239 = vmatprep.subr.bf16.mxu0 %v1303_v1 }
 0x380   : > { %1230 = vmatmul.mubr.msk.bf16.vlgmr.msra.gmra.mrb[16].mxu0 %vm481_vm2, %v767_v46 }
 0x381   : > { %1240 = vmatpush3.bf16.msra.mxu0 %v886_v47  ;;  %1241 = vmatprep.mubr.msk.bf16.mxu0 %vm1304_vm0, %v1303_v1 }
 0x382   : > { %v1292_v48 = vpop.eup %1291 }
 0x383   : > { %v878_v49 = vmul.f32 %v1292_v48, %v1284_v27 }
 0x385   : > { %v879_v50 = vpack.c.bf16 %v878_v49, %v878_v49 }
 0x388   : > { %1242 = vmatmul.mubr.msk.bf16.vlgmr.msra.gmra.mrb[20].mxu0 %vm481_vm2, %v879_v50 }
 0x3d8   : > { %v583_v51 = vpop.f32.mrb[8].mxu0 }
 0x3d9   : > { %v1207_v52 = vpop.f32.mrb[9].mxu0 }
 0x3da   : > { %v586_v53 = vpop.f32.mrb[10].mxu0 }
 0x3db   : > { %v1208_v54 = vpop.f32.mrb[11].mxu0 }
 0x44a   : > { %v698_v56 = vpop.f32.mrb[12].mxu0 }
 0x44b   : > { %929 = vrot.lane.b32.xlu1 %v698_v56, %s1308_s9  ;;  %v1219_v57 = vpop.f32.mrb[13].mxu0 }
 0x44c   : > { %v701_v58 = vpop.f32.mrb[14].mxu0 }
 0x44d   : > { %v1220_v59 = vpop.f32.mrb[15].mxu0 }
 0x453   : > { %v810_v61 = vpop.f32.mrb[16].mxu0 }
 0x454   : > { %933 = vrot.lane.b32.xlu0 %v810_v61, %s1309_s13  ;;  %v1231_v62 = vpop.f32.mrb[17].mxu0 }
 0x455   : > { %v813_v63 = vpop.f32.mrb[18].mxu0 }
 0x456   : > { %v1232_v0 = vpop.f32.mrb[19].mxu0 }
 0x45b   : > { %v922_v2 = vpop.f32.mrb[20].mxu0 }
 0x45c   : > { %937 = vrot.lane.b32.xlu1 %v922_v2, %s1310_s14  ;;  %v1243_v1 = vpop.f32.mrb[21].mxu0 }
 0x45d   : > { %v925_v3 = vpop.f32.mrb[22].mxu0 }
 0x45e   : > { %v1244_v4 = vpop.f32.mrb[23].mxu0 }
 0x4bd   : > { %v930_v6 = vpop.permute.xlu1 %929 }
 0x4be   : > { %v940_v8 = vsel %vm481_vm2, %v583_v51, %v930_v6 }
 0x4c6   : > { %v934_v7 = vpop.permute.xlu0 %933 }
 0x4c7   : > { %v942_v9 = vsel %vm941_vm5, %v940_v8, %v934_v7 }
 0x4ce   : > { %v938_v10 = vpop.permute.xlu1 %937 }
 0x4cf   : > { %v944_v11 = vsel %vm943_vm6, %v942_v9, %v938_v10 }
 0x4d0   : > { %v945_v12 = vpack.c.bf16 %v944_v11, %v944_v11 }
 0x4d2   : > { %1250 = vmatmul.mubr.msk.bf16.vlgmr.msra.gmra.mrb[20].mxu1 %vm299_vm1, %v945_v12 }
 0x5a5   : > { %v1006_v15 = vpop.f32.mrb[20].mxu1 }
 0x5a6   : > { %v1007_v16 = vadd.f32 %v1137_v13, %v1006_v15  ;;  %v1251_v17 = vpop.f32.mrb[21].mxu1 }
 0x5a7   : > { %v1009_v18 = vpop.f32.mrb[22].mxu1 }
 0x5a8   : > { %v1252_v19 = vpop.f32.mrb[23].mxu1  ;;  %v1013_v20 = vadd.f32 %v1012_v14, %v1007_v16 }
 0x5aa   : > { %v1014_v21 = vsel %vm299_vm1, %v1013_v20, 0.0 }
 0x5ab   : > { %1015 = vadd.xlane.f32.xlu0 %v1014_v21 }
 0x638   : > { %v1016_v22 = vpop.xlane.xlu0 %1015 }
 0x639   : > { %v1018_v23 = vmul.f32 0.03125, %v1016_v22 }
 0x63b   : > { %v1019_v24 = vsub.f32 %v1013_v20, %v1018_v23 }
 0x63d   : > { %v1020_v25 = vmul.f32 %v1019_v24, %v1019_v24 }
 0x63f   : > { %v1021_v26 = vsel %vm299_vm1, %v1020_v25, 0.0 }
 0x640   : > { %1022 = vadd.xlane.f32.xlu1 %v1021_v26 }
 0x6cd   : > { %v1023_v27 = vpop.xlane.xlu1 %1022 }
 0x6ce   : > { %v1024_v28 = vmul.f32 0.03125, %v1023_v27 }
 0x6d0   : > { %v1025_v5 = vadd.f32 1e-05, %v1024_v28 }
 0x6d2   : > { %1293 = vrsqrt.f32 %v1025_v5 }
 0x6dc   : > { %v1294_v29 = vpop.eup %1293 }
 0x6dd   : > { %v1027_v31 = vmul.f32 %v1294_v29, %v1019_v24 }
 0x6df   : > { %v1035_v33 = vmul.f32 %v1141_v30, %v1027_v31 }
 0x6e1   : > { %v1043_v34 = vadd.f32 %v1142_v32, %v1035_v33 }
 0x6e3   : > { %v1044_v35 = vpack.c.bf16 %v1043_v34, %v1043_v34 }
 0x6e5   : > { %1046 = vst.msk [vmem:[%s273_s23] sm:$0xf] %vm1045_vm7, %v1044_v35 }
 0x6e6 PF: > { %s17_s24 = sadd.s32 1, %s1301_s24  }
 0x6e7   : > { %p14_p4 = scmp.ge.s32.totalorder %s17_s24, 4  }
 0x6e9   :  { %16 = sbr.rel (!%p14_p4) target bundleno = 1 (0x1), region = 82 }

</bundles_post_ra>
